<compile_context>
chip_gen: v6e
topology: v6e:2x2x1
jax: 0.10.0
libtpu: 0.0.40
codegen_flags: <defaults>
</compile_context>

<pallas_src>
import functools

import numpy as np
import jax
import jax.numpy as jnp
from jax.experimental import pallas as pl
from jax.experimental.pallas import tpu as pltpu

K3 = 5          # Conv3d kernel size
PAD = K3 // 2   # 'same' padding
EPS = 1e-5      # BatchNorm eps
LANE = 128      # lane width for padded outputs


# ---------------------------------------------------------------------------
# Pallas kernel: whole forward pass as a fused chain of matmuls (one call).
# ---------------------------------------------------------------------------
def _fused_forward_kernel(*refs, compute_dtype):
    x_ref, o_ref = refs[0], refs[-1]
    layer_refs = refs[1:-1]                     # (M1, c1, ..., M6, c6)
    n_layers = len(layer_refs) // 2

    h = x_ref[...]
    for li in range(n_layers):
        m = layer_refs[2 * li][...]
        c = layer_refs[2 * li + 1][...]
        h = jnp.dot(h.astype(compute_dtype), m,
                    preferred_element_type=jnp.float32) + c
        if li < n_layers - 1:                   # ReLU on all but the logits
            h = jnp.maximum(h, 0.0)
    o_ref[...] = h


def _round_up(x, m):
    return (x + m - 1) // m * m


def fused_forward(x, mats, vecs, *, num_classes, compute_dtype=jnp.float32,
                  tm_max=256):
    """x: (B, 64) float32 -> logits (B, num_classes) float32."""
    B, k_in = x.shape
    TM = min(tm_max, _round_up(B, 8))
    b_pad = _round_up(B, TM)
    if b_pad != B:
        x = jnp.pad(x, ((0, b_pad - B), (0, 0)))
    x = x.astype(compute_dtype)
    mats = [m.astype(compute_dtype) for m in mats]   # matmul operands
    vecs = [v.astype(jnp.float32) for v in vecs]     # bias/epilogue stays f32

    n_out = mats[-1].shape[1]                        # lane-padded (128)
    in_specs = [pl.BlockSpec((TM, k_in), lambda i: (i, 0))]
    operands = [x]
    for m, c in zip(mats, vecs):
        in_specs.append(pl.BlockSpec(m.shape, lambda i: (0, 0)))  # VMEM-resident
        in_specs.append(pl.BlockSpec(c.shape, lambda i: (0, 0)))
        operands += [m, c]

    out = pl.pallas_call(
        functools.partial(_fused_forward_kernel, compute_dtype=compute_dtype),
        out_shape=jax.ShapeDtypeStruct((b_pad, n_out), jnp.float32),
        grid=(b_pad // TM,),
        in_specs=in_specs,
        out_specs=pl.BlockSpec((TM, n_out), lambda i: (i, 0)),
        compiler_params=pltpu.CompilerParams(
            dimension_semantics=("parallel",),        # v7x: both TCs over M
            vmem_limit_bytes=48 * 1024 * 1024,        # fits v5e/v6e and v7x
        ),
    )(*operands)
    return out[:B, :num_classes]


# ---------------------------------------------------------------------------
# Host-side (NumPy) folding of Conv / BN / AvgPool / Linear into dense layers.
# ---------------------------------------------------------------------------
def _conv_same_matrix(w, s):
    """Dense operator of Conv3d(k=5, stride=1, padding='same') on an s^3 volume.
    w: (Cout, Cin, 5,5,5).  Returns (s^3*Cin, s^3*Cout) for channels-last
    (d, h, w, c) flattening on both sides:  y_flat = x_flat @ M."""
    cout, cin = w.shape[0], w.shape[1]
    m = np.zeros((s, s, s, cin, s, s, s, cout), np.float64)
    for do in range(s):
        for ho in range(s):
            for wo in range(s):
                for kd in range(K3):
                    di = do + kd - PAD
                    if di < 0 or di >= s:
                        continue
                    for kh in range(K3):
                        hi = ho + kh - PAD
                        if hi < 0 or hi >= s:
                            continue
                        for kw in range(K3):
                            wi = wo + kw - PAD
                            if wi < 0 or wi >= s:
                                continue
                            m[di, hi, wi, :, do, ho, wo, :] = w[:, :, kd, kh, kw].T
    return m.reshape(s ** 3 * cin, s ** 3 * cout)


def _avgpool2_matrix(s, c):
    """Dense operator of AvgPool3d(2) on an s^3, c-channel (channels-last) volume."""
    so = s // 2
    m = np.zeros((s, s, s, c, so, so, so, c), np.float64)
    eye = np.eye(c, dtype=np.float64) / 8.0
    for do in range(so):
        for ho in range(so):
            for wo in range(so):
                for dd in range(2):
                    for dh in range(2):
                        for dw in range(2):
                            m[2 * do + dd, 2 * ho + dh, 2 * wo + dw, :,
                              do, ho, wo, :] = eye
    return m.reshape(s ** 3 * c, so ** 3 * c)


def _bn_scale_shift(bn):
    s = np.asarray(bn["gamma"], np.float64) / np.sqrt(np.asarray(bn["var"], np.float64) + EPS)
    t = np.asarray(bn["beta"], np.float64) - np.asarray(bn["mean"], np.float64) * s
    return s, t


def fold_params(p, num_classes):
    """Fold the whole Model3D (inference) into 6 dense affine layers."""
    f = lambda a: np.asarray(a, np.float64)
    s1, t1 = _bn_scale_shift(p["bn1"])
    s2, t2 = _bn_scale_shift(p["bn2"])
    s3, t3 = _bn_scale_shift(p["bn3"])
    s4, t4 = _bn_scale_shift(p["bn4"])

    # layer 1: x (4^3 * 1) -> conv1 pre-activation (4^3 * 32)
    C1 = _conv_same_matrix(f(p["w1"]), 4)                        # (64, 2048)
    M1, v1 = C1, np.tile(f(p["b1"]), 4 ** 3)

    # layer 2: relu1 -> bn1 -> avgpool(2) -> conv2      (2048 -> 512)
    P1 = _avgpool2_matrix(4, 32)                                 # (2048, 256)
    C2 = _conv_same_matrix(f(p["w2"]), 2)                        # (256, 512)
    M2 = (np.tile(s1, 4 ** 3)[:, None] * P1) @ C2
    v2 = (np.tile(t1, 4 ** 3) @ P1) @ C2 + np.tile(f(p["b2"]), 2 ** 3)

    # layer 3: relu2 -> bn2 -> avgpool(2) -> conv3      (512 -> 128)
    P2 = _avgpool2_matrix(2, 64)                                 # (512, 64)
    C3 = _conv_same_matrix(f(p["w3"]), 1)                        # (64, 128)  center tap
    M3 = (np.tile(s2, 2 ** 3)[:, None] * P2) @ C3
    v3 = (np.tile(t2, 2 ** 3) @ P2) @ C3 + f(p["b3"])

    # layer 4: relu3 -> bn3 -> conv4                     (128 -> 256)
    C4 = _conv_same_matrix(f(p["w4"]), 1)                        # (128, 256) center tap
    M4 = s3[:, None] * C4
    v4 = t3 @ C4 + f(p["b4"])

    # layer 5: relu4 -> bn4 -> flatten -> Linear(256, 512)
    M5 = s4[:, None] * f(p["lw1"])
    v5 = t4 @ f(p["lw1"]) + f(p["lb1"])

    # layer 6: relu5 -> Linear(512, num_classes), zero-padded to 128 lanes
    M6 = np.zeros((512, LANE), np.float64)
    M6[:, :num_classes] = f(p["lw2"])
    v6 = np.zeros((LANE,), np.float64)
    v6[:num_classes] = f(p["lb2"])

    mats = [jnp.asarray(m, jnp.float32) for m in (M1, M2, M3, M4, M5, M6)]
    vecs = [jnp.asarray(v.reshape(1, -1), jnp.float32)
            for v in (v1, v2, v3, v4, v5, v6)]
    return mats, vecs


# ---------------------------------------------------------------------------
# Parameter init and an independent NumPy float64 reference (op-by-op).
# ---------------------------------------------------------------------------
def init_params(key, num_classes=5):
    ks = jax.random.split(key, 6)

    def conv_w(k, o, c):
        return jax.random.normal(k, (o, c, K3, K3, K3), jnp.float32) * 0.05

    def bn(c, seed):
        k1, k2 = jax.random.split(jax.random.PRNGKey(seed))
        return dict(gamma=1.0 + 0.1 * jax.random.normal(k1, (c,), jnp.float32),
                    beta=0.05 * jax.random.normal(k2, (c,), jnp.float32),
                    mean=jnp.zeros((c,), jnp.float32),
                    var=jnp.ones((c,), jnp.float32))

    return {
        "w1": conv_w(ks[0], 32, 1),    "b1": jnp.full((32,), 0.01, jnp.float32),  "bn1": bn(32, 1),
        "w2": conv_w(ks[1], 64, 32),   "b2": jnp.full((64,), 0.01, jnp.float32),  "bn2": bn(64, 2),
        "w3": conv_w(ks[2], 128, 64),  "b3": jnp.full((128,), 0.01, jnp.float32), "bn3": bn(128, 3),
        "w4": conv_w(ks[3], 256, 128), "b4": jnp.full((256,), 0.01, jnp.float32), "bn4": bn(256, 4),
        "lw1": jax.random.normal(ks[4], (256, 512), jnp.float32) * 0.05,
        "lb1": jnp.zeros((512,), jnp.float32),
        "lw2": jax.random.normal(ks[5], (512, num_classes), jnp.float32) * 0.05,
        "lb2": jnp.zeros((num_classes,), jnp.float32),
    }


def reference_forward(p, x):
    """Float64 NumPy reference that follows Model3D.forward literally (inference)."""
    f = lambda a: np.asarray(a, np.float64)

    def conv3d_same(h, w, b):
        bb, cin, d, hh, ww = h.shape
        cout = w.shape[0]
        hp = np.zeros((bb, cin, d + 2 * PAD, hh + 2 * PAD, ww + 2 * PAD))
        hp[:, :, PAD:PAD + d, PAD:PAD + hh, PAD:PAD + ww] = h
        y = np.zeros((bb, cout, d, hh, ww))
        for kd in range(K3):
            for kh in range(K3):
                for kw in range(K3):
                    patch = hp[:, :, kd:kd + d, kh:kh + hh, kw:kw + ww]
                    y += np.einsum("bcdhw,oc->bodhw", patch, w[:, :, kd, kh, kw])
        return y + b[None, :, None, None, None]

    def bn(h, bnp):
        s = f(bnp["gamma"]) / np.sqrt(f(bnp["var"]) + EPS)
        t = f(bnp["beta"]) - f(bnp["mean"]) * s
        return h * s[None, :, None, None, None] + t[None, :, None, None, None]

    def pool2(h):
        bb, c, d, hh, ww = h.shape
        return h.reshape(bb, c, d // 2, 2, hh // 2, 2, ww // 2, 2).mean(axis=(3, 5, 7))

    h = f(x).reshape(x.shape[0], 1, 4, 4, 4)
    h = pool2(bn(np.maximum(conv3d_same(h, f(p["w1"]), f(p["b1"])), 0.0), p["bn1"]))
    h = pool2(bn(np.maximum(conv3d_same(h, f(p["w2"]), f(p["b2"])), 0.0), p["bn2"]))
    h = bn(np.maximum(conv3d_same(h, f(p["w3"]), f(p["b3"])), 0.0), p["bn3"])
    h = bn(np.maximum(conv3d_same(h, f(p["w4"]), f(p["b4"])), 0.0), p["bn4"])
    h = h.reshape(x.shape[0], -1)
    h = np.maximum(h @ f(p["lw1"]) + f(p["lb1"]), 0.0)
    return h @ f(p["lw2"]) + f(p["lb2"])


if __name__ == "__main__":
    key = jax.random.PRNGKey(0)
    pkey, xkey = jax.random.split(key)
    num_classes = 5

    params = init_params(pkey, num_classes=num_classes)
    mats, vecs = fold_params(params, num_classes)         # one-time host fold

    # Model3D reshapes its input to (B, 1, 4, 4, 4) -> input is (B, 64).
    x = jax.random.normal(xkey, (2, 64), jnp.float32)

    fwd = jax.jit(functools.partial(fused_forward, num_classes=num_classes))
    out = jax.block_until_ready(fwd(x, mats, vecs))

    assert out.shape == (2, num_classes), out.shape
    assert out.dtype == jnp.float32

    # Sanity-check the fused kernel against an independent f64 reference.
    ref = reference_forward(params, np.asarray(x))
    scale = max(float(np.abs(ref).max()), 1e-3)
    np.testing.assert_allclose(np.asarray(out, np.float64), ref,
                               rtol=0.0, atol=5e-2 * scale)

    print("KERNEL_OK")
</pallas_src>

<mosaic_0001>
module attributes {stable_mosaic.version = 11 : i64} {
  func.func @_fused_forward_kernel(%arg0: i32, %arg1: memref<8x64xf32, #tpu.memory_space<vmem>>, %arg2: memref<64x2048xf32, #tpu.memory_space<vmem>>, %arg3: memref<1x2048xf32, #tpu.memory_space<vmem>>, %arg4: memref<2048x512xf32, #tpu.memory_space<vmem>>, %arg5: memref<1x512xf32, #tpu.memory_space<vmem>>, %arg6: memref<512x128xf32, #tpu.memory_space<vmem>>, %arg7: memref<1x128xf32, #tpu.memory_space<vmem>>, %arg8: memref<128x256xf32, #tpu.memory_space<vmem>>, %arg9: memref<1x256xf32, #tpu.memory_space<vmem>>, %arg10: memref<256x512xf32, #tpu.memory_space<vmem>>, %arg11: memref<1x512xf32, #tpu.memory_space<vmem>>, %arg12: memref<512x128xf32, #tpu.memory_space<vmem>>, %arg13: memref<1x128xf32, #tpu.memory_space<vmem>>, %arg14: memref<8x128xf32, #tpu.memory_space<vmem>>) attributes {dimension_semantics = [#tpu.dimension_semantics<parallel>], iteration_bounds = array<i64: 1>, scalar_prefetch = 0 : i64, scratch_operands = 0 : i64, tpu.core_type = #tpu.core_type<tc>, window_params = [{transform_indices = @transform_0, window_bounds = array<i64: 8, 64>}, {pipeline_mode = #tpu.pipeline_mode<synchronous>, transform_indices = @transform_1, window_bounds = array<i64: 64, 2048>}, {pipeline_mode = #tpu.pipeline_mode<synchronous>, transform_indices = @transform_2, window_bounds = array<i64: 1, 2048>}, {pipeline_mode = #tpu.pipeline_mode<synchronous>, transform_indices = @transform_3, window_bounds = array<i64: 2048, 512>}, {pipeline_mode = #tpu.pipeline_mode<synchronous>, transform_indices = @transform_4, window_bounds = array<i64: 1, 512>}, {pipeline_mode = #tpu.pipeline_mode<synchronous>, transform_indices = @transform_5, window_bounds = array<i64: 512, 128>}, {pipeline_mode = #tpu.pipeline_mode<synchronous>, transform_indices = @transform_6, window_bounds = array<i64: 1, 128>}, {pipeline_mode = #tpu.pipeline_mode<synchronous>, transform_indices = @transform_7, window_bounds = array<i64: 128, 256>}, {pipeline_mode = #tpu.pipeline_mode<synchronous>, transform_indices = @transform_8, window_bounds = array<i64: 1, 256>}, {pipeline_mode = #tpu.pipeline_mode<synchronous>, transform_indices = @transform_9, window_bounds = array<i64: 256, 512>}, {pipeline_mode = #tpu.pipeline_mode<synchronous>, transform_indices = @transform_10, window_bounds = array<i64: 1, 512>}, {pipeline_mode = #tpu.pipeline_mode<synchronous>, transform_indices = @transform_11, window_bounds = array<i64: 512, 128>}, {pipeline_mode = #tpu.pipeline_mode<synchronous>, transform_indices = @transform_12, window_bounds = array<i64: 1, 128>}, {transform_indices = @transform_13, window_bounds = array<i64: 8, 128>}]} {
    %c0 = arith.constant 0 : index
    %c0_0 = arith.constant 0 : index
    %0 = vector.load %arg1[%c0, %c0_0] : memref<8x64xf32, #tpu.memory_space<vmem>>, vector<8x64xf32>
    %c0_1 = arith.constant 0 : index
    %c0_2 = arith.constant 0 : index
    %1 = vector.load %arg2[%c0_1, %c0_2] : memref<64x2048xf32, #tpu.memory_space<vmem>>, vector<64x2048xf32>
    %c0_3 = arith.constant 0 : index
    %c0_4 = arith.constant 0 : index
    %2 = vector.load %arg3[%c0_3, %c0_4] : memref<1x2048xf32, #tpu.memory_space<vmem>>, vector<1x2048xf32>
    %cst = arith.constant dense<0.000000e+00> : vector<8x2048xf32>
    %3 = tpu.matmul %0, %1, %cst {dimension_numbers = #tpu.dot_dimension_numbers<[1], [0], [0], [1], [0, 0, 1, 1], [], []>} : vector<8x64xf32>, vector<64x2048xf32>, vector<8x2048xf32> -> vector<8x2048xf32>
    %4 = vector.broadcast %2 : vector<1x2048xf32> to vector<8x2048xf32>
    %5 = arith.addf %3, %4 : vector<8x2048xf32>
    %cst_5 = arith.constant 0.000000e+00 : f32
    %6 = vector.broadcast %cst_5 : f32 to vector<8x2048xf32>
    %7 = arith.maximumf %5, %6 : vector<8x2048xf32>
    %c0_6 = arith.constant 0 : index
    %c0_7 = arith.constant 0 : index
    %8 = vector.load %arg4[%c0_6, %c0_7] : memref<2048x512xf32, #tpu.memory_space<vmem>>, vector<2048x512xf32>
    %c0_8 = arith.constant 0 : index
    %c0_9 = arith.constant 0 : index
    %9 = vector.load %arg5[%c0_8, %c0_9] : memref<1x512xf32, #tpu.memory_space<vmem>>, vector<1x512xf32>
    %cst_10 = arith.constant dense<0.000000e+00> : vector<8x512xf32>
    %10 = tpu.matmul %7, %8, %cst_10 {dimension_numbers = #tpu.dot_dimension_numbers<[1], [0], [0], [1], [0, 0, 1, 1], [], []>} : vector<8x2048xf32>, vector<2048x512xf32>, vector<8x512xf32> -> vector<8x512xf32>
    %11 = vector.broadcast %9 : vector<1x512xf32> to vector<8x512xf32>
    %12 = arith.addf %10, %11 : vector<8x512xf32>
    %cst_11 = arith.constant 0.000000e+00 : f32
    %13 = vector.broadcast %cst_11 : f32 to vector<8x512xf32>
    %14 = arith.maximumf %12, %13 : vector<8x512xf32>
    %c0_12 = arith.constant 0 : index
    %c0_13 = arith.constant 0 : index
    %15 = vector.load %arg6[%c0_12, %c0_13] : memref<512x128xf32, #tpu.memory_space<vmem>>, vector<512x128xf32>
    %c0_14 = arith.constant 0 : index
    %c0_15 = arith.constant 0 : index
    %16 = vector.load %arg7[%c0_14, %c0_15] : memref<1x128xf32, #tpu.memory_space<vmem>>, vector<1x128xf32>
    %cst_16 = arith.constant dense<0.000000e+00> : vector<8x128xf32>
    %17 = tpu.matmul %14, %15, %cst_16 {dimension_numbers = #tpu.dot_dimension_numbers<[1], [0], [0], [1], [0, 0, 1, 1], [], []>} : vector<8x512xf32>, vector<512x128xf32>, vector<8x128xf32> -> vector<8x128xf32>
    %18 = vector.broadcast %16 : vector<1x128xf32> to vector<8x128xf32>
    %19 = arith.addf %17, %18 : vector<8x128xf32>
    %cst_17 = arith.constant 0.000000e+00 : f32
    %20 = vector.broadcast %cst_17 : f32 to vector<8x128xf32>
    %21 = arith.maximumf %19, %20 : vector<8x128xf32>
    %c0_18 = arith.constant 0 : index
    %c0_19 = arith.constant 0 : index
    %22 = vector.load %arg8[%c0_18, %c0_19] : memref<128x256xf32, #tpu.memory_space<vmem>>, vector<128x256xf32>
    %c0_20 = arith.constant 0 : index
    %c0_21 = arith.constant 0 : index
    %23 = vector.load %arg9[%c0_20, %c0_21] : memref<1x256xf32, #tpu.memory_space<vmem>>, vector<1x256xf32>
    %cst_22 = arith.constant dense<0.000000e+00> : vector<8x256xf32>
    %24 = tpu.matmul %21, %22, %cst_22 {dimension_numbers = #tpu.dot_dimension_numbers<[1], [0], [0], [1], [0, 0, 1, 1], [], []>} : vector<8x128xf32>, vector<128x256xf32>, vector<8x256xf32> -> vector<8x256xf32>
    %25 = vector.broadcast %23 : vector<1x256xf32> to vector<8x256xf32>
    %26 = arith.addf %24, %25 : vector<8x256xf32>
    %cst_23 = arith.constant 0.000000e+00 : f32
    %27 = vector.broadcast %cst_23 : f32 to vector<8x256xf32>
    %28 = arith.maximumf %26, %27 : vector<8x256xf32>
    %c0_24 = arith.constant 0 : index
    %c0_25 = arith.constant 0 : index
    %29 = vector.load %arg10[%c0_24, %c0_25] : memref<256x512xf32, #tpu.memory_space<vmem>>, vector<256x512xf32>
    %c0_26 = arith.constant 0 : index
    %c0_27 = arith.constant 0 : index
    %30 = vector.load %arg11[%c0_26, %c0_27] : memref<1x512xf32, #tpu.memory_space<vmem>>, vector<1x512xf32>
    %cst_28 = arith.constant dense<0.000000e+00> : vector<8x512xf32>
    %31 = tpu.matmul %28, %29, %cst_28 {dimension_numbers = #tpu.dot_dimension_numbers<[1], [0], [0], [1], [0, 0, 1, 1], [], []>} : vector<8x256xf32>, vector<256x512xf32>, vector<8x512xf32> -> vector<8x512xf32>
    %32 = vector.broadcast %30 : vector<1x512xf32> to vector<8x512xf32>
    %33 = arith.addf %31, %32 : vector<8x512xf32>
    %cst_29 = arith.constant 0.000000e+00 : f32
    %34 = vector.broadcast %cst_29 : f32 to vector<8x512xf32>
    %35 = arith.maximumf %33, %34 : vector<8x512xf32>
    %c0_30 = arith.constant 0 : index
    %c0_31 = arith.constant 0 : index
    %36 = vector.load %arg12[%c0_30, %c0_31] : memref<512x128xf32, #tpu.memory_space<vmem>>, vector<512x128xf32>
    %c0_32 = arith.constant 0 : index
    %c0_33 = arith.constant 0 : index
    %37 = vector.load %arg13[%c0_32, %c0_33] : memref<1x128xf32, #tpu.memory_space<vmem>>, vector<1x128xf32>
    %cst_34 = arith.constant dense<0.000000e+00> : vector<8x128xf32>
    %38 = tpu.matmul %35, %36, %cst_34 {dimension_numbers = #tpu.dot_dimension_numbers<[1], [0], [0], [1], [0, 0, 1, 1], [], []>} : vector<8x512xf32>, vector<512x128xf32>, vector<8x128xf32> -> vector<8x128xf32>
    %39 = vector.broadcast %37 : vector<1x128xf32> to vector<8x128xf32>
    %40 = arith.addf %38, %39 : vector<8x128xf32>
    %c0_35 = arith.constant 0 : index
    %c0_36 = arith.constant 0 : index
    %41 = vector.load %arg14[%c0_35, %c0_36] : memref<8x128xf32, #tpu.memory_space<vmem>>, vector<8x128xf32>
    tpu.vector_store %arg14[%c0_35, %c0_36], %40 {strides = array<i32>} : memref<8x128xf32, #tpu.memory_space<vmem>>, vector<8x128xf32>,
    return
  }
  func.func @transform_0(%arg0: i32) -> (i32, i32) {
    %c0_i32 = arith.constant 0 : i32
    %c0_i32_0 = arith.constant 0 : i32
    return %arg0, %c0_i32 : i32, i32
  }
  func.func @transform_1(%arg0: i32) -> (i32, i32) {
    %c0_i32 = arith.constant 0 : i32
    %c0_i32_0 = arith.constant 0 : i32
    %c0_i32_1 = arith.constant 0 : i32
    return %c0_i32, %c0_i32_0 : i32, i32
  }
  func.func @transform_2(%arg0: i32) -> (i32, i32) {
    %c0_i32 = arith.constant 0 : i32
    %c0_i32_0 = arith.constant 0 : i32
    %c0_i32_1 = arith.constant 0 : i32
    return %c0_i32, %c0_i32_0 : i32, i32
  }
  func.func @transform_3(%arg0: i32) -> (i32, i32) {
    %c0_i32 = arith.constant 0 : i32
    %c0_i32_0 = arith.constant 0 : i32
    %c0_i32_1 = arith.constant 0 : i32
    return %c0_i32, %c0_i32_0 : i32, i32
  }
  func.func @transform_4(%arg0: i32) -> (i32, i32) {
    %c0_i32 = arith.constant 0 : i32
    %c0_i32_0 = arith.constant 0 : i32
    %c0_i32_1 = arith.constant 0 : i32
    return %c0_i32, %c0_i32_0 : i32, i32
  }
  func.func @transform_5(%arg0: i32) -> (i32, i32) {
    %c0_i32 = arith.constant 0 : i32
    %c0_i32_0 = arith.constant 0 : i32
    %c0_i32_1 = arith.constant 0 : i32
    return %c0_i32, %c0_i32_0 : i32, i32
  }
  func.func @transform_6(%arg0: i32) -> (i32, i32) {
    %c0_i32 = arith.constant 0 : i32
    %c0_i32_0 = arith.constant 0 : i32
    %c0_i32_1 = arith.constant 0 : i32
    return %c0_i32, %c0_i32_0 : i32, i32
  }
  func.func @transform_7(%arg0: i32) -> (i32, i32) {
    %c0_i32 = arith.constant 0 : i32
    %c0_i32_0 = arith.constant 0 : i32
    %c0_i32_1 = arith.constant 0 : i32
    return %c0_i32, %c0_i32_0 : i32, i32
  }
  func.func @transform_8(%arg0: i32) -> (i32, i32) {
    %c0_i32 = arith.constant 0 : i32
    %c0_i32_0 = arith.constant 0 : i32
    %c0_i32_1 = arith.constant 0 : i32
    return %c0_i32, %c0_i32_0 : i32, i32
  }
  func.func @transform_9(%arg0: i32) -> (i32, i32) {
    %c0_i32 = arith.constant 0 : i32
    %c0_i32_0 = arith.constant 0 : i32
    %c0_i32_1 = arith.constant 0 : i32
    return %c0_i32, %c0_i32_0 : i32, i32
  }
  func.func @transform_10(%arg0: i32) -> (i32, i32) {
    %c0_i32 = arith.constant 0 : i32
    %c0_i32_0 = arith.constant 0 : i32
    %c0_i32_1 = arith.constant 0 : i32
    return %c0_i32, %c0_i32_0 : i32, i32
  }
  func.func @transform_11(%arg0: i32) -> (i32, i32) {
    %c0_i32 = arith.constant 0 : i32
    %c0_i32_0 = arith.constant 0 : i32
    %c0_i32_1 = arith.constant 0 : i32
    return %c0_i32, %c0_i32_0 : i32, i32
  }
  func.func @transform_12(%arg0: i32) -> (i32, i32) {
    %c0_i32 = arith.constant 0 : i32
    %c0_i32_0 = arith.constant 0 : i32
    %c0_i32_1 = arith.constant 0 : i32
    return %c0_i32, %c0_i32_0 : i32, i32
  }
  func.func @transform_13(%arg0: i32) -> (i32, i32) {
    %c0_i32 = arith.constant 0 : i32
    %c0_i32_0 = arith.constant 0 : i32
    return %arg0, %c0_i32 : i32, i32
  }
}

</mosaic_0001>

<bundles_post_ra>
// kernel: fused_forward.1
= control target key start
LH: loop header
LB: loop body
LE: loop exit
PB: predicated region body
PF: predicated region fallthrough
CT: control target
= control target key end

     0   :  { %18 = vsyncpa [#allocation3], 0  ;;  %s4852_s0 = inlined_call_operand.vmem [shape: f32[8,64], index: 0, kind: input, shape index: {}]   ;;  %s4853_s1 = inlined_call_operand.hbm [shape: f32[64,2048], index: 1, kind: input, shape index: {}]   ;;  %s4854_s2 = inlined_call_operand.hbm [shape: f32[1,2048], index: 2, kind: input, shape index: {}]   ;;  %s4855_s3 = inlined_call_operand.hbm [shape: f32[2048,512], index: 3, kind: input, shape index: {}]   ;;  %s4856_s4 = inlined_call_operand.hbm [shape: f32[1,512], index: 4, kind: input, shape index: {}]   ;;  %s4857_s5 = inlined_call_operand.hbm [shape: f32[512,128], index: 5, kind: input, shape index: {}]   ;;  %s4858_s6 = inlined_call_operand.hbm [shape: f32[1,128], index: 6, kind: input, shape index: {}]   ;;  %s4859_s7 = inlined_call_operand.hbm [shape: f32[128,256], index: 7, kind: input, shape index: {}]   ;;  %s4860_s8 = inlined_call_operand.hbm [shape: f32[1,256], index: 8, kind: input, shape index: {}]   ;;  %s4861_s9 = inlined_call_operand.hbm [shape: f32[256,512], index: 9, kind: input, shape index: {}]   ;;  %s4862_s10 = inlined_call_operand.hbm [shape: f32[1,512], index: 10, kind: input, shape index: {}]   ;;  %s4863_s11 = inlined_call_operand.hbm [shape: f32[512,128], index: 11, kind: input, shape index: {}]   ;;  %s4864_s12 = inlined_call_operand.hbm [shape: f32[1,128], index: 12, kind: input, shape index: {}]   ;;  %s4865_s13 = inlined_call_operand.vmem [shape: f32[8,128], index: 13, kind: output, shape index: {}]  }
   0x1   :  { %19 = vsyncpa [#allocation5], 0 }
   0x2   :  { %20 = vsyncpa [#allocation8], 0 }
   0x3   :  { %21 = vsyncpa [#allocation11], 0 }
   0x4   :  { %22 = vsyncpa [#allocation14], 0 }
   0x5   :  { %23 = vsyncpa [#allocation17], 0 }
   0x6   :  { %24 = vsyncpa [#allocation20], 0  ;;  %s4454_s25 = smov [#allocation4]   ;;  %s4455_s27 = smov [#allocation7]  }
   0x7   :  { %s45_s26 = sshll.u32 %s4454_s25, 4  ;;  %s67_s28 = sshll.u32 %s4455_s27, 4  ;;  %s46_s26 = int_to_ptr.vmem [resolvable:$true] %s45_s26  ;;  %s68_s28 = int_to_ptr.vmem [resolvable:$true] %s67_s28 }
   0x8   :  { %s4208_s29 = scalar_lea.vmem %s46_s26, 256  ;;  %p4213_p1 = scmp.lt.s32.totalorder %s46_s26, %s46_s26 }
   0x9   :  { %p4209_p0 = scmp.ne.s32.totalorder %s46_s26, %s4208_s29  ;;  %p4214_p2 = scmp.lt.s32.totalorder %s4208_s29, %s4208_s29 }
   0xb   :  { %p4215_p3 = por %p4214_p2, %p4213_p1 }
   0xd   :  { %p4216_p4 = pnand %p4215_p3, %p4209_p0 }
   0xf   :  { %4219 = shalt.err (!%p4216_p4)
}
  0x10   :  { %48 = dma.hbm_to_vmem [thread:$0]  %s4854_s2, 256, %s46_s26, [#allocation5]  }
  0x11   :  { %s4228_s15 = scalar_lea.vmem %s68_s28, 64  ;;  %p4233_p6 = scmp.lt.s32.totalorder %s68_s28, %s68_s28 }
  0x12   :  { %p4229_p5 = scmp.ne.s32.totalorder %s68_s28, %s4228_s15  ;;  %p4234_p7 = scmp.lt.s32.totalorder %s4228_s15, %s4228_s15 }
  0x14   :  { %p4235_p8 = por %p4234_p7, %p4233_p6 }
  0x16   :  { %p4236_p9 = pnand %p4235_p8, %p4229_p5 }
  0x18   :  { %4239 = shalt.err (!%p4236_p9)
}
  0x19   :  { %70 = dma.hbm_to_vmem [thread:$0]  %s4856_s4, 64, %s68_s28, [#allocation8]  }
  0x1a   :  { %s4456_s18 = smov [#allocation10]   ;;  %s4457_s20 = smov [#allocation13]  }
  0x1b   :  { %s89_s19 = sshll.u32 %s4456_s18, 4  ;;  %s111_s21 = sshll.u32 %s4457_s20, 4  ;;  %s90_s19 = int_to_ptr.vmem [resolvable:$true] %s89_s19  ;;  %s112_s21 = int_to_ptr.vmem [resolvable:$true] %s111_s21 }
  0x1c   :  { %s4248_s22 = scalar_lea.vmem %s90_s19, 16  ;;  %s4252_s2 = scalar_lea.vmem %s90_s19, 32 }
  0x1d   :  { %p4249_p10 = scmp.ne.s32.totalorder %s90_s19, %s4248_s22  ;;  %p4253_p11 = scmp.lt.s32.totalorder %s90_s19, %s90_s19 }
  0x1e   :  { %p4254_p12 = scmp.lt.s32.totalorder %s4252_s2, %s4248_s22 }
  0x20   :  { %p4255_p13 = por %p4254_p12, %p4253_p11 }
  0x22   :  { %p4256_p0 = pnand %p4255_p13, %p4249_p10 }
  0x24   :  { %4259 = shalt.err (!%p4256_p0)
}
  0x25   :  { %92 = dma.hbm_to_vmem [thread:$0]  %s4858_s6, 16, %s90_s19, [#allocation11]  }
  0x26   :  { %s4268_s25 = scalar_lea.vmem %s112_s21, 32  ;;  %p4273_p2 = scmp.lt.s32.totalorder %s112_s21, %s112_s21 }
  0x27   :  { %p4269_p1 = scmp.ne.s32.totalorder %s112_s21, %s4268_s25  ;;  %p4274_p3 = scmp.lt.s32.totalorder %s4268_s25, %s4268_s25 }
  0x29   :  { %p4275_p4 = por %p4274_p3, %p4273_p2 }
  0x2b   :  { %p4276_p5 = pnand %p4275_p4, %p4269_p1 }
  0x2d   :  { %4279 = shalt.err (!%p4276_p5)
}
  0x2e   :  { %114 = dma.hbm_to_vmem [thread:$0]  %s4860_s8, 32, %s112_s21, [#allocation14]  }
  0x2f   :  { %s4458_s27 = smov [#allocation16]   ;;  %s4459_s29 = smov [#allocation2]  }
  0x30   :  { %s133_s28 = sshll.u32 %s4458_s27, 4  ;;  %s32_s30 = sshll.u32 %s4459_s29, 4  ;;  %s134_s28 = int_to_ptr.vmem [resolvable:$true] %s133_s28  ;;  %s33_s30 = int_to_ptr.vmem [resolvable:$true] %s32_s30 }
  0x31   :  { %s4288_s14 = scalar_lea.vmem %s134_s28, 64  ;;  %p4293_p7 = scmp.lt.s32.totalorder %s134_s28, %s134_s28 }
  0x32   :  { %p4289_p6 = scmp.ne.s32.totalorder %s134_s28, %s4288_s14  ;;  %p4294_p8 = scmp.lt.s32.totalorder %s4288_s14, %s4288_s14 }
  0x34   :  { %p4295_p9 = por %p4294_p8, %p4293_p7 }
  0x36   :  { %p4296_p10 = pnand %p4295_p9, %p4289_p6 }
  0x38   :  { %4299 = shalt.err (!%p4296_p10)
}
  0x39   :  { %136 = dma.hbm_to_vmem [thread:$0]  %s4862_s10, 64, %s134_s28, [#allocation17]  }
  0x3a   :  { %s4308_s16 = scalar_lea.vmem %s33_s30, 16384  ;;  %p4313_p12 = scmp.lt.s32.totalorder %s33_s30, %s33_s30 }
  0x3b   :  { %p4309_p11 = scmp.ne.s32.totalorder %s33_s30, %s4308_s16  ;;  %p4314_p13 = scmp.lt.s32.totalorder %s4308_s16, %s4308_s16 }
  0x3d   :  { %p4315_p0 = por %p4314_p13, %p4313_p12 }
  0x3f   :  { %p4316_p1 = pnand %p4315_p0, %p4309_p11 }
  0x41   :  { %4319 = shalt.err (!%p4316_p1)
}
  0x42   :  { %s4460_s8 = smov 2048   ;;  %s4461_s17 = smov 128  }
  0x43   :  { %38 = dma.hbm_to_vmem [thread:$0]  %s4853_s1, 16384, %s33_s30, [#allocation3], %s4460_s8, %s4460_s8, %s4461_s17  }
  0x44   :  { %s4462_s20 = smov [#allocation6]  }
  0x45   :  { %s54_s21 = sshll.u32 %s4462_s20, 4  ;;  %s55_s21 = int_to_ptr.vmem [resolvable:$true] %s54_s21 }
  0x46   :  { %s4328_s22 = scalar_lea.vmem %s55_s21, 131072  ;;  %p4333_p3 = scmp.lt.s32.totalorder %s55_s21, %s55_s21 }
  0x47   :  { %p4329_p2 = scmp.ne.s32.totalorder %s55_s21, %s4328_s22  ;;  %p4334_p4 = scmp.lt.s32.totalorder %s4328_s22, %s4328_s22 }
  0x49   :  { %p4335_p5 = por %p4334_p4, %p4333_p3 }
  0x4b   :  { %p4336_p6 = pnand %p4335_p5, %p4329_p2 }
  0x4d   :  { %4339 = shalt.err (!%p4336_p6)
}
  0x4e   :  { %s4463_s10 = smov 512   ;;  %s4464_s2 = smov 32  }
  0x4f   :  { %60 = dma.hbm_to_vmem [thread:$0]  %s4855_s3, 131072, %s55_s21, [#allocation5], %s4463_s10, %s4463_s10, %s4464_s2  }
  0x50   :  { %s4465_s1 = smov [#allocation9]  }
  0x51   :  { %s76_s25 = sshll.u32 %s4465_s1, 4  ;;  %s77_s25 = int_to_ptr.vmem [resolvable:$true] %s76_s25 }
  0x52   :  { %s4348_s4 = scalar_lea.vmem %s77_s25, 8192  ;;  %p4353_p8 = scmp.lt.s32.totalorder %s77_s25, %s77_s25 }
  0x53   :  { %p4349_p7 = scmp.ne.s32.totalorder %s77_s25, %s4348_s4  ;;  %p4354_p9 = scmp.lt.s32.totalorder %s4348_s4, %s4348_s4 }
  0x55   :  { %p4355_p10 = por %p4354_p9, %p4353_p8 }
  0x57   :  { %p4356_p11 = pnand %p4355_p10, %p4349_p7 }
  0x59   :  { %4359 = shalt.err (!%p4356_p11)
}
  0x5a   :  { %s4466_s26 = smov 8   ;;  %s4467_s29 = smov [#allocation12]  }
  0x5b   :  { %82 = dma.hbm_to_vmem [thread:$0]  %s4857_s5, 8192, %s77_s25, [#allocation8], %s4461_s17, %s4461_s17, %s4466_s26  }
  0x5c   :  { %s98_s3 = sshll.u32 %s4467_s29, 4  ;;  %s99_s3 = int_to_ptr.vmem [resolvable:$true] %s98_s3 }
  0x5d   :  { %s4368_s30 = scalar_lea.vmem %s99_s3, 4096  ;;  %p4373_p13 = scmp.lt.s32.totalorder %s99_s3, %s99_s3 }
  0x5e   :  { %p4369_p12 = scmp.ne.s32.totalorder %s99_s3, %s4368_s30  ;;  %p4374_p0 = scmp.lt.s32.totalorder %s4368_s30, %s4368_s30 }
  0x60   :  { %p4375_p1 = por %p4374_p0, %p4373_p13 }
  0x62   :  { %p4376_p2 = pnand %p4375_p1, %p4369_p12 }
  0x64   :  { %4379 = shalt.err (!%p4376_p2)
}
  0x65   :  { %s4468_s14 = smov 256   ;;  %s4469_s6 = smov 16  }
  0x66   :  { %104 = dma.hbm_to_vmem [thread:$0]  %s4859_s7, 4096, %s99_s3, [#allocation11], %s4468_s14, %s4468_s14, %s4469_s6  }
  0x67   :  { %s4470_s8 = smov [#allocation15]   ;;  %s4471_s19 = smov [#allocation18]  }
  0x68   :  { %s120_s18 = sshll.u32 %s4470_s8, 4  ;;  %s142_s5 = sshll.u32 %s4471_s19, 4  ;;  %s121_s18 = int_to_ptr.vmem [resolvable:$true] %s120_s18  ;;  %s143_s5 = int_to_ptr.vmem [resolvable:$true] %s142_s5 }
  0x69   :  { %s4388_s20 = scalar_lea.vmem %s121_s18, 16384  ;;  %p4393_p4 = scmp.lt.s32.totalorder %s121_s18, %s121_s18 }
  0x6a   :  { %p4389_p3 = scmp.ne.s32.totalorder %s121_s18, %s4388_s20  ;;  %p4394_p5 = scmp.lt.s32.totalorder %s4388_s20, %s4388_s20 }
  0x6c   :  { %p4395_p6 = por %p4394_p5, %p4393_p4 }
  0x6e   :  { %p4396_p7 = pnand %p4395_p6, %p4389_p3 }
  0x70   :  { %4399 = shalt.err (!%p4396_p7)
}
  0x71   :  { %126 = dma.hbm_to_vmem [thread:$0]  %s4861_s9, 16384, %s121_s18, [#allocation14], %s4463_s10, %s4463_s10, %s4464_s2  }
  0x72   :  { %s4408_s7 = scalar_lea.vmem %s143_s5, 8192  ;;  %p4413_p9 = scmp.lt.s32.totalorder %s143_s5, %s143_s5 }
  0x73   :  { %p4409_p8 = scmp.ne.s32.totalorder %s143_s5, %s4408_s7  ;;  %p4414_p10 = scmp.lt.s32.totalorder %s4408_s7, %s4408_s7 }
  0x75   :  { %p4415_p11 = por %p4414_p10, %p4413_p9 }
  0x77   :  { %p4416_p12 = pnand %p4415_p11, %p4409_p8 }
  0x79   :  { %4419 = shalt.err (!%p4416_p12)
}
  0x7a   :  { %148 = dma.hbm_to_vmem [thread:$0]  %s4863_s11, 8192, %s143_s5, [#allocation17], %s4461_s17, %s4461_s17, %s4466_s26  }
  0x7b   :  { %s4472_s1 = smov [#allocation19]  }
  0x7c   :  { %s155_s25 = sshll.u32 %s4472_s1, 4  ;;  %s156_s25 = int_to_ptr.vmem [resolvable:$true] %s155_s25 }
  0x7d   :  { %s4428_s4 = scalar_lea.vmem %s156_s25, 16  ;;  %s4432_s9 = scalar_lea.vmem %s156_s25, 32 }
  0x7e   :  { %p4429_p13 = scmp.ne.s32.totalorder %s156_s25, %s4428_s4  ;;  %p4433_p0 = scmp.lt.s32.totalorder %s156_s25, %s156_s25 }
  0x7f   :  { %p4434_p1 = scmp.lt.s32.totalorder %s4432_s9, %s4428_s4 }
  0x81   :  { %p4435_p2 = por %p4434_p1, %p4433_p0 }
  0x83   :  { %p4436_p3 = pnand %p4435_p2, %p4429_p13 }
  0x85   :  { %4439 = shalt.err (!%p4436_p3)
}
  0x86   :  { %158 = dma.hbm_to_vmem [thread:$0]  %s4864_s12, 16, %s156_s25, [#allocation20]  }
  0x87   :  { %4440 = dma.done.wait [#allocation3], 16384  }
  0x88   :  { %4441 = vsyncadd [#allocation3], 4294950912 }
  0x89   :  { %4442 = dma.done.wait [#allocation5], 131328  }
  0x8a   :  { %4443 = vsyncadd [#allocation5], 4294835968 }
  0x8b   :  { %4444 = dma.done.wait [#allocation8], 8256  }
  0x8c   :  { %4445 = vsyncadd [#allocation8], 4294959040 }
  0x8d   :  { %4446 = dma.done.wait [#allocation11], 4112  }
  0x8e   :  { %4447 = vsyncadd [#allocation11], 4294963184 }
  0x8f   :  { %4448 = dma.done.wait [#allocation14], 16416  }
  0x90   :  { %4449 = vsyncadd [#allocation14], 4294950880 }
  0x91   :  { %4450 = dma.done.wait [#allocation17], 8256  }
  0x92   :  { %4451 = vsyncadd [#allocation17], 4294959040 }
  0x93   :  { %4452 = dma.done.wait [#allocation20], 16  }
  0x94   :  { %4453 = vsyncadd [#allocation20], 4294967280  ;;  %v4473_v0 = vmov 0.0   ;;  %v309_v1 = vld [vmem:[#allocation2 + $0x388] sm:$0xff]  ;;  %v308_v2 = vld [vmem:[#allocation2 + $0x380] sm:$0xff]  ;;  %vm408_vm0 = vcmask 523264  }
  0x95   :  { %476 = vmatprep.mubr.f32.mxu1 %v4473_v0  ;;  %618 = vmatprep.mubr.f32.mxu0 %v4473_v0  ;;  %v293_v3 = vld [vmem:[#allocation2 + $0x308] sm:$0xff]  ;;  %v292_v4 = vld [vmem:[#allocation2 + $0x300] sm:$0xff]  ;;  %v311_v23 = vld [vmem:[#allocation2 + $0x398] sm:$0xff] }
  0x96   :  { %428 = vmatprep.subr.mxu1 %v309_v1  ;;  %v277_v5 = vld [vmem:[#allocation2 + $0x288] sm:$0xff]  ;;  %v276_v6 = vld [vmem:[#allocation2 + $0x280] sm:$0xff]  ;;  %v310_v24 = vld [vmem:[#allocation2 + $0x390] sm:$0xff] }
  0x97   :  { %429 = vmatpush1.msra.mxu1 %v308_v2  ;;  %v261_v7 = vld [vmem:[#allocation2 + $0x208] sm:$0xff]  ;;  %v260_v8 = vld [vmem:[#allocation2 + $0x200] sm:$0xff]  ;;  %v295_v25 = vld [vmem:[#allocation2 + $0x318] sm:$0xff] }
  0x98   :  { %430 = vmatprep.subr.mxu1 %v293_v3  ;;  %v245_v9 = vld [vmem:[#allocation2 + $0x188] sm:$0xff]  ;;  %v244_v10 = vld [vmem:[#allocation2 + $0x180] sm:$0xff]  ;;  %v294_v27 = vld [vmem:[#allocation2 + $0x310] sm:$0xff] }
  0x99   :  { %431 = vmatpush1.msra.mxu1 %v292_v4  ;;  %v229_v11 = vld [vmem:[#allocation2 + $0x108] sm:$0xff]  ;;  %v228_v12 = vld [vmem:[#allocation2 + $0x100] sm:$0xff]  ;;  %v279_v29 = vld [vmem:[#allocation2 + $0x298] sm:$0xff] }
  0x9a   :  { %432 = vmatprep.subr.mxu1 %v277_v5  ;;  %v213_v13 = vld [vmem:[#allocation2 + $0x88] sm:$0xff]  ;;  %v212_v14 = vld [vmem:[#allocation2 + $0x80] sm:$0xff]  ;;  %v278_v31 = vld [vmem:[#allocation2 + $0x290] sm:$0xff] }
  0x9b   :  { %433 = vmatpush1.msra.mxu1 %v276_v6  ;;  %v313_v15 = vld [vmem:[#allocation2 + $0x3a8] sm:$0xff]  ;;  %v312_v16 = vld [vmem:[#allocation2 + $0x3a0] sm:$0xff]  ;;  %v263_v33 = vld [vmem:[#allocation2 + $0x218] sm:$0xff] }
  0x9c   :  { %434 = vmatprep.subr.mxu1 %v261_v7  ;;  %v297_v17 = vld [vmem:[#allocation2 + $0x328] sm:$0xff]  ;;  %570 = vmatprep.subr.mxu0 %v313_v15  ;;  %v296_v19 = vld [vmem:[#allocation2 + $0x320] sm:$0xff]  ;;  %v262_v35 = vld [vmem:[#allocation2 + $0x210] sm:$0xff] }
  0x9d   :  { %435 = vmatpush1.msra.mxu1 %v260_v8  ;;  %v197_v18 = vld [vmem:[#allocation2 + $0x8] sm:$0xff]  ;;  %v196_v20 = vld [vmem:[#allocation2] sm:$0xff]  ;;  %571 = vmatpush1.msra.mxu0 %v312_v16  ;;  %v247_v37 = vld [vmem:[#allocation2 + $0x198] sm:$0xff] }
  0x9e   :  { %436 = vmatprep.subr.mxu1 %v245_v9  ;;  %v281_v21 = vld [vmem:[#allocation2 + $0x2a8] sm:$0xff]  ;;  %v4598_v22 = vld [vmem:[%s4852_s0] sm:$0xff]  ;;  %572 = vmatprep.subr.mxu0 %v297_v17  ;;  %v246_v39 = vld [vmem:[#allocation2 + $0x190] sm:$0xff] }
  0x9f   :  { %437 = vmatpush1.msra.mxu1 %v244_v10  ;;  %573 = vmatpush1.msra.mxu0 %v296_v19  ;;  %v280_v26 = vld [vmem:[#allocation2 + $0x2a0] sm:$0xff]  ;;  %v265_v28 = vld [vmem:[#allocation2 + $0x228] sm:$0xff]  ;;  %v231_v41 = vld [vmem:[#allocation2 + $0x118] sm:$0xff] }
  0xa0   :  { %438 = vmatprep.subr.mxu1 %v229_v11  ;;  %574 = vmatprep.subr.mxu0 %v281_v21  ;;  %v264_v30 = vld [vmem:[#allocation2 + $0x220] sm:$0xff]  ;;  %v249_v32 = vld [vmem:[#allocation2 + $0x1a8] sm:$0xff]  ;;  %v230_v43 = vld [vmem:[#allocation2 + $0x110] sm:$0xff] }
  0xa1   :  { %439 = vmatpush1.msra.mxu1 %v228_v12  ;;  %575 = vmatpush1.msra.mxu0 %v280_v26  ;;  %v248_v34 = vld [vmem:[#allocation2 + $0x1a0] sm:$0xff]  ;;  %v233_v36 = vld [vmem:[#allocation2 + $0x128] sm:$0xff]  ;;  %v215_v45 = vld [vmem:[#allocation2 + $0x98] sm:$0xff] }
  0xa2   :  { %440 = vmatprep.subr.mxu1 %v213_v13  ;;  %576 = vmatprep.subr.mxu0 %v265_v28  ;;  %v232_v38 = vld [vmem:[#allocation2 + $0x120] sm:$0xff]  ;;  %v217_v40 = vld [vmem:[#allocation2 + $0xa8] sm:$0xff]  ;;  %v214_v47 = vld [vmem:[#allocation2 + $0x90] sm:$0xff] }
  0xa3   :  { %441 = vmatpush1.msra.mxu1 %v212_v14  ;;  %577 = vmatpush1.msra.mxu0 %v264_v30  ;;  %v216_v42 = vld [vmem:[#allocation2 + $0xa0] sm:$0xff]  ;;  %v201_v44 = vld [vmem:[#allocation2 + $0x28] sm:$0xff]  ;;  %v199_v48 = vld [vmem:[#allocation2 + $0x18] sm:$0xff] }
  0xa4   :  { %442 = vmatprep.subr.mxu1 %v197_v18  ;;  %578 = vmatprep.subr.mxu0 %v249_v32  ;;  %v200_v46 = vld [vmem:[#allocation2 + $0x20] sm:$0xff]  ;;  %v317_v49 = vld [vmem:[#allocation2 + $0x3c8] sm:$0xff]  ;;  %v198_v50 = vld [vmem:[#allocation2 + $0x10] sm:$0xff] }
  0xa5   :  { %443 = vmatpush1.msra.mxu1 %v196_v20  ;;  %579 = vmatpush1.msra.mxu0 %v248_v34  ;;  %v316_v51 = vld [vmem:[#allocation2 + $0x3c0] sm:$0xff]  ;;  %v315_v52 = vld [vmem:[#allocation2 + $0x3b8] sm:$0xff]  ;;  %v314_v53 = vld [vmem:[#allocation2 + $0x3b0] sm:$0xff] }
  0xa6   :  { %4030 = vmatmul.mubr.msk.f32.vlgmr.msra.gmra.mxu1 %vm408_vm0, %v4598_v22  ;;  %499 = vmatprep.subr.mxu1 %v311_v23  ;;  %v299_v54 = vld [vmem:[#allocation2 + $0x338] sm:$0xff]  ;;  %v301_v55 = vld [vmem:[#allocation2 + $0x348] sm:$0xff]  ;;  %v298_v56 = vld [vmem:[#allocation2 + $0x330] sm:$0xff] }
  0xa7   :  { %500 = vmatpush1.msra.mxu1 %v310_v24  ;;  %547 = vmatprep.mubr.f32.mxu1 %v4473_v0  ;;  %v300_v57 = vld [vmem:[#allocation2 + $0x340] sm:$0xff]  ;;  %v283_v58 = vld [vmem:[#allocation2 + $0x2b8] sm:$0xff]  ;;  %v285_v59 = vld [vmem:[#allocation2 + $0x2c8] sm:$0xff] }
  0xa8   :  { %501 = vmatprep.subr.mxu1 %v295_v25  ;;  %580 = vmatprep.subr.mxu0 %v233_v36  ;;  %v282_v60 = vld [vmem:[#allocation2 + $0x2b0] sm:$0xff]  ;;  %v284_v61 = vld [vmem:[#allocation2 + $0x2c0] sm:$0xff]  ;;  %v267_v62 = vld [vmem:[#allocation2 + $0x238] sm:$0xff] }
  0xa9   :  { %502 = vmatpush1.msra.mxu1 %v294_v27  ;;  %581 = vmatpush1.msra.mxu0 %v232_v38  ;;  %v269_v63 = vld [vmem:[#allocation2 + $0x248] sm:$0xff]  ;;  %v266_v1 = vld [vmem:[#allocation2 + $0x230] sm:$0xff]  ;;  %v268_v2 = vld [vmem:[#allocation2 + $0x240] sm:$0xff] }
  0xaa   :  { %503 = vmatprep.subr.mxu1 %v279_v29  ;;  %582 = vmatprep.subr.mxu0 %v217_v40  ;;  %v251_v3 = vld [vmem:[#allocation2 + $0x1b8] sm:$0xff]  ;;  %v253_v4 = vld [vmem:[#allocation2 + $0x1c8] sm:$0xff]  ;;  %v250_v5 = vld [vmem:[#allocation2 + $0x1b0] sm:$0xff] }
  0xab   :  { %504 = vmatpush1.msra.mxu1 %v278_v31  ;;  %583 = vmatpush1.msra.mxu0 %v216_v42  ;;  %v252_v6 = vld [vmem:[#allocation2 + $0x1c0] sm:$0xff]  ;;  %v235_v7 = vld [vmem:[#allocation2 + $0x138] sm:$0xff]  ;;  %v237_v8 = vld [vmem:[#allocation2 + $0x148] sm:$0xff] }
  0xac   :  { %505 = vmatprep.subr.mxu1 %v263_v33  ;;  %584 = vmatprep.subr.mxu0 %v201_v44  ;;  %v234_v9 = vld [vmem:[#allocation2 + $0x130] sm:$0xff]  ;;  %v236_v10 = vld [vmem:[#allocation2 + $0x140] sm:$0xff]  ;;  %v219_v11 = vld [vmem:[#allocation2 + $0xb8] sm:$0xff] }
  0xad   :  { %506 = vmatpush1.msra.mxu1 %v262_v35  ;;  %585 = vmatpush1.msra.mxu0 %v200_v46  ;;  %v221_v12 = vld [vmem:[#allocation2 + $0xc8] sm:$0xff]  ;;  %v218_v13 = vld [vmem:[#allocation2 + $0xb0] sm:$0xff]  ;;  %v220_v14 = vld [vmem:[#allocation2 + $0xc0] sm:$0xff] }
  0xae   :  { %507 = vmatprep.subr.mxu1 %v247_v37  ;;  %4032 = vmatmul.mubr.msk.f32.vlgmr.msra.gmra.mxu0 %vm408_vm0, %v4598_v22  ;;  %v203_v15 = vld [vmem:[#allocation2 + $0x38] sm:$0xff]  ;;  %v205_v16 = vld [vmem:[#allocation2 + $0x48] sm:$0xff]  ;;  %v202_v17 = vld [vmem:[#allocation2 + $0x30] sm:$0xff] }
  0xaf   :  { %508 = vmatpush1.msra.mxu1 %v246_v39  ;;  %712 = vmatprep.subr.mxu0 %v317_v49  ;;  %v204_v18 = vld [vmem:[#allocation2 + $0x40] sm:$0xff]  ;;  %v319_v19 = vld [vmem:[#allocation2 + $0x3d8] sm:$0xff]  ;;  %v318_v20 = vld [vmem:[#allocation2 + $0x3d0] sm:$0xff] }
  0xb0   :  { %509 = vmatprep.subr.mxu1 %v231_v41  ;;  %713 = vmatpush1.msra.mxu0 %v316_v51  ;;  %v321_v21 = vld [vmem:[#allocation2 + $0x3e8] sm:$0xff]  ;;  %v303_v23 = vld [vmem:[#allocation2 + $0x358] sm:$0xff]  ;;  %v320_v24 = vld [vmem:[#allocation2 + $0x3e0] sm:$0xff] }
  0xb1   :  { %510 = vmatpush1.msra.mxu1 %v230_v43  ;;  %714 = vmatprep.subr.mxu0 %v301_v55  ;;  %v302_v25 = vld [vmem:[#allocation2 + $0x350] sm:$0xff]  ;;  %v305_v26 = vld [vmem:[#allocation2 + $0x368] sm:$0xff]  ;;  %v287_v27 = vld [vmem:[#allocation2 + $0x2d8] sm:$0xff] }
  0xb2   :  { %511 = vmatprep.subr.mxu1 %v215_v45  ;;  %715 = vmatpush1.msra.mxu0 %v300_v57  ;;  %v304_v28 = vld [vmem:[#allocation2 + $0x360] sm:$0xff]  ;;  %v286_v29 = vld [vmem:[#allocation2 + $0x2d0] sm:$0xff]  ;;  %v289_v30 = vld [vmem:[#allocation2 + $0x2e8] sm:$0xff] }
  0xb3   :  { %512 = vmatpush1.msra.mxu1 %v214_v47  ;;  %716 = vmatprep.subr.mxu0 %v285_v59  ;;  %v271_v31 = vld [vmem:[#allocation2 + $0x258] sm:$0xff]  ;;  %v288_v32 = vld [vmem:[#allocation2 + $0x2e0] sm:$0xff]  ;;  %v270_v33 = vld [vmem:[#allocation2 + $0x250] sm:$0xff] }
  0xb4   :  { %513 = vmatprep.subr.mxu1 %v199_v48  ;;  %717 = vmatpush1.msra.mxu0 %v284_v61  ;;  %v273_v34 = vld [vmem:[#allocation2 + $0x268] sm:$0xff]  ;;  %v255_v35 = vld [vmem:[#allocation2 + $0x1d8] sm:$0xff]  ;;  %v272_v36 = vld [vmem:[#allocation2 + $0x260] sm:$0xff] }
  0xb5   :  { %514 = vmatpush1.msra.mxu1 %v198_v50  ;;  %718 = vmatprep.subr.mxu0 %v269_v63  ;;  %v254_v37 = vld [vmem:[#allocation2 + $0x1d0] sm:$0xff]  ;;  %v257_v38 = vld [vmem:[#allocation2 + $0x1e8] sm:$0xff]  ;;  %v239_v39 = vld [vmem:[#allocation2 + $0x158] sm:$0xff] }
  0xb6   :  { %4031 = vmatmul.mubr.msk.f32.vlgmr.msra.gmra.mxu1 %vm408_vm0, %v4598_v22  ;;  %641 = vmatprep.subr.mxu1 %v315_v52  ;;  %v256_v40 = vld [vmem:[#allocation2 + $0x1e0] sm:$0xff]  ;;  %v238_v41 = vld [vmem:[#allocation2 + $0x150] sm:$0xff]  ;;  %v241_v42 = vld [vmem:[#allocation2 + $0x168] sm:$0xff] }
  0xb7   :  { %642 = vmatpush1.msra.mxu1 %v314_v53  ;;  %689 = vmatprep.mubr.f32.mxu1 %v4473_v0  ;;  %v223_v43 = vld [vmem:[#allocation2 + $0xd8] sm:$0xff]  ;;  %v240_v44 = vld [vmem:[#allocation2 + $0x160] sm:$0xff]  ;;  %v222_v45 = vld [vmem:[#allocation2 + $0xd0] sm:$0xff] }
  0xb8   :  { %643 = vmatprep.subr.mxu1 %v299_v54  ;;  %719 = vmatpush1.msra.mxu0 %v268_v2  ;;  %v225_v46 = vld [vmem:[#allocation2 + $0xe8] sm:$0xff]  ;;  %v207_v47 = vld [vmem:[#allocation2 + $0x58] sm:$0xff]  ;;  %v224_v48 = vld [vmem:[#allocation2 + $0xe0] sm:$0xff] }
  0xb9   :  { %644 = vmatpush1.msra.mxu1 %v298_v56  ;;  %720 = vmatprep.subr.mxu0 %v253_v4  ;;  %v206_v49 = vld [vmem:[#allocation2 + $0x50] sm:$0xff]  ;;  %v209_v50 = vld [vmem:[#allocation2 + $0x68] sm:$0xff]  ;;  %v208_v51 = vld [vmem:[#allocation2 + $0x60] sm:$0xff] }
  0xba   :  { %645 = vmatprep.subr.mxu1 %v283_v58  ;;  %721 = vmatpush1.msra.mxu0 %v252_v6  ;;  %v323_v52 = vld [vmem:[#allocation2 + $0x3f8] sm:$0xff]  ;;  %v322_v53 = vld [vmem:[#allocation2 + $0x3f0] sm:$0xff] }
  0xbb   :  { %646 = vmatpush1.msra.mxu1 %v282_v60  ;;  %722 = vmatprep.subr.mxu0 %v237_v8  ;;  %v1057_v54 = vld [vmem:[#allocation6 + $0x1e8] sm:$0xff]  ;;  %v1056_v56 = vld [vmem:[#allocation6 + $0x1e0] sm:$0xff] }
  0xbc   :  { %647 = vmatprep.subr.mxu1 %v267_v62  ;;  %723 = vmatpush1.msra.mxu0 %v236_v10  ;;  %v307_v55 = vld [vmem:[#allocation2 + $0x378] sm:$0xff]  ;;  %v306_v57 = vld [vmem:[#allocation2 + $0x370] sm:$0xff] }
  0xbd   :  { %648 = vmatpush1.msra.mxu1 %v266_v1  ;;  %724 = vmatprep.subr.mxu0 %v221_v12  ;;  %v1053_v58 = vld [vmem:[#allocation6 + $0x1c8] sm:$0xff]  ;;  %v1052_v60 = vld [vmem:[#allocation6 + $0x1c0] sm:$0xff] }
  0xbe   :  { %649 = vmatprep.subr.mxu1 %v251_v3  ;;  %725 = vmatpush1.msra.mxu0 %v220_v14  ;;  %v291_v59 = vld [vmem:[#allocation2 + $0x2f8] sm:$0xff]  ;;  %v290_v61 = vld [vmem:[#allocation2 + $0x2f0] sm:$0xff] }
  0xbf   :  { %650 = vmatpush1.msra.mxu1 %v250_v5  ;;  %726 = vmatprep.subr.mxu0 %v205_v16  ;;  %v1049_v62 = vld [vmem:[#allocation6 + $0x1a8] sm:$0xff]  ;;  %v1048_v1 = vld [vmem:[#allocation6 + $0x1a0] sm:$0xff] }
  0xc0   :  { %651 = vmatprep.subr.mxu1 %v235_v7  ;;  %727 = vmatpush1.msra.mxu0 %v204_v18  ;;  %v275_v63 = vld [vmem:[#allocation2 + $0x278] sm:$0xff]  ;;  %v274_v2 = vld [vmem:[#allocation2 + $0x270] sm:$0xff] }
  0xc1   :  { %652 = vmatpush1.msra.mxu1 %v234_v9  ;;  %760 = vmatprep.mubr.f32.mxu0 %v4473_v0  ;;  %v1045_v3 = vld [vmem:[#allocation6 + $0x188] sm:$0xff]  ;;  %v1044_v5 = vld [vmem:[#allocation6 + $0x180] sm:$0xff] }
  0xc2   :  { %653 = vmatprep.subr.mxu1 %v219_v11  ;;  %854 = vmatprep.subr.mxu0 %v321_v21  ;;  %v259_v4 = vld [vmem:[#allocation2 + $0x1f8] sm:$0xff]  ;;  %v258_v6 = vld [vmem:[#allocation2 + $0x1f0] sm:$0xff] }
  0xc3   :  { %654 = vmatpush1.msra.mxu1 %v218_v13  ;;  %4034 = vmatmul.mubr.msk.f32.vlgmr.msra.gmra.mxu0 %vm408_vm0, %v4598_v22  ;;  %v1041_v7 = vld [vmem:[#allocation6 + $0x168] sm:$0xff]  ;;  %v1040_v9 = vld [vmem:[#allocation6 + $0x160] sm:$0xff] }
  0xc4   :  { %655 = vmatprep.subr.mxu1 %v203_v15  ;;  %855 = vmatpush1.msra.mxu0 %v320_v24  ;;  %v243_v8 = vld [vmem:[#allocation2 + $0x178] sm:$0xff]  ;;  %v242_v10 = vld [vmem:[#allocation2 + $0x170] sm:$0xff] }
  0xc5   :  { %656 = vmatpush1.msra.mxu1 %v202_v17  ;;  %856 = vmatprep.subr.mxu0 %v305_v26  ;;  %v1037_v11 = vld [vmem:[#allocation6 + $0x148] sm:$0xff]  ;;  %v1036_v13 = vld [vmem:[#allocation6 + $0x140] sm:$0xff] }
  0xc6   :  { %4033 = vmatmul.mubr.msk.f32.vlgmr.msra.gmra.mxu1 %vm408_vm0, %v4598_v22  ;;  %783 = vmatprep.subr.mxu1 %v319_v19  ;;  %v227_v12 = vld [vmem:[#allocation2 + $0xf8] sm:$0xff]  ;;  %v226_v14 = vld [vmem:[#allocation2 + $0xf0] sm:$0xff] }
  0xc7   :  { %784 = vmatpush1.msra.mxu1 %v318_v20  ;;  %857 = vmatpush1.msra.mxu0 %v304_v28  ;;  %v1033_v15 = vld [vmem:[#allocation6 + $0x128] sm:$0xff]  ;;  %v1032_v17 = vld [vmem:[#allocation6 + $0x120] sm:$0xff] }
  0xc8   :  { %785 = vmatprep.subr.mxu1 %v303_v23  ;;  %858 = vmatprep.subr.mxu0 %v289_v30  ;;  %v211_v16 = vld [vmem:[#allocation2 + $0x78] sm:$0xff]  ;;  %v210_v18 = vld [vmem:[#allocation2 + $0x70] sm:$0xff] }
  0xc9   :  { %786 = vmatpush1.msra.mxu1 %v302_v25  ;;  %859 = vmatpush1.msra.mxu0 %v288_v32  ;;  %v1029_v19 = vld [vmem:[#allocation6 + $0x108] sm:$0xff]  ;;  %v1028_v20 = vld [vmem:[#allocation6 + $0x100] sm:$0xff] }
  0xca   :  { %787 = vmatprep.subr.mxu1 %v287_v27  ;;  %860 = vmatprep.subr.mxu0 %v273_v34  ;;  %v1185_v21 = vld [vmem:[#allocation6 + $0x5e8] sm:$0xff]  ;;  %v1184_v24 = vld [vmem:[#allocation6 + $0x5e0] sm:$0xff] }
  0xcb   :  { %788 = vmatpush1.msra.mxu1 %v286_v29  ;;  %861 = vmatpush1.msra.mxu0 %v272_v36  ;;  %v1025_v23 = vld [vmem:[#allocation6 + $0xe8] sm:$0xff]  ;;  %v1024_v25 = vld [vmem:[#allocation6 + $0xe0] sm:$0xff] }
  0xcc   :  { %789 = vmatprep.subr.mxu1 %v271_v31  ;;  %862 = vmatprep.subr.mxu0 %v257_v38  ;;  %v1181_v26 = vld [vmem:[#allocation6 + $0x5c8] sm:$0xff]  ;;  %v1180_v28 = vld [vmem:[#allocation6 + $0x5c0] sm:$0xff] }
  0xcd   :  { %790 = vmatpush1.msra.mxu1 %v270_v33  ;;  %863 = vmatpush1.msra.mxu0 %v256_v40  ;;  %v1021_v27 = vld [vmem:[#allocation6 + $0xc8] sm:$0xff]  ;;  %v1020_v29 = vld [vmem:[#allocation6 + $0xc0] sm:$0xff] }
  0xce   :  { %791 = vmatprep.subr.mxu1 %v255_v35  ;;  %864 = vmatprep.subr.mxu0 %v241_v42  ;;  %v1177_v30 = vld [vmem:[#allocation6 + $0x5a8] sm:$0xff]  ;;  %v1176_v32 = vld [vmem:[#allocation6 + $0x5a0] sm:$0xff] }
  0xcf   :  { %792 = vmatpush1.msra.mxu1 %v254_v37  ;;  %865 = vmatpush1.msra.mxu0 %v240_v44  ;;  %v1017_v31 = vld [vmem:[#allocation6 + $0xa8] sm:$0xff]  ;;  %v1016_v33 = vld [vmem:[#allocation6 + $0xa0] sm:$0xff] }
  0xd0   :  { %793 = vmatprep.subr.mxu1 %v239_v39  ;;  %866 = vmatprep.subr.mxu0 %v225_v46  ;;  %v1173_v34 = vld [vmem:[#allocation6 + $0x588] sm:$0xff]  ;;  %v1172_v35 = vld [vmem:[#allocation6 + $0x580] sm:$0xff] }
  0xd1   :  { %794 = vmatpush1.msra.mxu1 %v238_v41  ;;  %867 = vmatpush1.msra.mxu0 %v224_v48  ;;  %v1012_v36 = vld [vmem:[#allocation6 + $0x80] sm:$0xff]  ;;  %v1169_v37 = vld [vmem:[#allocation6 + $0x568] sm:$0xff] }
  0xd2   :  { %795 = vmatprep.subr.mxu1 %v223_v43  ;;  %831 = vmatprep.mubr.f32.mxu1 %v4473_v0  ;;  %v1009_v38 = vld [vmem:[#allocation6 + $0x68] sm:$0xff]  ;;  %v1168_v39 = vld [vmem:[#allocation6 + $0x560] sm:$0xff] }
  0xd3   :  { %796 = vmatpush1.msra.mxu1 %v222_v45  ;;  %868 = vmatprep.subr.mxu0 %v209_v50  ;;  %v1008_v40 = vld [vmem:[#allocation6 + $0x60] sm:$0xff]  ;;  %v1165_v41 = vld [vmem:[#allocation6 + $0x548] sm:$0xff] }
  0xd4   :  { %797 = vmatprep.subr.mxu1 %v207_v47  ;;  %869 = vmatpush1.msra.mxu0 %v208_v51  ;;  %v1005_v42 = vld [vmem:[#allocation6 + $0x48] sm:$0xff]  ;;  %v1164_v43 = vld [vmem:[#allocation6 + $0x540] sm:$0xff] }
  0xd5   :  { %798 = vmatpush1.msra.mxu1 %v206_v49  ;;  %902 = vmatprep.mubr.f32.mxu0 %v4473_v0  ;;  %v1004_v44 = vld [vmem:[#allocation6 + $0x40] sm:$0xff]  ;;  %v1161_v45 = vld [vmem:[#allocation6 + $0x528] sm:$0xff] }
  0xd6   :  { %4035 = vmatmul.mubr.msk.f32.vlgmr.msra.gmra.mxu1 %vm408_vm0, %v4598_v22  ;;  %925 = vmatprep.subr.mxu1 %v323_v52  ;;  %v1001_v46 = vld [vmem:[#allocation6 + $0x28] sm:$0xff]  ;;  %v1160_v47 = vld [vmem:[#allocation6 + $0x520] sm:$0xff] }
  0xd7   :  { %926 = vmatpush1.msra.mxu1 %v322_v53  ;;  %2042 = vmatprep.subr.mxu0 %v1057_v54  ;;  %v1000_v48 = vld [vmem:[#allocation6 + $0x20] sm:$0xff]  ;;  %v1157_v49 = vld [vmem:[#allocation6 + $0x508] sm:$0xff] }
  0xd8   :  { %4036 = vmatmul.mubr.msk.f32.vlgmr.msra.gmra.mxu0 %vm408_vm0, %v4598_v22  ;;  %927 = vmatprep.subr.mxu1 %v307_v55  ;;  %v997_v50 = vld [vmem:[#allocation6 + $0x8] sm:$0xff]  ;;  %v1156_v51 = vld [vmem:[#allocation6 + $0x500] sm:$0xff] }
  0xd9   :  { %2043 = vmatpush1.msra.mxu0 %v1056_v56  ;;  %928 = vmatpush1.msra.mxu1 %v306_v57  ;;  %v996_v52 = vld [vmem:[#allocation6] sm:$0xff]  ;;  %v1153_v53 = vld [vmem:[#allocation6 + $0x4e8] sm:$0xff] }
  0xda   :  { %2044 = vmatprep.subr.mxu0 %v1053_v58  ;;  %929 = vmatprep.subr.mxu1 %v291_v59  ;;  %v1121_v54 = vld [vmem:[#allocation6 + $0x3e8] sm:$0xff]  ;;  %v1152_v55 = vld [vmem:[#allocation6 + $0x4e0] sm:$0xff] }
  0xdb   :  { %2045 = vmatpush1.msra.mxu0 %v1052_v60  ;;  %930 = vmatpush1.msra.mxu1 %v290_v61  ;;  %v1120_v56 = vld [vmem:[#allocation6 + $0x3e0] sm:$0xff]  ;;  %v1149_v57 = vld [vmem:[#allocation6 + $0x4c8] sm:$0xff] }
  0xdc   :  { %2046 = vmatprep.subr.mxu0 %v1049_v62  ;;  %931 = vmatprep.subr.mxu1 %v275_v63  ;;  %v1117_v58 = vld [vmem:[#allocation6 + $0x3c8] sm:$0xff]  ;;  %v1148_v59 = vld [vmem:[#allocation6 + $0x4c0] sm:$0xff] }
  0xdd   :  { %2047 = vmatpush1.msra.mxu0 %v1048_v1  ;;  %932 = vmatpush1.msra.mxu1 %v274_v2  ;;  %v1116_v60 = vld [vmem:[#allocation6 + $0x3c0] sm:$0xff]  ;;  %v1145_v61 = vld [vmem:[#allocation6 + $0x4a8] sm:$0xff] }
  0xde   :  { %2048 = vmatprep.subr.mxu0 %v1045_v3  ;;  %933 = vmatprep.subr.mxu1 %v259_v4  ;;  %v1113_v62 = vld [vmem:[#allocation6 + $0x3a8] sm:$0xff]  ;;  %v1144_v63 = vld [vmem:[#allocation6 + $0x4a0] sm:$0xff] }
  0xdf   :  { %2049 = vmatpush1.msra.mxu0 %v1044_v5  ;;  %934 = vmatpush1.msra.mxu1 %v258_v6  ;;  %v1112_v1 = vld [vmem:[#allocation6 + $0x3a0] sm:$0xff]  ;;  %v1141_v2 = vld [vmem:[#allocation6 + $0x488] sm:$0xff] }
  0xe0   :  { %2050 = vmatprep.subr.mxu0 %v1041_v7  ;;  %935 = vmatprep.subr.mxu1 %v243_v8  ;;  %v1109_v3 = vld [vmem:[#allocation6 + $0x388] sm:$0xff]  ;;  %v1140_v4 = vld [vmem:[#allocation6 + $0x480] sm:$0xff] }
  0xe1   :  { %2051 = vmatpush1.msra.mxu0 %v1040_v9  ;;  %936 = vmatpush1.msra.mxu1 %v242_v10  ;;  %v1108_v5 = vld [vmem:[#allocation6 + $0x380] sm:$0xff]  ;;  %v1137_v6 = vld [vmem:[#allocation6 + $0x468] sm:$0xff] }
  0xe2   :  { %2052 = vmatprep.subr.mxu0 %v1037_v11  ;;  %937 = vmatprep.subr.mxu1 %v227_v12  ;;  %v1105_v7 = vld [vmem:[#allocation6 + $0x368] sm:$0xff]  ;;  %v1136_v8 = vld [vmem:[#allocation6 + $0x460] sm:$0xff] }
  0xe3   :  { %2053 = vmatpush1.msra.mxu0 %v1036_v13  ;;  %938 = vmatpush1.msra.mxu1 %v226_v14  ;;  %v1104_v9 = vld [vmem:[#allocation6 + $0x360] sm:$0xff]  ;;  %v1133_v10 = vld [vmem:[#allocation6 + $0x448] sm:$0xff] }
  0xe4   :  { %2054 = vmatprep.subr.mxu0 %v1033_v15  ;;  %939 = vmatprep.subr.mxu1 %v211_v16  ;;  %v1101_v11 = vld [vmem:[#allocation6 + $0x348] sm:$0xff]  ;;  %v1132_v12 = vld [vmem:[#allocation6 + $0x440] sm:$0xff] }
  0xe5   :  { %2055 = vmatpush1.msra.mxu0 %v1032_v17  ;;  %940 = vmatpush1.msra.mxu1 %v210_v18  ;;  %v1100_v13 = vld [vmem:[#allocation6 + $0x340] sm:$0xff]  ;;  %v1129_v14 = vld [vmem:[#allocation6 + $0x428] sm:$0xff] }
  0xe6   :  { %973 = vmatprep.mubr.f32.mxu1 %v4473_v0  ;;  %2056 = vmatprep.subr.mxu0 %v1029_v19  ;;  %v1097_v15 = vld [vmem:[#allocation6 + $0x328] sm:$0xff]  ;;  %v1128_v16 = vld [vmem:[#allocation6 + $0x420] sm:$0xff] }
  0xe7   :  { %4037 = vmatmul.mubr.msk.f32.vlgmr.msra.gmra.mxu1 %vm408_vm0, %v4598_v22  ;;  %2057 = vmatpush1.msra.mxu0 %v1028_v20  ;;  %v1013_v22 = vld [vmem:[#allocation6 + $0x88] sm:$0xff]  ;;  %v1096_v17 = vld [vmem:[#allocation6 + $0x320] sm:$0xff] }
  0xe8   :  { %2113 = vmatprep.subr.mxu1 %v1185_v21  ;;  %2058 = vmatprep.subr.mxu0 %v1025_v23  ;;  %v1125_v18 = vld [vmem:[#allocation6 + $0x408] sm:$0xff]  ;;  %v1124_v20 = vld [vmem:[#allocation6 + $0x400] sm:$0xff] }
  0xe9   :  { %2114 = vmatpush1.msra.mxu1 %v1184_v24  ;;  %2059 = vmatpush1.msra.mxu0 %v1024_v25  ;;  %v1093_v19 = vld [vmem:[#allocation6 + $0x308] sm:$0xff]  ;;  %v1092_v21 = vld [vmem:[#allocation6 + $0x300] sm:$0xff] }
  0xea   :  { %2115 = vmatprep.subr.mxu1 %v1181_v26  ;;  %2060 = vmatprep.subr.mxu0 %v1021_v27  ;;  %v1249_v23 = vld [vmem:[#allocation6 + $0x7e8] sm:$0xff]  ;;  %v1248_v25 = vld [vmem:[#allocation6 + $0x7e0] sm:$0xff] }
  0xeb   :  { %2116 = vmatpush1.msra.mxu1 %v1180_v28  ;;  %2061 = vmatpush1.msra.mxu0 %v1020_v29  ;;  %v1089_v24 = vld [vmem:[#allocation6 + $0x2e8] sm:$0xff]  ;;  %v1088_v26 = vld [vmem:[#allocation6 + $0x2e0] sm:$0xff] }
  0xec   :  { %2117 = vmatprep.subr.mxu1 %v1177_v30  ;;  %2062 = vmatprep.subr.mxu0 %v1017_v31  ;;  %v1245_v27 = vld [vmem:[#allocation6 + $0x7c8] sm:$0xff]  ;;  %v1244_v29 = vld [vmem:[#allocation6 + $0x7c0] sm:$0xff] }
  0xed   :  { %2118 = vmatpush1.msra.mxu1 %v1176_v32  ;;  %2063 = vmatpush1.msra.mxu0 %v1016_v33  ;;  %v1085_v28 = vld [vmem:[#allocation6 + $0x2c8] sm:$0xff]  ;;  %v1084_v30 = vld [vmem:[#allocation6 + $0x2c0] sm:$0xff] }
  0xee   :  { %2119 = vmatprep.subr.mxu1 %v1173_v34  ;;  %2064 = vmatprep.subr.mxu0 %v1013_v22  ;;  %v1241_v31 = vld [vmem:[#allocation6 + $0x7a8] sm:$0xff]  ;;  %v1240_v33 = vld [vmem:[#allocation6 + $0x7a0] sm:$0xff] }
  0xef   :  { %2120 = vmatpush1.msra.mxu1 %v1172_v35  ;;  %2065 = vmatpush1.msra.mxu0 %v1012_v36  ;;  %v1081_v32 = vld [vmem:[#allocation6 + $0x2a8] sm:$0xff]  ;;  %v1080_v34 = vld [vmem:[#allocation6 + $0x2a0] sm:$0xff] }
  0xf0   :  { %2121 = vmatprep.subr.mxu1 %v1169_v37  ;;  %2066 = vmatprep.subr.mxu0 %v1009_v38  ;;  %v1237_v22 = vld [vmem:[#allocation6 + $0x788] sm:$0xff]  ;;  %v1236_v36 = vld [vmem:[#allocation6 + $0x780] sm:$0xff] }
  0xf1   :  { %2122 = vmatpush1.msra.mxu1 %v1168_v39  ;;  %2067 = vmatpush1.msra.mxu0 %v1008_v40  ;;  %v1077_v35 = vld [vmem:[#allocation6 + $0x288] sm:$0xff]  ;;  %v1076_v37 = vld [vmem:[#allocation6 + $0x280] sm:$0xff] }
  0xf2   :  { %2123 = vmatprep.subr.mxu1 %v1165_v41  ;;  %2068 = vmatprep.subr.mxu0 %v1005_v42  ;;  %v1233_v38 = vld [vmem:[#allocation6 + $0x768] sm:$0xff]  ;;  %v1232_v40 = vld [vmem:[#allocation6 + $0x760] sm:$0xff] }
  0xf3   :  { %2124 = vmatpush1.msra.mxu1 %v1164_v43  ;;  %2069 = vmatpush1.msra.mxu0 %v1004_v44  ;;  %v1073_v39 = vld [vmem:[#allocation6 + $0x268] sm:$0xff]  ;;  %v1072_v41 = vld [vmem:[#allocation6 + $0x260] sm:$0xff] }
  0xf4   :  { %2125 = vmatprep.subr.mxu1 %v1161_v45  ;;  %2070 = vmatprep.subr.mxu0 %v1001_v46  ;;  %v1229_v42 = vld [vmem:[#allocation6 + $0x748] sm:$0xff]  ;;  %v1228_v44 = vld [vmem:[#allocation6 + $0x740] sm:$0xff] }
  0xf5   :  { %2126 = vmatpush1.msra.mxu1 %v1160_v47  ;;  %2071 = vmatpush1.msra.mxu0 %v1000_v48  ;;  %v1069_v43 = vld [vmem:[#allocation6 + $0x248] sm:$0xff]  ;;  %v1068_v45 = vld [vmem:[#allocation6 + $0x240] sm:$0xff] }
  0xf6   :  { %2127 = vmatprep.subr.mxu1 %v1157_v49  ;;  %2072 = vmatprep.subr.mxu0 %v997_v50  ;;  %v1225_v46 = vld [vmem:[#allocation6 + $0x728] sm:$0xff]  ;;  %v1224_v48 = vld [vmem:[#allocation6 + $0x720] sm:$0xff] }
  0xf7   :  { %2128 = vmatpush1.msra.mxu1 %v1156_v51  ;;  %2073 = vmatpush1.msra.mxu0 %v996_v52  ;;  %v1065_v47 = vld [vmem:[#allocation6 + $0x228] sm:$0xff]  ;;  %v1064_v49 = vld [vmem:[#allocation6 + $0x220] sm:$0xff] }
  0xf8   :  { %2129 = vmatprep.subr.mxu1 %v1153_v53  ;;  %2074 = vmatprep.subr.mxu0 %v1121_v54  ;;  %v1221_v50 = vld [vmem:[#allocation6 + $0x708] sm:$0xff]  ;;  %v1220_v52 = vld [vmem:[#allocation6 + $0x700] sm:$0xff] }
  0xf9   :  { %2130 = vmatpush1.msra.mxu1 %v1152_v55  ;;  %2075 = vmatpush2.msra.mxu0 %v1120_v56  ;;  %v1061_v51 = vld [vmem:[#allocation6 + $0x208] sm:$0xff]  ;;  %v1060_v53 = vld [vmem:[#allocation6 + $0x200] sm:$0xff] }
  0xfa   :  { %2131 = vmatprep.subr.mxu1 %v1149_v57  ;;  %2076 = vmatprep.subr.mxu0 %v1117_v58  ;;  %v1217_v54 = vld [vmem:[#allocation6 + $0x6e8] sm:$0xff]  ;;  %v1216_v56 = vld [vmem:[#allocation6 + $0x6e0] sm:$0xff] }
  0xfb   :  { %2132 = vmatpush1.msra.mxu1 %v1148_v59  ;;  %2077 = vmatpush2.msra.mxu0 %v1116_v60  ;;  %v1313_v55 = vld [vmem:[#allocation6 + $0x9e8] sm:$0xff]  ;;  %v1212_v58 = vld [vmem:[#allocation6 + $0x6c0] sm:$0xff] }
  0xfc   :  { %2133 = vmatprep.subr.mxu1 %v1145_v61  ;;  %2078 = vmatprep.subr.mxu0 %v1113_v62  ;;  %v1213_v57 = vld [vmem:[#allocation6 + $0x6c8] sm:$0xff]  ;;  %v1208_v60 = vld [vmem:[#allocation6 + $0x6a0] sm:$0xff] }
  0xfd   :  { %2134 = vmatpush1.msra.mxu1 %v1144_v63  ;;  %2079 = vmatpush2.msra.mxu0 %v1112_v1  ;;  %v1209_v59 = vld [vmem:[#allocation6 + $0x6a8] sm:$0xff]  ;;  %v1204_v62 = vld [vmem:[#allocation6 + $0x680] sm:$0xff] }
  0xfe   :  { %2135 = vmatprep.subr.mxu1 %v1141_v2  ;;  %2080 = vmatprep.subr.mxu0 %v1109_v3  ;;  %v1205_v61 = vld [vmem:[#allocation6 + $0x688] sm:$0xff]  ;;  %v1200_v1 = vld [vmem:[#allocation6 + $0x660] sm:$0xff] }
  0xff   :  { %2136 = vmatpush1.msra.mxu1 %v1140_v4  ;;  %2081 = vmatpush2.msra.mxu0 %v1108_v5  ;;  %v1201_v63 = vld [vmem:[#allocation6 + $0x668] sm:$0xff]  ;;  %v1196_v3 = vld [vmem:[#allocation6 + $0x640] sm:$0xff] }
 0x100   :  { %2137 = vmatprep.subr.mxu1 %v1137_v6  ;;  %2082 = vmatprep.subr.mxu0 %v1105_v7  ;;  %v1197_v2 = vld [vmem:[#allocation6 + $0x648] sm:$0xff]  ;;  %v1192_v5 = vld [vmem:[#allocation6 + $0x620] sm:$0xff] }
 0x101   :  { %2138 = vmatpush1.msra.mxu1 %v1136_v8  ;;  %2083 = vmatpush2.msra.mxu0 %v1104_v9  ;;  %v1193_v4 = vld [vmem:[#allocation6 + $0x628] sm:$0xff]  ;;  %v1188_v7 = vld [vmem:[#allocation6 + $0x600] sm:$0xff]  ;;  %v328_v9 = vlaneseq }
 0x102   :  { %2139 = vmatprep.subr.mxu1 %v1133_v10  ;;  %2084 = vmatprep.subr.mxu0 %v1101_v11  ;;  %v1189_v6 = vld [vmem:[#allocation6 + $0x608] sm:$0xff] }
 0x103   :  { %2140 = vmatpush1.msra.mxu1 %v1132_v12  ;;  %2085 = vmatpush2.msra.mxu0 %v1100_v13  ;;  %v1441_v8 = vld [vmem:[#allocation6 + $0xde8] sm:$0xff]  ;;  %v4622_v10 = vshrl.u32 %v328_v9, 7  ;;  %v4627_v12 = vld [vmem:[#allocation4] sm:$0xff] }
 0x104   :  { %2141 = vmatprep.subr.mxu1 %v1129_v14  ;;  %2086 = vmatprep.subr.mxu0 %v1097_v15  ;;  %v1261_v9 = vld [vmem:[#allocation6 + $0x848] sm:$0xff] }
 0x105   :  { %2142 = vmatpush1.msra.mxu1 %v1128_v16  ;;  %2087 = vmatpush2.msra.mxu0 %v1096_v17  ;;  %v4625_v11 = vsub.s32 0, %v4622_v10  ;;  %v4630_v13 = vsub.s32 1, %v4622_v10 }
 0x106   :  { %2143 = vmatprep.subr.mxu1 %v1125_v18  ;;  %2088 = vmatprep.subr.mxu0 %v1093_v19 }
 0x107   :  { %2144 = vmatpush1.msra.mxu1 %v1124_v20  ;;  %2089 = vmatpush2.msra.mxu0 %v1092_v21  ;;  %v331_v14 = vrot.slane %v4627_v12, %v4625_v11  ;;  %v335_v15 = vrot.slane %v4627_v12, %v4630_v13 }
 0x108   :  { %2145 = vmatprep.subr.mxu1 %v1249_v23  ;;  %2090 = vmatprep.subr.mxu0 %v1089_v24  ;;  %v1312_v23 = vld [vmem:[#allocation6 + $0x9e0] sm:$0xff]  ;;  %v1309_v24 = vld [vmem:[#allocation6 + $0x9c8] sm:$0xff] }
 0x109   :  { %2146 = vmatpush2.msra.mxu1 %v1248_v25  ;;  %2091 = vmatpush2.msra.mxu0 %v1088_v26  ;;  %v1308_v25 = vld [vmem:[#allocation6 + $0x9c0] sm:$0xff]  ;;  %v350_v26 = vsub.s32 5, %v4622_v10 }
 0x10a   :  { %2147 = vmatprep.subr.mxu1 %v1245_v27  ;;  %2092 = vmatprep.subr.mxu0 %v1085_v28  ;;  %v1305_v27 = vld [vmem:[#allocation6 + $0x9a8] sm:$0xff]  ;;  %v1304_v28 = vld [vmem:[#allocation6 + $0x9a0] sm:$0xff] }
 0x10b   :  { %2148 = vmatpush2.msra.mxu1 %v1244_v29  ;;  %2093 = vmatpush2.msra.mxu0 %v1084_v30  ;;  %v4648_v29 = vsub.s32 2, %v4622_v10  ;;  %v1301_v30 = vld [vmem:[#allocation6 + $0x988] sm:$0xff] }
 0x10c   :  { %2149 = vmatprep.subr.mxu1 %v1241_v31  ;;  %2094 = vmatprep.subr.mxu0 %v1081_v32  ;;  %v4651_v31 = vsub.s32 3, %v4622_v10  ;;  %v1300_v32 = vld [vmem:[#allocation6 + $0x980] sm:$0xff] }
 0x10d   :  { %2150 = vmatpush2.msra.mxu1 %v1240_v33  ;;  %2095 = vmatpush2.msra.mxu0 %v1080_v34  ;;  %v351_v33 = vrot.slane %v4627_v12, %v350_v26  ;;  %v1297_v34 = vld [vmem:[#allocation6 + $0x968] sm:$0xff] }
 0x10e   :  { %2151 = vmatprep.subr.mxu1 %v1237_v22  ;;  %2096 = vmatprep.subr.mxu0 %v1077_v35  ;;  %v339_v35 = vrot.slane %v4627_v12, %v4648_v29 }
 0x10f   :  { %2152 = vmatpush2.msra.mxu1 %v1236_v36  ;;  %2097 = vmatpush2.msra.mxu0 %v1076_v37  ;;  %v1296_v36 = vld [vmem:[#allocation6 + $0x960] sm:$0xff]  ;;  %v1293_v37 = vld [vmem:[#allocation6 + $0x948] sm:$0xff] }
 0x110   :  { %2153 = vmatprep.subr.mxu1 %v1233_v38  ;;  %2098 = vmatprep.subr.mxu0 %v1073_v39  ;;  %v343_v38 = vrot.slane %v4627_v12, %v4651_v31 }
 0x111   :  { %2154 = vmatpush2.msra.mxu1 %v1232_v40  ;;  %2099 = vmatpush2.msra.mxu0 %v1072_v41  ;;  %v1292_v41 = vld [vmem:[#allocation6 + $0x940] sm:$0xff] }
 0x112   :  { %2155 = vmatprep.subr.mxu1 %v1229_v42  ;;  %2100 = vmatprep.subr.mxu0 %v1069_v43  ;;  %v1289_v43 = vld [vmem:[#allocation6 + $0x928] sm:$0xff] }
 0x113   :  { %2156 = vmatpush2.msra.mxu1 %v1228_v44  ;;  %2101 = vmatpush2.msra.mxu0 %v1068_v45 }
 0x114   :  { %2157 = vmatprep.subr.mxu1 %v1225_v46  ;;  %2102 = vmatprep.subr.mxu0 %v1065_v47  ;;  %v1288_v46 = vld [vmem:[#allocation6 + $0x920] sm:$0xff] }
 0x115   :  { %2158 = vmatpush2.msra.mxu1 %v1224_v48  ;;  %2103 = vmatpush2.msra.mxu0 %v1064_v49  ;;  %v1285_v49 = vld [vmem:[#allocation6 + $0x908] sm:$0xff] }
 0x116   :  { %2159 = vmatprep.subr.mxu1 %v1221_v50  ;;  %2104 = vmatprep.subr.mxu0 %v1061_v51  ;;  %v1284_v50 = vld [vmem:[#allocation6 + $0x900] sm:$0xff] }
 0x117   :  { %2160 = vmatpush2.msra.mxu1 %v1220_v52  ;;  %2105 = vmatpush2.msra.mxu0 %v1060_v53  ;;  %v1281_v52 = vld [vmem:[#allocation6 + $0x8e8] sm:$0xff] }
 0x118   :  { %2161 = vmatprep.subr.mxu1 %v1217_v54  ;;  %2184 = vmatprep.subr.mxu0 %v1313_v55  ;;  %v1280_v54 = vld [vmem:[#allocation6 + $0x8e0] sm:$0xff] }
 0x119   :  { %2162 = vmatpush2.msra.mxu1 %v1216_v56  ;;  %v1440_v55 = vld [vmem:[#allocation6 + $0xde0] sm:$0xff]  ;;  %v1277_v56 = vld [vmem:[#allocation6 + $0x8c8] sm:$0xff] }
 0x11a   :  { %2163 = vmatprep.subr.mxu1 %v1213_v57  ;;  %v1437_v57 = vld [vmem:[#allocation6 + $0xdc8] sm:$0xff] }
 0x11b   :  { %2164 = vmatpush2.msra.mxu1 %v1212_v58  ;;  %v1276_v58 = vld [vmem:[#allocation6 + $0x8c0] sm:$0xff] }
 0x11c   :  { %2165 = vmatprep.subr.mxu1 %v1209_v59  ;;  %v1436_v59 = vld [vmem:[#allocation6 + $0xdc0] sm:$0xff] }
 0x11d   :  { %2166 = vmatpush2.msra.mxu1 %v1208_v60  ;;  %v1273_v60 = vld [vmem:[#allocation6 + $0x8a8] sm:$0xff] }
 0x11e   :  { %2167 = vmatprep.subr.mxu1 %v1205_v61  ;;  %v1433_v61 = vld [vmem:[#allocation6 + $0xda8] sm:$0xff] }
 0x11f   :  { %2168 = vmatpush2.msra.mxu1 %v1204_v62  ;;  %v1272_v62 = vld [vmem:[#allocation6 + $0x8a0] sm:$0xff] }
 0x120   :  { %2169 = vmatprep.subr.mxu1 %v1201_v63  ;;  %v1432_v63 = vld [vmem:[#allocation6 + $0xda0] sm:$0xff] }
 0x121   :  { %2170 = vmatpush2.msra.mxu1 %v1200_v1  ;;  %v1269_v1 = vld [vmem:[#allocation6 + $0x888] sm:$0xff] }
 0x122   :  { %2171 = vmatprep.subr.mxu1 %v1197_v2  ;;  %v1429_v2 = vld [vmem:[#allocation6 + $0xd88] sm:$0xff] }
 0x123   :  { %2172 = vmatpush2.msra.mxu1 %v1196_v3  ;;  %v1268_v3 = vld [vmem:[#allocation6 + $0x880] sm:$0xff] }
 0x124   :  { %2173 = vmatprep.subr.mxu1 %v1193_v4  ;;  %v1428_v4 = vld [vmem:[#allocation6 + $0xd80] sm:$0xff] }
 0x125   :  { %2174 = vmatpush2.msra.mxu1 %v1192_v5  ;;  %v1265_v5 = vld [vmem:[#allocation6 + $0x868] sm:$0xff] }
 0x126   :  { %2175 = vmatprep.subr.mxu1 %v1189_v6  ;;  %v1425_v6 = vld [vmem:[#allocation6 + $0xd68] sm:$0xff] }
 0x127   :  { %2176 = vmatpush2.msra.mxu1 %v1188_v7  ;;  %v1264_v7 = vld [vmem:[#allocation6 + $0x860] sm:$0xff] }
 0x128   :  { %2255 = vmatprep.subr.mxu1 %v1441_v8  ;;  %v1424_v8 = vld [vmem:[#allocation6 + $0xd60] sm:$0xff] }
 0x166   :  { %v478_v16 = vpop.f32.mrf.mxu1 }
 0x167   :  { %v4636_v17 = vadd.f32 %v478_v16, %v331_v14  ;;  %v1421_v14 = vld [vmem:[#allocation6 + $0xd48] sm:$0xff]  ;;  %v1420_v16 = vld [vmem:[#allocation6 + $0xd40] sm:$0xff] }
 0x168   :  { %v480_v18 = vpop.f32.mrf.mxu1 }
 0x169   :  { %v4638_v19 = vadd.f32 %v480_v18, %v335_v15  ;;  %v980_v21 = vmax.f32 %v4636_v17, 0.0  ;;  %v1260_v15 = vld [vmem:[#allocation6 + $0x840] sm:$0xff]  ;;  %v1257_v18 = vld [vmem:[#allocation6 + $0x828] sm:$0xff]  ;;  %v1207_v17 = vld [vmem:[#allocation6 + $0x698] sm:$0xff] }
 0x16b   :  { %v981_v20 = vmax.f32 %v4638_v19, 0.0 }
 0x16d   :  { %2106 = vmatprep.mubr.f32.mxu0 %v981_v20 }
 0x16e   :  { %2107 = vmatmul.mubr.f32.vlgmr.msra.gmra.mxu0 %v980_v21  ;;  %v4656_v22 = vpop.f32.mrf.mxu0 }
 0x16f   :  { %2185 = vmatpush1.msra.mxu0 %v1312_v23  ;;  %v1417_v23 = vld [vmem:[#allocation6 + $0xd28] sm:$0xff] }
 0x170   :  { %2186 = vmatprep.subr.mxu0 %v1309_v24  ;;  %v622_v39 = vpop.f32.mrf.mxu0  ;;  %v1256_v24 = vld [vmem:[#allocation6 + $0x820] sm:$0xff] }
 0x171   :  { %2187 = vmatpush1.msra.mxu0 %v1308_v25  ;;  %v4662_v42 = vadd.f32 %v622_v39, %v351_v33  ;;  %v1416_v25 = vld [vmem:[#allocation6 + $0xd20] sm:$0xff]  ;;  %v1377_v33 = vld [vmem:[#allocation6 + $0xbe8] sm:$0xff] }
 0x172   :  { %2188 = vmatprep.subr.mxu0 %v1305_v27  ;;  %v1253_v27 = vld [vmem:[#allocation6 + $0x808] sm:$0xff]  ;;  %v1372_v39 = vld [vmem:[#allocation6 + $0xbc0] sm:$0xff] }
 0x173   :  { %2189 = vmatpush1.msra.mxu0 %v1304_v28  ;;  %v985_v47 = vmax.f32 %v4662_v42, 0.0  ;;  %v1413_v28 = vld [vmem:[#allocation6 + $0xd08] sm:$0xff]  ;;  %v1202_v42 = vld [vmem:[#allocation6 + $0x670] sm:$0xff] }
 0x174   :  { %2190 = vmatprep.subr.mxu0 %v1301_v30  ;;  %v1252_v30 = vld [vmem:[#allocation6 + $0x800] sm:$0xff] }
 0x175   :  { %2191 = vmatpush1.msra.mxu0 %v1300_v32  ;;  %2248 = vmatprep.mubr.f32.mxu0 %v985_v47  ;;  %v1412_v32 = vld [vmem:[#allocation6 + $0xd00] sm:$0xff] }
 0x176   :  { %2192 = vmatprep.subr.mxu0 %v1297_v34  ;;  %v549_v40 = vpop.f32.mrf.mxu1  ;;  %v1409_v34 = vld [vmem:[#allocation6 + $0xce8] sm:$0xff] }
 0x177   :  { %2193 = vmatpush1.msra.mxu0 %v1296_v36  ;;  %v4664_v44 = vadd.f32 %v549_v40, %v339_v35  ;;  %v1376_v35 = vld [vmem:[#allocation6 + $0xbe0] sm:$0xff] }
 0x178   :  { %2194 = vmatprep.subr.mxu0 %v1293_v37  ;;  %v551_v45 = vpop.f32.mrf.mxu1  ;;  %v1408_v36 = vld [vmem:[#allocation6 + $0xce0] sm:$0xff]  ;;  %v1373_v37 = vld [vmem:[#allocation6 + $0xbc8] sm:$0xff] }
 0x179   :  { %v4667_v48 = vadd.f32 %v551_v45, %v343_v38  ;;  %2195 = vmatpush1.msra.mxu0 %v1292_v41  ;;  %v982_v53 = vmax.f32 %v4664_v44, 0.0  ;;  %v1405_v38 = vld [vmem:[#allocation6 + $0xcc8] sm:$0xff]  ;;  %v1404_v40 = vld [vmem:[#allocation6 + $0xcc0] sm:$0xff]  ;;  %v1271_v44 = vld [vmem:[#allocation6 + $0x898] sm:$0xff] }
 0x17a   :  { %2196 = vmatprep.subr.mxu0 %v1289_v43  ;;  %v1369_v41 = vld [vmem:[#allocation6 + $0xba8] sm:$0xff]  ;;  %v1368_v45 = vld [vmem:[#allocation6 + $0xba0] sm:$0xff] }
 0x17b   :  { %v983_v51 = vmax.f32 %v4667_v48, 0.0  ;;  %2197 = vmatpush1.msra.mxu0 %v1288_v46  ;;  %v1401_v43 = vld [vmem:[#allocation6 + $0xca8] sm:$0xff]  ;;  %v1400_v46 = vld [vmem:[#allocation6 + $0xca0] sm:$0xff]  ;;  %v1010_v48 = vld [vmem:[#allocation6 + $0x70] sm:$0xff] }
 0x17c   :  { %2198 = vmatprep.subr.mxu0 %v1285_v49  ;;  %v1365_v49 = vld [vmem:[#allocation6 + $0xb88] sm:$0xff] }
 0x17d   :  { %2199 = vmatpush1.msra.mxu0 %v1284_v50  ;;  %2177 = vmatprep.mubr.f32.mxu1 %v983_v51  ;;  %v1397_v50 = vld [vmem:[#allocation6 + $0xc88] sm:$0xff] }
 0x17e   :  { %2200 = vmatprep.subr.mxu0 %v1281_v52  ;;  %2178 = vmatmul.mubr.f32.vlgmr.msra.gmra.mxu1 %v982_v53  ;;  %v1364_v52 = vld [vmem:[#allocation6 + $0xb80] sm:$0xff] }
 0x17f   :  { %2201 = vmatpush1.msra.mxu0 %v1280_v54  ;;  %2256 = vmatpush1.msra.mxu1 %v1440_v55  ;;  %v1396_v54 = vld [vmem:[#allocation6 + $0xc80] sm:$0xff]  ;;  %v1361_v55 = vld [vmem:[#allocation6 + $0xb68] sm:$0xff] }
 0x180   :  { %2202 = vmatprep.subr.mxu0 %v1277_v56  ;;  %2257 = vmatprep.subr.mxu1 %v1437_v57  ;;  %v1393_v56 = vld [vmem:[#allocation6 + $0xc68] sm:$0xff]  ;;  %v1360_v57 = vld [vmem:[#allocation6 + $0xb60] sm:$0xff] }
 0x181   :  { %2203 = vmatpush1.msra.mxu0 %v1276_v58  ;;  %2258 = vmatpush1.msra.mxu1 %v1436_v59  ;;  %v1392_v58 = vld [vmem:[#allocation6 + $0xc60] sm:$0xff]  ;;  %v1357_v59 = vld [vmem:[#allocation6 + $0xb48] sm:$0xff] }
 0x182   :  { %2204 = vmatprep.subr.mxu0 %v1273_v60  ;;  %2259 = vmatprep.subr.mxu1 %v1433_v61  ;;  %v1389_v60 = vld [vmem:[#allocation6 + $0xc48] sm:$0xff]  ;;  %v1356_v61 = vld [vmem:[#allocation6 + $0xb40] sm:$0xff] }
 0x183   :  { %2205 = vmatpush1.msra.mxu0 %v1272_v62  ;;  %2260 = vmatpush1.msra.mxu1 %v1432_v63  ;;  %v1388_v62 = vld [vmem:[#allocation6 + $0xc40] sm:$0xff]  ;;  %v1353_v63 = vld [vmem:[#allocation6 + $0xb28] sm:$0xff] }
 0x184   :  { %2206 = vmatprep.subr.mxu0 %v1269_v1  ;;  %2261 = vmatprep.subr.mxu1 %v1429_v2  ;;  %v1385_v1 = vld [vmem:[#allocation6 + $0xc28] sm:$0xff]  ;;  %v1352_v2 = vld [vmem:[#allocation6 + $0xb20] sm:$0xff] }
 0x185   :  { %2207 = vmatpush1.msra.mxu0 %v1268_v3  ;;  %2262 = vmatpush1.msra.mxu1 %v1428_v4  ;;  %v1384_v3 = vld [vmem:[#allocation6 + $0xc20] sm:$0xff]  ;;  %v1349_v4 = vld [vmem:[#allocation6 + $0xb08] sm:$0xff] }
 0x186   :  { %2208 = vmatprep.subr.mxu0 %v1265_v5  ;;  %2263 = vmatprep.subr.mxu1 %v1425_v6  ;;  %v1381_v5 = vld [vmem:[#allocation6 + $0xc08] sm:$0xff]  ;;  %v1348_v6 = vld [vmem:[#allocation6 + $0xb00] sm:$0xff] }
 0x187   :  { %2209 = vmatpush1.msra.mxu0 %v1264_v7  ;;  %2264 = vmatpush1.msra.mxu1 %v1424_v8  ;;  %v1380_v7 = vld [vmem:[#allocation6 + $0xc00] sm:$0xff]  ;;  %v1345_v8 = vld [vmem:[#allocation6 + $0xae8] sm:$0xff] }
 0x188   :  { %2210 = vmatprep.subr.mxu0 %v1261_v9  ;;  %2265 = vmatprep.subr.mxu1 %v1421_v14  ;;  %v1505_v9 = vld [vmem:[#allocation6 + $0xfe8] sm:$0xff]  ;;  %v1344_v14 = vld [vmem:[#allocation6 + $0xae0] sm:$0xff] }
 0x189   :  { %2211 = vmatpush1.msra.mxu0 %v1260_v15  ;;  %2266 = vmatpush1.msra.mxu1 %v1420_v16  ;;  %v1504_v15 = vld [vmem:[#allocation6 + $0xfe0] sm:$0xff]  ;;  %v1341_v16 = vld [vmem:[#allocation6 + $0xac8] sm:$0xff] }
 0x18a   :  { %2212 = vmatprep.subr.mxu0 %v1257_v18  ;;  %2267 = vmatprep.subr.mxu1 %v1417_v23  ;;  %v1501_v18 = vld [vmem:[#allocation6 + $0xfc8] sm:$0xff]  ;;  %v1340_v23 = vld [vmem:[#allocation6 + $0xac0] sm:$0xff] }
 0x18b   :  { %2213 = vmatpush1.msra.mxu0 %v1256_v24  ;;  %2268 = vmatpush1.msra.mxu1 %v1416_v25  ;;  %v1500_v24 = vld [vmem:[#allocation6 + $0xfc0] sm:$0xff]  ;;  %v346_v25 = vsub.s32 4, %v4622_v10 }
 0x18c   :  { %2214 = vmatprep.subr.mxu0 %v1253_v27  ;;  %2269 = vmatprep.subr.mxu1 %v1413_v28  ;;  %v1337_v27 = vld [vmem:[#allocation6 + $0xaa8] sm:$0xff] }
 0x18d   :  { %2215 = vmatpush1.msra.mxu0 %v1252_v30  ;;  %2270 = vmatpush1.msra.mxu1 %v1412_v32  ;;  %v1497_v28 = vld [vmem:[#allocation6 + $0xfa8] sm:$0xff]  ;;  %v1336_v30 = vld [vmem:[#allocation6 + $0xaa0] sm:$0xff] }
 0x18e   :  { %2216 = vmatprep.subr.mxu0 %v1377_v33  ;;  %2271 = vmatprep.subr.mxu1 %v1409_v34  ;;  %v1496_v32 = vld [vmem:[#allocation6 + $0xfa0] sm:$0xff]  ;;  %v1333_v33 = vld [vmem:[#allocation6 + $0xa88] sm:$0xff] }
 0x18f   :  { %2217 = vmatpush2.msra.mxu0 %v1376_v35  ;;  %2272 = vmatpush1.msra.mxu1 %v1408_v36  ;;  %v1493_v34 = vld [vmem:[#allocation6 + $0xf88] sm:$0xff]  ;;  %v1332_v35 = vld [vmem:[#allocation6 + $0xa80] sm:$0xff] }
 0x190   :  { %2218 = vmatprep.subr.mxu0 %v1373_v37  ;;  %2273 = vmatprep.subr.mxu1 %v1405_v38  ;;  %v1492_v36 = vld [vmem:[#allocation6 + $0xf80] sm:$0xff]  ;;  %v347_v37 = vrot.slane %v4627_v12, %v346_v25  ;;  %v1329_v38 = vld [vmem:[#allocation6 + $0xa68] sm:$0xff] }
 0x191   :  { %2219 = vmatpush2.msra.mxu0 %v1372_v39  ;;  %2274 = vmatpush1.msra.mxu1 %v1404_v40  ;;  %v1489_v39 = vld [vmem:[#allocation6 + $0xf68] sm:$0xff]  ;;  %v1328_v40 = vld [vmem:[#allocation6 + $0xa60] sm:$0xff] }
 0x192   :  { %2220 = vmatprep.subr.mxu0 %v1369_v41  ;;  %2275 = vmatprep.subr.mxu1 %v1401_v43  ;;  %v1488_v41 = vld [vmem:[#allocation6 + $0xf60] sm:$0xff]  ;;  %v1325_v43 = vld [vmem:[#allocation6 + $0xa48] sm:$0xff] }
 0x193   :  { %2221 = vmatpush2.msra.mxu0 %v1368_v45  ;;  %2276 = vmatpush1.msra.mxu1 %v1400_v46  ;;  %v1485_v45 = vld [vmem:[#allocation6 + $0xf48] sm:$0xff]  ;;  %v4682_v46 = vadd.f32 %v4656_v22, %v347_v37  ;;  %v1316_v22 = vld [vmem:[#allocation6 + $0xa00] sm:$0xff] }
 0x194   :  { %2222 = vmatprep.subr.mxu0 %v1365_v49  ;;  %2277 = vmatprep.subr.mxu1 %v1397_v50  ;;  %v1324_v49 = vld [vmem:[#allocation6 + $0xa40] sm:$0xff] }
 0x195   :  { %2223 = vmatpush2.msra.mxu0 %v1364_v52  ;;  %2278 = vmatpush1.msra.mxu1 %v1396_v54  ;;  %v1484_v50 = vld [vmem:[#allocation6 + $0xf40] sm:$0xff]  ;;  %v1321_v52 = vld [vmem:[#allocation6 + $0xa28] sm:$0xff] }
 0x196   :  { %2224 = vmatprep.subr.mxu0 %v1361_v55  ;;  %2279 = vmatprep.subr.mxu1 %v1393_v56  ;;  %v1481_v54 = vld [vmem:[#allocation6 + $0xf28] sm:$0xff]  ;;  %v1320_v55 = vld [vmem:[#allocation6 + $0xa20] sm:$0xff] }
 0x197   :  { %2225 = vmatpush2.msra.mxu0 %v1360_v57  ;;  %2280 = vmatpush1.msra.mxu1 %v1392_v58  ;;  %v1480_v56 = vld [vmem:[#allocation6 + $0xf20] sm:$0xff]  ;;  %v1317_v57 = vld [vmem:[#allocation6 + $0xa08] sm:$0xff] }
 0x198   :  { %2226 = vmatprep.subr.mxu0 %v1357_v59  ;;  %2281 = vmatprep.subr.mxu1 %v1389_v60  ;;  %v1477_v58 = vld [vmem:[#allocation6 + $0xf08] sm:$0xff]  ;;  %v984_v59 = vmax.f32 %v4682_v46, 0.0  ;;  %v1476_v60 = vld [vmem:[#allocation6 + $0xf00] sm:$0xff]  ;;  %v1463_v46 = vld [vmem:[#allocation6 + $0xe98] sm:$0xff] }
 0x199   :  { %2227 = vmatpush2.msra.mxu0 %v1356_v61  ;;  %2282 = vmatpush1.msra.mxu1 %v1388_v62  ;;  %v1473_v61 = vld [vmem:[#allocation6 + $0xee8] sm:$0xff]  ;;  %v1552_v37 = vld [vmem:[#allocation6 + $0x1160] sm:$0xff] }
 0x19a   :  { %2228 = vmatprep.subr.mxu0 %v1353_v63  ;;  %2283 = vmatprep.subr.mxu1 %v1385_v1  ;;  %v1569_v62 = vld [vmem:[#allocation6 + $0x11e8] sm:$0xff]  ;;  %v1472_v63 = vld [vmem:[#allocation6 + $0xee0] sm:$0xff] }
 0x19b   :  { %2229 = vmatpush2.msra.mxu0 %v1352_v2  ;;  %2284 = vmatpush1.msra.mxu1 %v1384_v3  ;;  %v1568_v1 = vld [vmem:[#allocation6 + $0x11e0] sm:$0xff]  ;;  %v1469_v2 = vld [vmem:[#allocation6 + $0xec8] sm:$0xff]  ;;  %v358_v3 = vsub.s32 7, %v4622_v10 }
 0x19c   :  { %2230 = vmatprep.subr.mxu0 %v1349_v4  ;;  %2285 = vmatprep.subr.mxu1 %v1381_v5  ;;  %v1565_v4 = vld [vmem:[#allocation6 + $0x11c8] sm:$0xff]  ;;  %v1468_v5 = vld [vmem:[#allocation6 + $0xec0] sm:$0xff] }
 0x19d   :  { %2231 = vmatpush2.msra.mxu0 %v1348_v6  ;;  %2286 = vmatpush1.msra.mxu1 %v1380_v7  ;;  %v691_v6 = vpop.f32.mrf.mxu1  ;;  %v1564_v7 = vld [vmem:[#allocation6 + $0x11c0] sm:$0xff] }
 0x19e   :  { %2232 = vmatprep.subr.mxu0 %v1345_v8  ;;  %2287 = vmatprep.subr.mxu1 %v1505_v9  ;;  %v1465_v8 = vld [vmem:[#allocation6 + $0xea8] sm:$0xff] }
 0x19f   :  { %2233 = vmatpush2.msra.mxu0 %v1344_v14  ;;  %2288 = vmatpush2.msra.mxu1 %v1504_v15  ;;  %v1561_v9 = vld [vmem:[#allocation6 + $0x11a8] sm:$0xff]  ;;  %v1464_v14 = vld [vmem:[#allocation6 + $0xea0] sm:$0xff] }
 0x1a0   :  { %2234 = vmatprep.subr.mxu0 %v1341_v16  ;;  %2289 = vmatprep.subr.mxu1 %v1501_v18  ;;  %v1560_v15 = vld [vmem:[#allocation6 + $0x11a0] sm:$0xff]  ;;  %v1461_v16 = vld [vmem:[#allocation6 + $0xe88] sm:$0xff]  ;;  %v354_v18 = vsub.s32 6, %v4622_v10 }
 0x1a1   :  { %2235 = vmatpush2.msra.mxu0 %v1340_v23  ;;  %2290 = vmatpush2.msra.mxu1 %v1500_v24  ;;  %v359_v23 = vrot.slane %v4627_v12, %v358_v3  ;;  %v1557_v24 = vld [vmem:[#allocation6 + $0x1188] sm:$0xff] }
 0x1a2   :  { %2236 = vmatprep.subr.mxu0 %v1337_v27  ;;  %2291 = vmatprep.subr.mxu1 %v1497_v28  ;;  %v1460_v27 = vld [vmem:[#allocation6 + $0xe80] sm:$0xff]  ;;  %v693_v28 = vpop.f32.mrf.mxu1 }
 0x1a3   :  { %2237 = vmatpush2.msra.mxu0 %v1336_v30  ;;  %2292 = vmatpush2.msra.mxu1 %v1496_v32  ;;  %v1556_v30 = vld [vmem:[#allocation6 + $0x1180] sm:$0xff]  ;;  %v1457_v32 = vld [vmem:[#allocation6 + $0xe68] sm:$0xff] }
 0x1a4   :  { %2238 = vmatprep.subr.mxu0 %v1333_v33  ;;  %2293 = vmatprep.subr.mxu1 %v1493_v34  ;;  %v1553_v33 = vld [vmem:[#allocation6 + $0x1168] sm:$0xff]  ;;  %v1456_v34 = vld [vmem:[#allocation6 + $0xe60] sm:$0xff] }
 0x1a5   :  { %2239 = vmatpush2.msra.mxu0 %v1332_v35  ;;  %2294 = vmatpush2.msra.mxu1 %v1492_v36  ;;  %v355_v35 = vrot.slane %v4627_v12, %v354_v18  ;;  %v4695_v36 = vadd.f32 %v693_v28, %v359_v23  ;;  %v1521_v23 = vld [vmem:[#allocation6 + $0x1068] sm:$0xff]  ;;  %v1680_v28 = vld [vmem:[#allocation6 + $0x1560] sm:$0xff] }
 0x1a6   :  { %2240 = vmatprep.subr.mxu0 %v1329_v38  ;;  %2295 = vmatprep.subr.mxu1 %v1489_v39  ;;  %v1453_v38 = vld [vmem:[#allocation6 + $0xe48] sm:$0xff] }
 0x1a7   :  { %2241 = vmatpush2.msra.mxu0 %v1328_v40  ;;  %2296 = vmatpush2.msra.mxu1 %v1488_v41  ;;  %v1549_v39 = vld [vmem:[#allocation6 + $0x1148] sm:$0xff]  ;;  %v1452_v40 = vld [vmem:[#allocation6 + $0xe40] sm:$0xff]  ;;  %v987_v12 = vmax.f32 %v4695_v36, 0.0  ;;  %v1266_v36 = vld [vmem:[#allocation6 + $0x870] sm:$0xff] }
 0x1a8   :  { %2242 = vmatprep.subr.mxu0 %v1325_v43  ;;  %2297 = vmatprep.subr.mxu1 %v1485_v45  ;;  %v1548_v41 = vld [vmem:[#allocation6 + $0x1140] sm:$0xff]  ;;  %v1449_v43 = vld [vmem:[#allocation6 + $0xe28] sm:$0xff] }
 0x1a9   :  { %2243 = vmatpush2.msra.mxu0 %v1324_v49  ;;  %2298 = vmatpush2.msra.mxu1 %v1484_v50  ;;  %v1545_v45 = vld [vmem:[#allocation6 + $0x1128] sm:$0xff]  ;;  %v1448_v49 = vld [vmem:[#allocation6 + $0xe20] sm:$0xff]  ;;  %v4697_v50 = vadd.f32 %v691_v6, %v355_v35 }
 0x1aa   :  { %2244 = vmatprep.subr.mxu0 %v1321_v52  ;;  %2299 = vmatprep.subr.mxu1 %v1481_v54  ;;  %v1544_v52 = vld [vmem:[#allocation6 + $0x1120] sm:$0xff]  ;;  %v1445_v54 = vld [vmem:[#allocation6 + $0xe08] sm:$0xff] }
 0x1ab   :  { %2245 = vmatpush2.msra.mxu0 %v1320_v55  ;;  %2300 = vmatpush2.msra.mxu1 %v1480_v56  ;;  %v1541_v55 = vld [vmem:[#allocation6 + $0x1108] sm:$0xff]  ;;  %v1444_v56 = vld [vmem:[#allocation6 + $0xe00] sm:$0xff] }
 0x1ac   :  { %2246 = vmatprep.subr.mxu0 %v1317_v57  ;;  %2301 = vmatprep.subr.mxu1 %v1477_v58  ;;  %v1540_v57 = vld [vmem:[#allocation6 + $0x1100] sm:$0xff]  ;;  %v1537_v58 = vld [vmem:[#allocation6 + $0x10e8] sm:$0xff] }
 0x1ad   :  { %2247 = vmatpush2.msra.mxu0 %v1316_v22  ;;  %2302 = vmatpush2.msra.mxu1 %v1476_v60  ;;  %v986_v22 = vmax.f32 %v4697_v50, 0.0  ;;  %v1697_v60 = vld [vmem:[#allocation6 + $0x15e8] sm:$0xff]  ;;  %v1527_v50 = vld [vmem:[#allocation6 + $0x1098] sm:$0xff] }
 0x1ae   :  { %2249 = vmatmul.mubr.f32.vlgmr.msra.gmra.mxu0 %v984_v59  ;;  %2303 = vmatprep.subr.mxu1 %v1473_v61  ;;  %v1536_v61 = vld [vmem:[#allocation6 + $0x10e0] sm:$0xff]  ;;  %v1689_v6 = vld [vmem:[#allocation6 + $0x15a8] sm:$0xff] }
 0x1af   :  { %2326 = vmatprep.subr.mxu0 %v1569_v62  ;;  %2304 = vmatpush2.msra.mxu1 %v1472_v63  ;;  %v1696_v62 = vld [vmem:[#allocation6 + $0x15e0] sm:$0xff]  ;;  %v1533_v63 = vld [vmem:[#allocation6 + $0x10c8] sm:$0xff] }
 0x1b0   :  { %2327 = vmatpush1.msra.mxu0 %v1568_v1  ;;  %2305 = vmatprep.subr.mxu1 %v1469_v2  ;;  %v1693_v1 = vld [vmem:[#allocation6 + $0x15c8] sm:$0xff]  ;;  %v1532_v2 = vld [vmem:[#allocation6 + $0x10c0] sm:$0xff] }
 0x1b1   :  { %2328 = vmatprep.subr.mxu0 %v1565_v4  ;;  %2306 = vmatpush2.msra.mxu1 %v1468_v5  ;;  %v1692_v4 = vld [vmem:[#allocation6 + $0x15c0] sm:$0xff]  ;;  %v1529_v5 = vld [vmem:[#allocation6 + $0x10a8] sm:$0xff] }
 0x1b2   :  { %2329 = vmatpush1.msra.mxu0 %v1564_v7  ;;  %2307 = vmatprep.subr.mxu1 %v1465_v8  ;;  %v1528_v7 = vld [vmem:[#allocation6 + $0x10a0] sm:$0xff]  ;;  %v1513_v35 = vld [vmem:[#allocation6 + $0x1028] sm:$0xff] }
 0x1b3   :  { %2330 = vmatprep.subr.mxu0 %v1561_v9  ;;  %2308 = vmatpush2.msra.mxu1 %v1464_v14  ;;  %v1688_v8 = vld [vmem:[#allocation6 + $0x15a0] sm:$0xff]  ;;  %v1525_v9 = vld [vmem:[#allocation6 + $0x1088] sm:$0xff] }
 0x1b4   :  { %2331 = vmatpush1.msra.mxu0 %v1560_v15  ;;  %2309 = vmatprep.subr.mxu1 %v1461_v16  ;;  %v1685_v14 = vld [vmem:[#allocation6 + $0x1588] sm:$0xff]  ;;  %v1524_v15 = vld [vmem:[#allocation6 + $0x1080] sm:$0xff] }
 0x1b5   :  { %2332 = vmatprep.subr.mxu0 %v1557_v24  ;;  %2310 = vmatpush2.msra.mxu1 %v1460_v27  ;;  %v1684_v16 = vld [vmem:[#allocation6 + $0x1580] sm:$0xff]  ;;  %v1681_v24 = vld [vmem:[#allocation6 + $0x1568] sm:$0xff] }
 0x1b6   :  { %2333 = vmatpush1.msra.mxu0 %v1556_v30  ;;  %2311 = vmatprep.subr.mxu1 %v1457_v32  ;;  %v1520_v27 = vld [vmem:[#allocation6 + $0x1060] sm:$0xff]  ;;  %v1517_v30 = vld [vmem:[#allocation6 + $0x1048] sm:$0xff] }
 0x1b7   :  { %2334 = vmatprep.subr.mxu0 %v1553_v33  ;;  %2312 = vmatpush2.msra.mxu1 %v1456_v34  ;;  %v1677_v32 = vld [vmem:[#allocation6 + $0x1548] sm:$0xff]  ;;  %v1516_v33 = vld [vmem:[#allocation6 + $0x1040] sm:$0xff] }
 0x1b8   :  { %2335 = vmatpush1.msra.mxu0 %v1552_v37  ;;  %2313 = vmatprep.subr.mxu1 %v1453_v38  ;;  %v1676_v34 = vld [vmem:[#allocation6 + $0x1540] sm:$0xff]  ;;  %v1673_v37 = vld [vmem:[#allocation6 + $0x1528] sm:$0xff] }
 0x1b9   :  { %2336 = vmatprep.subr.mxu0 %v1549_v39  ;;  %2314 = vmatpush2.msra.mxu1 %v1452_v40  ;;  %v1512_v38 = vld [vmem:[#allocation6 + $0x1020] sm:$0xff]  ;;  %v1509_v40 = vld [vmem:[#allocation6 + $0x1008] sm:$0xff] }
 0x1ba   :  { %2337 = vmatpush1.msra.mxu0 %v1548_v41  ;;  %2315 = vmatprep.subr.mxu1 %v1449_v43  ;;  %v1672_v39 = vld [vmem:[#allocation6 + $0x1520] sm:$0xff]  ;;  %v1669_v41 = vld [vmem:[#allocation6 + $0x1508] sm:$0xff] }
 0x1bb   :  { %2338 = vmatprep.subr.mxu0 %v1545_v45  ;;  %2316 = vmatpush2.msra.mxu1 %v1448_v49  ;;  %v1508_v43 = vld [vmem:[#allocation6 + $0x1000] sm:$0xff]  ;;  %v1633_v49 = vld [vmem:[#allocation6 + $0x13e8] sm:$0xff] }
 0x1bc   :  { %2339 = vmatpush1.msra.mxu0 %v1544_v52  ;;  %2317 = vmatprep.subr.mxu1 %v1445_v54  ;;  %v1668_v45 = vld [vmem:[#allocation6 + $0x1500] sm:$0xff]  ;;  %v1665_v52 = vld [vmem:[#allocation6 + $0x14e8] sm:$0xff] }
 0x1bd   :  { %2319 = vmatprep.mubr.f32.mxu1 %v987_v12  ;;  %2340 = vmatprep.subr.mxu0 %v1541_v55  ;;  %v1632_v54 = vld [vmem:[#allocation6 + $0x13e0] sm:$0xff] }
 0x1be   :  { %2318 = vmatpush2.msra.mxu1 %v1444_v56  ;;  %2341 = vmatpush1.msra.mxu0 %v1540_v57  ;;  %v1664_v55 = vld [vmem:[#allocation6 + $0x14e0] sm:$0xff]  ;;  %v1629_v56 = vld [vmem:[#allocation6 + $0x13c8] sm:$0xff] }
 0x1bf   :  { %2320 = vmatmul.mubr.f32.vlgmr.msra.gmra.mxu1 %v986_v22  ;;  %2342 = vmatprep.subr.mxu0 %v1537_v58  ;;  %v1661_v57 = vld [vmem:[#allocation6 + $0x14c8] sm:$0xff]  ;;  %v1628_v58 = vld [vmem:[#allocation6 + $0x13c0] sm:$0xff] }
 0x1c0   :  { %2397 = vmatprep.subr.mxu1 %v1697_v60  ;;  %2343 = vmatpush1.msra.mxu0 %v1536_v61  ;;  %v1660_v60 = vld [vmem:[#allocation6 + $0x14c0] sm:$0xff]  ;;  %v1625_v61 = vld [vmem:[#allocation6 + $0x13a8] sm:$0xff] }
 0x1c1   :  { %2398 = vmatpush1.msra.mxu1 %v1696_v62  ;;  %2344 = vmatprep.subr.mxu0 %v1533_v63  ;;  %v1657_v62 = vld [vmem:[#allocation6 + $0x14a8] sm:$0xff]  ;;  %v1624_v63 = vld [vmem:[#allocation6 + $0x13a0] sm:$0xff] }
 0x1c2   :  { %2399 = vmatprep.subr.mxu1 %v1693_v1  ;;  %2345 = vmatpush1.msra.mxu0 %v1532_v2  ;;  %v1656_v1 = vld [vmem:[#allocation6 + $0x14a0] sm:$0xff]  ;;  %v1621_v2 = vld [vmem:[#allocation6 + $0x1388] sm:$0xff] }
 0x1c3   :  { %2400 = vmatpush1.msra.mxu1 %v1692_v4  ;;  %2346 = vmatprep.subr.mxu0 %v1529_v5  ;;  %v1653_v4 = vld [vmem:[#allocation6 + $0x1488] sm:$0xff]  ;;  %v1620_v5 = vld [vmem:[#allocation6 + $0x1380] sm:$0xff] }
 0x1c4   :  { %2401 = vmatprep.subr.mxu1 %v1689_v6  ;;  %2347 = vmatpush1.msra.mxu0 %v1528_v7  ;;  %v1652_v6 = vld [vmem:[#allocation6 + $0x1480] sm:$0xff]  ;;  %v1617_v7 = vld [vmem:[#allocation6 + $0x1368] sm:$0xff] }
 0x1c5   :  { %2402 = vmatpush1.msra.mxu1 %v1688_v8  ;;  %2348 = vmatprep.subr.mxu0 %v1525_v9  ;;  %v1649_v8 = vld [vmem:[#allocation6 + $0x1468] sm:$0xff]  ;;  %v1616_v9 = vld [vmem:[#allocation6 + $0x1360] sm:$0xff] }
 0x1c6   :  { %2403 = vmatprep.subr.mxu1 %v1685_v14  ;;  %2349 = vmatpush1.msra.mxu0 %v1524_v15  ;;  %v1648_v14 = vld [vmem:[#allocation6 + $0x1460] sm:$0xff]  ;;  %v1613_v15 = vld [vmem:[#allocation6 + $0x1348] sm:$0xff] }
 0x1c7   :  { %2404 = vmatpush1.msra.mxu1 %v1684_v16  ;;  %2350 = vmatprep.subr.mxu0 %v1521_v23  ;;  %v1645_v16 = vld [vmem:[#allocation6 + $0x1448] sm:$0xff]  ;;  %v1612_v23 = vld [vmem:[#allocation6 + $0x1340] sm:$0xff] }
 0x1c8   :  { %2405 = vmatprep.subr.mxu1 %v1681_v24  ;;  %2351 = vmatpush1.msra.mxu0 %v1520_v27  ;;  %v1644_v24 = vld [vmem:[#allocation6 + $0x1440] sm:$0xff]  ;;  %v1609_v27 = vld [vmem:[#allocation6 + $0x1328] sm:$0xff] }
 0x1c9   :  { %2406 = vmatpush1.msra.mxu1 %v1680_v28  ;;  %2352 = vmatprep.subr.mxu0 %v1517_v30  ;;  %v1641_v28 = vld [vmem:[#allocation6 + $0x1428] sm:$0xff]  ;;  %v1608_v30 = vld [vmem:[#allocation6 + $0x1320] sm:$0xff] }
 0x1ca   :  { %2407 = vmatprep.subr.mxu1 %v1677_v32  ;;  %2353 = vmatpush1.msra.mxu0 %v1516_v33  ;;  %v1640_v32 = vld [vmem:[#allocation6 + $0x1420] sm:$0xff]  ;;  %v1605_v33 = vld [vmem:[#allocation6 + $0x1308] sm:$0xff] }
 0x1cb   :  { %2408 = vmatpush1.msra.mxu1 %v1676_v34  ;;  %2354 = vmatprep.subr.mxu0 %v1513_v35  ;;  %v1637_v34 = vld [vmem:[#allocation6 + $0x1408] sm:$0xff]  ;;  %v1604_v35 = vld [vmem:[#allocation6 + $0x1300] sm:$0xff] }
 0x1cc   :  { %2409 = vmatprep.subr.mxu1 %v1673_v37  ;;  %2355 = vmatpush1.msra.mxu0 %v1512_v38  ;;  %v1636_v37 = vld [vmem:[#allocation6 + $0x1400] sm:$0xff]  ;;  %v1601_v38 = vld [vmem:[#allocation6 + $0x12e8] sm:$0xff] }
 0x1cd   :  { %2410 = vmatpush1.msra.mxu1 %v1672_v39  ;;  %2356 = vmatprep.subr.mxu0 %v1509_v40  ;;  %v1761_v39 = vld [vmem:[#allocation6 + $0x17e8] sm:$0xff]  ;;  %v1600_v40 = vld [vmem:[#allocation6 + $0x12e0] sm:$0xff] }
 0x1ce   :  { %2411 = vmatprep.subr.mxu1 %v1669_v41  ;;  %2357 = vmatpush1.msra.mxu0 %v1508_v43  ;;  %v1760_v41 = vld [vmem:[#allocation6 + $0x17e0] sm:$0xff]  ;;  %v1597_v43 = vld [vmem:[#allocation6 + $0x12c8] sm:$0xff] }
 0x1cf   :  { %2412 = vmatpush1.msra.mxu1 %v1668_v45  ;;  %2358 = vmatprep.subr.mxu0 %v1633_v49  ;;  %v1757_v45 = vld [vmem:[#allocation6 + $0x17c8] sm:$0xff]  ;;  %v1596_v49 = vld [vmem:[#allocation6 + $0x12c0] sm:$0xff] }
 0x1d0   :  { %2413 = vmatprep.subr.mxu1 %v1665_v52  ;;  %2359 = vmatpush2.msra.mxu0 %v1632_v54  ;;  %v1756_v52 = vld [vmem:[#allocation6 + $0x17c0] sm:$0xff]  ;;  %v1593_v54 = vld [vmem:[#allocation6 + $0x12a8] sm:$0xff] }
 0x1d1   :  { %2414 = vmatpush1.msra.mxu1 %v1664_v55  ;;  %2360 = vmatprep.subr.mxu0 %v1629_v56  ;;  %v4705_v55 = vld [vmem:[#allocation4 + $0x8] sm:$0xff]  ;;  %v762_v56 = vpop.f32.mrf.mxu0 }
 0x1d2   :  { %2415 = vmatprep.subr.mxu1 %v1661_v57  ;;  %2361 = vmatpush2.msra.mxu0 %v1628_v58  ;;  %v1753_v57 = vld [vmem:[#allocation6 + $0x17a8] sm:$0xff]  ;;  %v1592_v58 = vld [vmem:[#allocation6 + $0x12a0] sm:$0xff]  ;;  %v387_v19 = vrot.slane %v4705_v55, %v354_v18  ;;  %v1035_v18 = vld [vmem:[#allocation6 + $0x138] sm:$0xff] }
 0x1d3   :  { %2416 = vmatpush1.msra.mxu1 %v1660_v60  ;;  %2362 = vmatprep.subr.mxu0 %v1625_v61  ;;  %v1752_v60 = vld [vmem:[#allocation6 + $0x17a0] sm:$0xff]  ;;  %v1589_v61 = vld [vmem:[#allocation6 + $0x1288] sm:$0xff] }
 0x1d4   :  { %2417 = vmatprep.subr.mxu1 %v1657_v62  ;;  %2363 = vmatpush2.msra.mxu0 %v1624_v63  ;;  %v1749_v62 = vld [vmem:[#allocation6 + $0x1788] sm:$0xff]  ;;  %v1588_v63 = vld [vmem:[#allocation6 + $0x1280] sm:$0xff] }
 0x1d5   :  { %2418 = vmatpush1.msra.mxu1 %v1656_v1  ;;  %2364 = vmatprep.subr.mxu0 %v1621_v2  ;;  %v367_v1 = vrot.slane %v4705_v55, %v4630_v13  ;;  %v1748_v2 = vld [vmem:[#allocation6 + $0x1780] sm:$0xff] }
 0x1d6   :  { %2419 = vmatprep.subr.mxu1 %v1653_v4  ;;  %2365 = vmatpush2.msra.mxu0 %v1620_v5  ;;  %v363_v4 = vrot.slane %v4705_v55, %v4625_v11  ;;  %v1585_v5 = vld [vmem:[#allocation6 + $0x1268] sm:$0xff] }
 0x1d7   :  { %2420 = vmatpush1.msra.mxu1 %v1652_v6  ;;  %2366 = vmatprep.subr.mxu0 %v1617_v7  ;;  %v764_v6 = vpop.f32.mrf.mxu0  ;;  %v1745_v7 = vld [vmem:[#allocation6 + $0x1768] sm:$0xff] }
 0x1d8   :  { %2421 = vmatprep.subr.mxu1 %v1649_v8  ;;  %2367 = vmatpush2.msra.mxu0 %v1616_v9  ;;  %v1584_v8 = vld [vmem:[#allocation6 + $0x1260] sm:$0xff] }
 0x1d9   :  { %2422 = vmatpush1.msra.mxu1 %v1648_v14  ;;  %2368 = vmatprep.subr.mxu0 %v1613_v15  ;;  %v1744_v9 = vld [vmem:[#allocation6 + $0x1760] sm:$0xff]  ;;  %v1581_v14 = vld [vmem:[#allocation6 + $0x1248] sm:$0xff]  ;;  %v4711_v15 = vadd.f32 %v764_v6, %v367_v1 }
 0x1da   :  { %2423 = vmatprep.subr.mxu1 %v1645_v16  ;;  %2369 = vmatpush2.msra.mxu0 %v1612_v23  ;;  %v1741_v16 = vld [vmem:[#allocation6 + $0x1748] sm:$0xff]  ;;  %v1580_v23 = vld [vmem:[#allocation6 + $0x1240] sm:$0xff] }
 0x1db   :  { %2424 = vmatpush1.msra.mxu1 %v1644_v24  ;;  %2370 = vmatprep.subr.mxu0 %v1609_v27  ;;  %v4713_v24 = vadd.f32 %v762_v56, %v363_v4  ;;  %v1740_v27 = vld [vmem:[#allocation6 + $0x1740] sm:$0xff]  ;;  %v1817_v1 = vld [vmem:[#allocation6 + $0x19a8] sm:$0xff] }
 0x1dc   :  { %2425 = vmatprep.subr.mxu1 %v1641_v28  ;;  %2371 = vmatpush2.msra.mxu0 %v1608_v30  ;;  %v1577_v28 = vld [vmem:[#allocation6 + $0x1228] sm:$0xff]  ;;  %v4715_v30 = vpop.f32.mrf.mxu1 }
 0x1dd   :  { %2426 = vmatpush1.msra.mxu1 %v1640_v32  ;;  %2372 = vmatprep.subr.mxu0 %v1605_v33  ;;  %v1737_v32 = vld [vmem:[#allocation6 + $0x1728] sm:$0xff]  ;;  %v1576_v33 = vld [vmem:[#allocation6 + $0x1220] sm:$0xff] }
 0x1de   :  { %2427 = vmatprep.subr.mxu1 %v1637_v34  ;;  %2373 = vmatpush2.msra.mxu0 %v1604_v35  ;;  %v1736_v34 = vld [vmem:[#allocation6 + $0x1720] sm:$0xff]  ;;  %v1573_v35 = vld [vmem:[#allocation6 + $0x1208] sm:$0xff] }
 0x1df   :  { %2428 = vmatpush1.msra.mxu1 %v1636_v37  ;;  %2374 = vmatprep.subr.mxu0 %v1601_v38  ;;  %v989_v37 = vmax.f32 %v4711_v15, 0.0  ;;  %v1733_v38 = vld [vmem:[#allocation6 + $0x1708] sm:$0xff]  ;;  %v1458_v15 = vld [vmem:[#allocation6 + $0xe70] sm:$0xff] }
 0x1e0   :  { %2429 = vmatprep.subr.mxu1 %v1761_v39  ;;  %2375 = vmatpush2.msra.mxu0 %v1600_v40  ;;  %v1572_v39 = vld [vmem:[#allocation6 + $0x1200] sm:$0xff]  ;;  %v375_v40 = vrot.slane %v4705_v55, %v4651_v31  ;;  %v1717_v6 = vld [vmem:[#allocation6 + $0x1688] sm:$0xff] }
 0x1e1   :  { %2430 = vmatpush2.msra.mxu1 %v1760_v41  ;;  %2376 = vmatprep.subr.mxu0 %v1597_v43  ;;  %v988_v41 = vmax.f32 %v4713_v24, 0.0  ;;  %v1732_v43 = vld [vmem:[#allocation6 + $0x1700] sm:$0xff]  ;;  %v1719_v24 = vld [vmem:[#allocation6 + $0x1698] sm:$0xff] }
 0x1e2   :  { %2431 = vmatprep.subr.mxu1 %v1757_v45  ;;  %2377 = vmatpush2.msra.mxu0 %v1596_v49  ;;  %v835_v45 = vpop.f32.mrf.mxu1  ;;  %v1729_v49 = vld [vmem:[#allocation6 + $0x16e8] sm:$0xff] }
 0x1e3   :  { %2432 = vmatpush2.msra.mxu1 %v1756_v52  ;;  %2378 = vmatprep.subr.mxu0 %v1593_v54  ;;  %v1825_v52 = vld [vmem:[#allocation6 + $0x19e8] sm:$0xff]  ;;  %v1728_v54 = vld [vmem:[#allocation6 + $0x16e0] sm:$0xff]  ;;  %v4723_v56 = vadd.f32 %v835_v45, %v375_v40 }
 0x1e4   :  { %2433 = vmatprep.subr.mxu1 %v1753_v57  ;;  %2379 = vmatpush2.msra.mxu0 %v1592_v58  ;;  %v1824_v57 = vld [vmem:[#allocation6 + $0x19e0] sm:$0xff]  ;;  %v1725_v58 = vld [vmem:[#allocation6 + $0x16c8] sm:$0xff]  ;;  %v4737_v45 = vpop.f32.mrf.mxu1 }
 0x1e5   :  { %2434 = vmatpush2.msra.mxu1 %v1752_v60  ;;  %2380 = vmatprep.subr.mxu0 %v1589_v61  ;;  %v1821_v60 = vld [vmem:[#allocation6 + $0x19c8] sm:$0xff]  ;;  %v1724_v61 = vld [vmem:[#allocation6 + $0x16c0] sm:$0xff]  ;;  %v991_v4 = vmax.f32 %v4723_v56, 0.0  ;;  %v4773_v10 = vadd.f32 %v4737_v45, %v387_v19  ;;  %v1027_v45 = vld [vmem:[#allocation6 + $0xf8] sm:$0xff] }
 0x1e6   :  { %2435 = vmatprep.subr.mxu1 %v1749_v62  ;;  %2381 = vmatpush2.msra.mxu0 %v1588_v63  ;;  %v1820_v62 = vld [vmem:[#allocation6 + $0x19c0] sm:$0xff]  ;;  %v1721_v63 = vld [vmem:[#allocation6 + $0x16a8] sm:$0xff]  ;;  %v1175_v19 = vld [vmem:[#allocation6 + $0x598] sm:$0xff] }
 0x1e7   :  { %2436 = vmatpush2.msra.mxu1 %v1748_v2  ;;  %2382 = vmatprep.subr.mxu0 %v1585_v5  ;;  %v1720_v2 = vld [vmem:[#allocation6 + $0x16a0] sm:$0xff]  ;;  %v1801_v40 = vld [vmem:[#allocation6 + $0x1928] sm:$0xff]  ;;  %v1522_v56 = vld [vmem:[#allocation6 + $0x1070] sm:$0xff] }
 0x1e8   :  { %2437 = vmatprep.subr.mxu1 %v1745_v7  ;;  %2383 = vmatpush2.msra.mxu0 %v1584_v8  ;;  %v1816_v5 = vld [vmem:[#allocation6 + $0x19a0] sm:$0xff]  ;;  %v1813_v7 = vld [vmem:[#allocation6 + $0x1988] sm:$0xff] }
 0x1e9   :  { %2438 = vmatpush2.msra.mxu1 %v1744_v9  ;;  %2384 = vmatprep.subr.mxu0 %v1581_v14  ;;  %v1716_v8 = vld [vmem:[#allocation6 + $0x1680] sm:$0xff]  ;;  %v1713_v14 = vld [vmem:[#allocation6 + $0x1668] sm:$0xff] }
 0x1ea   :  { %2439 = vmatprep.subr.mxu1 %v1741_v16  ;;  %2385 = vmatpush2.msra.mxu0 %v1580_v23  ;;  %v1812_v9 = vld [vmem:[#allocation6 + $0x1980] sm:$0xff]  ;;  %v1809_v16 = vld [vmem:[#allocation6 + $0x1968] sm:$0xff]  ;;  %v371_v23 = vrot.slane %v4705_v55, %v4648_v29 }
 0x1eb   :  { %2440 = vmatpush2.msra.mxu1 %v1740_v27  ;;  %2386 = vmatprep.subr.mxu0 %v1577_v28  ;;  %v1712_v27 = vld [vmem:[#allocation6 + $0x1660] sm:$0xff] }
 0x1ec   :  { %2441 = vmatprep.subr.mxu1 %v1737_v32  ;;  %2387 = vmatpush2.msra.mxu0 %v1576_v33  ;;  %v1808_v28 = vld [vmem:[#allocation6 + $0x1960] sm:$0xff]  ;;  %v4732_v32 = vpop.f32.mrf.mxu0  ;;  %v1709_v33 = vld [vmem:[#allocation6 + $0x1648] sm:$0xff] }
 0x1ed   :  { %2442 = vmatpush2.msra.mxu1 %v1736_v34  ;;  %2388 = vmatprep.subr.mxu0 %v1573_v35  ;;  %v1805_v34 = vld [vmem:[#allocation6 + $0x1948] sm:$0xff]  ;;  %v1708_v35 = vld [vmem:[#allocation6 + $0x1640] sm:$0xff] }
 0x1ee   :  { %2443 = vmatprep.subr.mxu1 %v1733_v38  ;;  %2389 = vmatpush2.msra.mxu0 %v1572_v39  ;;  %v1804_v38 = vld [vmem:[#allocation6 + $0x1940] sm:$0xff]  ;;  %v1705_v39 = vld [vmem:[#allocation6 + $0x1628] sm:$0xff] }
 0x1ef   :  { %2390 = vmatprep.mubr.f32.mxu0 %v989_v37  ;;  %2444 = vmatpush2.msra.mxu1 %v1732_v43  ;;  %v383_v43 = vrot.slane %v4705_v55, %v350_v26  ;;  %v391_v26 = vrot.slane %v4705_v55, %v358_v3 }
 0x1f0   :  { %2391 = vmatmul.mubr.f32.vlgmr.msra.gmra.mxu0 %v988_v41  ;;  %2445 = vmatprep.subr.mxu1 %v1729_v49  ;;  %v4740_v49 = vadd.f32 %v4715_v30, %v371_v23  ;;  %v1948_v23 = vld [vmem:[#allocation6 + $0x1dc0] sm:$0xff] }
 0x1f1   :  { %2468 = vmatprep.subr.mxu0 %v1825_v52  ;;  %2446 = vmatpush2.msra.mxu1 %v1728_v54  ;;  %v1704_v52 = vld [vmem:[#allocation6 + $0x1620] sm:$0xff] }
 0x1f2   :  { %2469 = vmatpush1.msra.mxu0 %v1824_v57  ;;  %2447 = vmatprep.subr.mxu1 %v1725_v58  ;;  %v1800_v54 = vld [vmem:[#allocation6 + $0x1920] sm:$0xff]  ;;  %v906_v57 = vpop.f32.mrf.mxu0  ;;  %v1701_v58 = vld [vmem:[#allocation6 + $0x1608] sm:$0xff] }
 0x1f3   :  { %2470 = vmatprep.subr.mxu0 %v1821_v60  ;;  %2448 = vmatpush2.msra.mxu1 %v1724_v61  ;;  %v1797_v60 = vld [vmem:[#allocation6 + $0x1908] sm:$0xff]  ;;  %v1700_v61 = vld [vmem:[#allocation6 + $0x1600] sm:$0xff]  ;;  %v4745_v30 = vadd.f32 %v906_v57, %v383_v43 }
 0x1f4   :  { %2471 = vmatpush1.msra.mxu0 %v1820_v62  ;;  %2449 = vmatprep.subr.mxu1 %v1721_v63  ;;  %v1796_v62 = vld [vmem:[#allocation6 + $0x1900] sm:$0xff]  ;;  %v1793_v63 = vld [vmem:[#allocation6 + $0x18e8] sm:$0xff] }
 0x1f5   :  { %2472 = vmatprep.subr.mxu0 %v1817_v1  ;;  %2450 = vmatpush2.msra.mxu1 %v1720_v2  ;;  %v977_v1 = vpop.f32.mrf.mxu1  ;;  %v990_v2 = vmax.f32 %v4740_v49, 0.0  ;;  %v1940_v43 = vld [vmem:[#allocation6 + $0x1d80] sm:$0xff]  ;;  %v1783_v49 = vld [vmem:[#allocation6 + $0x1898] sm:$0xff] }
 0x1f6   :  { %2473 = vmatpush1.msra.mxu0 %v1816_v5  ;;  %2451 = vmatprep.subr.mxu1 %v1717_v6  ;;  %v1953_v5 = vld [vmem:[#allocation6 + $0x1de8] sm:$0xff]  ;;  %v1792_v6 = vld [vmem:[#allocation6 + $0x18e0] sm:$0xff]  ;;  %v4750_v3 = vadd.f32 %v977_v1, %v391_v26 }
 0x1f7   :  { %2461 = vmatprep.mubr.f32.mxu1 %v991_v4  ;;  %2474 = vmatprep.subr.mxu0 %v1813_v7  ;;  %v1952_v7 = vld [vmem:[#allocation6 + $0x1de0] sm:$0xff]  ;;  %v1929_v1 = vld [vmem:[#allocation6 + $0x1d28] sm:$0xff] }
 0x1f8   :  { %2452 = vmatpush2.msra.mxu1 %v1716_v8  ;;  %2475 = vmatpush1.msra.mxu0 %v1812_v9  ;;  %v1789_v8 = vld [vmem:[#allocation6 + $0x18c8] sm:$0xff]  ;;  %v1776_v57 = vld [vmem:[#allocation6 + $0x1860] sm:$0xff] }
 0x1f9   :  { %2453 = vmatprep.subr.mxu1 %v1713_v14  ;;  %2476 = vmatprep.subr.mxu0 %v1809_v16  ;;  %v1949_v9 = vld [vmem:[#allocation6 + $0x1dc8] sm:$0xff]  ;;  %v1788_v14 = vld [vmem:[#allocation6 + $0x18c0] sm:$0xff]  ;;  %v993_v16 = vmax.f32 %v4745_v30, 0.0  ;;  %v1714_v30 = vld [vmem:[#allocation6 + $0x1670] sm:$0xff] }
 0x1fa   :  { %2454 = vmatpush2.msra.mxu1 %v1712_v27  ;;  %2477 = vmatpush1.msra.mxu0 %v1808_v28  ;;  %v1785_v27 = vld [vmem:[#allocation6 + $0x18a8] sm:$0xff]  ;;  %v1932_v26 = vld [vmem:[#allocation6 + $0x1d40] sm:$0xff] }
 0x1fb   :  { %2455 = vmatprep.subr.mxu1 %v1709_v33  ;;  %2478 = vmatprep.subr.mxu0 %v1805_v34  ;;  %v1945_v28 = vld [vmem:[#allocation6 + $0x1da8] sm:$0xff]  ;;  %v1784_v33 = vld [vmem:[#allocation6 + $0x18a0] sm:$0xff] }
 0x1fc   :  { %2456 = vmatpush2.msra.mxu1 %v1708_v35  ;;  %2479 = vmatpush1.msra.mxu0 %v1804_v38  ;;  %v1944_v34 = vld [vmem:[#allocation6 + $0x1da0] sm:$0xff]  ;;  %v995_v35 = vmax.f32 %v4750_v3, 0.0  ;;  %v1781_v38 = vld [vmem:[#allocation6 + $0x1888] sm:$0xff]  ;;  %v1778_v3 = vld [vmem:[#allocation6 + $0x1870] sm:$0xff] }
 0x1fd   :  { %2457 = vmatprep.subr.mxu1 %v1705_v39  ;;  %2480 = vmatprep.subr.mxu0 %v1801_v40  ;;  %v1941_v39 = vld [vmem:[#allocation6 + $0x1d88] sm:$0xff]  ;;  %v1780_v40 = vld [vmem:[#allocation6 + $0x1880] sm:$0xff] }
 0x1fe   :  { %2458 = vmatpush2.msra.mxu1 %v1704_v52  ;;  %2481 = vmatpush1.msra.mxu0 %v1800_v54  ;;  %v1777_v52 = vld [vmem:[#allocation6 + $0x1868] sm:$0xff] }
 0x1ff   :  { %2459 = vmatprep.subr.mxu1 %v1701_v58  ;;  %2482 = vmatprep.subr.mxu0 %v1797_v60  ;;  %v1937_v54 = vld [vmem:[#allocation6 + $0x1d68] sm:$0xff]  ;;  %v1936_v58 = vld [vmem:[#allocation6 + $0x1d60] sm:$0xff] }
 0x200   :  { %2460 = vmatpush2.msra.mxu1 %v1700_v61  ;;  %2483 = vmatpush1.msra.mxu0 %v1796_v62  ;;  %v1773_v60 = vld [vmem:[#allocation6 + $0x1848] sm:$0xff]  ;;  %v1772_v62 = vld [vmem:[#allocation6 + $0x1840] sm:$0xff] }
 0x201   :  { %2462 = vmatmul.mubr.f32.vlgmr.msra.gmra.mxu1 %v990_v2  ;;  %2484 = vmatprep.subr.mxu0 %v1793_v63  ;;  %v1933_v61 = vld [vmem:[#allocation6 + $0x1d48] sm:$0xff] }
 0x202   :  { %2539 = vmatprep.subr.mxu1 %v1953_v5  ;;  %2485 = vmatpush1.msra.mxu0 %v1792_v6  ;;  %v1769_v63 = vld [vmem:[#allocation6 + $0x1828] sm:$0xff]  ;;  %v1768_v5 = vld [vmem:[#allocation6 + $0x1820] sm:$0xff] }
 0x203   :  { %2540 = vmatpush1.msra.mxu1 %v1952_v7  ;;  %2486 = vmatprep.subr.mxu0 %v1789_v8  ;;  %v1928_v6 = vld [vmem:[#allocation6 + $0x1d20] sm:$0xff]  ;;  %v1765_v7 = vld [vmem:[#allocation6 + $0x1808] sm:$0xff] }
 0x204   :  { %2541 = vmatprep.subr.mxu1 %v1949_v9  ;;  %2487 = vmatpush1.msra.mxu0 %v1788_v14  ;;  %v1925_v8 = vld [vmem:[#allocation6 + $0x1d08] sm:$0xff]  ;;  %v1764_v9 = vld [vmem:[#allocation6 + $0x1800] sm:$0xff] }
 0x205   :  { %2542 = vmatpush1.msra.mxu1 %v1948_v23  ;;  %2488 = vmatprep.subr.mxu0 %v1785_v27  ;;  %v1924_v14 = vld [vmem:[#allocation6 + $0x1d00] sm:$0xff]  ;;  %v1889_v23 = vld [vmem:[#allocation6 + $0x1be8] sm:$0xff] }
 0x206   :  { %2532 = vmatprep.mubr.f32.mxu0 %v993_v16  ;;  %2543 = vmatprep.subr.mxu1 %v1945_v28  ;;  %v1921_v27 = vld [vmem:[#allocation6 + $0x1ce8] sm:$0xff]  ;;  %v1888_v28 = vld [vmem:[#allocation6 + $0x1be0] sm:$0xff] }
 0x207   :  { %2489 = vmatpush1.msra.mxu0 %v1784_v33  ;;  %2544 = vmatpush1.msra.mxu1 %v1944_v34  ;;  %v1920_v33 = vld [vmem:[#allocation6 + $0x1ce0] sm:$0xff]  ;;  %v1885_v34 = vld [vmem:[#allocation6 + $0x1bc8] sm:$0xff] }
 0x208   :  { %2490 = vmatprep.subr.mxu0 %v1781_v38  ;;  %2545 = vmatprep.subr.mxu1 %v1941_v39  ;;  %v1917_v38 = vld [vmem:[#allocation6 + $0x1cc8] sm:$0xff]  ;;  %v1884_v39 = vld [vmem:[#allocation6 + $0x1bc0] sm:$0xff] }
 0x209   :  { %2603 = vmatprep.mubr.f32.mxu1 %v995_v35  ;;  %2491 = vmatpush1.msra.mxu0 %v1780_v40  ;;  %v1916_v40 = vld [vmem:[#allocation6 + $0x1cc0] sm:$0xff] }
 0x20a   :  { %2546 = vmatpush1.msra.mxu1 %v1940_v43  ;;  %2492 = vmatprep.subr.mxu0 %v1777_v52  ;;  %v1881_v43 = vld [vmem:[#allocation6 + $0x1ba8] sm:$0xff] }
 0x20b   :  { %2547 = vmatprep.subr.mxu1 %v1937_v54  ;;  %2493 = vmatpush1.msra.mxu0 %v1776_v57  ;;  %v1913_v52 = vld [vmem:[#allocation6 + $0x1ca8] sm:$0xff]  ;;  %v1880_v54 = vld [vmem:[#allocation6 + $0x1ba0] sm:$0xff] }
 0x20c   :  { %2548 = vmatpush1.msra.mxu1 %v1936_v58  ;;  %2494 = vmatprep.subr.mxu0 %v1773_v60  ;;  %v1912_v57 = vld [vmem:[#allocation6 + $0x1ca0] sm:$0xff]  ;;  %v1877_v58 = vld [vmem:[#allocation6 + $0x1b88] sm:$0xff] }
 0x20d   :  { %2549 = vmatprep.subr.mxu1 %v1933_v61  ;;  %2495 = vmatpush1.msra.mxu0 %v1772_v62  ;;  %v1909_v60 = vld [vmem:[#allocation6 + $0x1c88] sm:$0xff]  ;;  %v1876_v61 = vld [vmem:[#allocation6 + $0x1b80] sm:$0xff] }
 0x20e   :  { %2550 = vmatpush1.msra.mxu1 %v1932_v26  ;;  %2496 = vmatprep.subr.mxu0 %v1769_v63  ;;  %v1908_v62 = vld [vmem:[#allocation6 + $0x1c80] sm:$0xff]  ;;  %v1873_v26 = vld [vmem:[#allocation6 + $0x1b68] sm:$0xff] }
 0x20f   :  { %2551 = vmatprep.subr.mxu1 %v1929_v1  ;;  %2497 = vmatpush1.msra.mxu0 %v1768_v5  ;;  %v1905_v63 = vld [vmem:[#allocation6 + $0x1c68] sm:$0xff]  ;;  %v1872_v1 = vld [vmem:[#allocation6 + $0x1b60] sm:$0xff] }
 0x210   :  { %2552 = vmatpush1.msra.mxu1 %v1928_v6  ;;  %2498 = vmatprep.subr.mxu0 %v1765_v7  ;;  %v1904_v5 = vld [vmem:[#allocation6 + $0x1c60] sm:$0xff]  ;;  %v1869_v6 = vld [vmem:[#allocation6 + $0x1b48] sm:$0xff] }
 0x211   :  { %2553 = vmatprep.subr.mxu1 %v1925_v8  ;;  %2499 = vmatpush1.msra.mxu0 %v1764_v9  ;;  %v1901_v7 = vld [vmem:[#allocation6 + $0x1c48] sm:$0xff]  ;;  %v1868_v8 = vld [vmem:[#allocation6 + $0x1b40] sm:$0xff] }
 0x212   :  { %2554 = vmatpush1.msra.mxu1 %v1924_v14  ;;  %2500 = vmatprep.subr.mxu0 %v1889_v23  ;;  %v1900_v9 = vld [vmem:[#allocation6 + $0x1c40] sm:$0xff]  ;;  %v1865_v14 = vld [vmem:[#allocation6 + $0x1b28] sm:$0xff] }
 0x213   :  { %2555 = vmatprep.subr.mxu1 %v1921_v27  ;;  %2501 = vmatpush2.msra.mxu0 %v1888_v28  ;;  %v1897_v23 = vld [vmem:[#allocation6 + $0x1c28] sm:$0xff]  ;;  %v1864_v27 = vld [vmem:[#allocation6 + $0x1b20] sm:$0xff] }
 0x214   :  { %2556 = vmatpush1.msra.mxu1 %v1920_v33  ;;  %2502 = vmatprep.subr.mxu0 %v1885_v34  ;;  %v1896_v28 = vld [vmem:[#allocation6 + $0x1c20] sm:$0xff]  ;;  %v1861_v33 = vld [vmem:[#allocation6 + $0x1b08] sm:$0xff] }
 0x215   :  { %2557 = vmatprep.subr.mxu1 %v1917_v38  ;;  %2503 = vmatpush2.msra.mxu0 %v1884_v39  ;;  %v1893_v34 = vld [vmem:[#allocation6 + $0x1c08] sm:$0xff]  ;;  %v1860_v38 = vld [vmem:[#allocation6 + $0x1b00] sm:$0xff] }
 0x216   :  { %2558 = vmatpush1.msra.mxu1 %v1916_v40  ;;  %2504 = vmatprep.subr.mxu0 %v1881_v43  ;;  %v1892_v39 = vld [vmem:[#allocation6 + $0x1c00] sm:$0xff]  ;;  %v1857_v40 = vld [vmem:[#allocation6 + $0x1ae8] sm:$0xff] }
 0x217   :  { %2559 = vmatprep.subr.mxu1 %v1913_v52  ;;  %2505 = vmatpush2.msra.mxu0 %v1880_v54  ;;  %v2017_v43 = vld [vmem:[#allocation6 + $0x1fe8] sm:$0xff]  ;;  %v1856_v52 = vld [vmem:[#allocation6 + $0x1ae0] sm:$0xff] }
 0x218   :  { %2560 = vmatpush1.msra.mxu1 %v1912_v57  ;;  %2506 = vmatprep.subr.mxu0 %v1877_v58  ;;  %v2016_v54 = vld [vmem:[#allocation6 + $0x1fe0] sm:$0xff]  ;;  %v1853_v57 = vld [vmem:[#allocation6 + $0x1ac8] sm:$0xff] }
 0x219   :  { %2561 = vmatprep.subr.mxu1 %v1909_v60  ;;  %2507 = vmatpush2.msra.mxu0 %v1876_v61  ;;  %v2013_v58 = vld [vmem:[#allocation6 + $0x1fc8] sm:$0xff]  ;;  %v1852_v60 = vld [vmem:[#allocation6 + $0x1ac0] sm:$0xff] }
 0x21a   :  { %2562 = vmatpush1.msra.mxu1 %v1908_v62  ;;  %2508 = vmatprep.subr.mxu0 %v1873_v26  ;;  %v2012_v61 = vld [vmem:[#allocation6 + $0x1fc0] sm:$0xff]  ;;  %v1849_v62 = vld [vmem:[#allocation6 + $0x1aa8] sm:$0xff] }
 0x21b   :  { %2563 = vmatprep.subr.mxu1 %v1905_v63  ;;  %2509 = vmatpush2.msra.mxu0 %v1872_v1  ;;  %v2009_v26 = vld [vmem:[#allocation6 + $0x1fa8] sm:$0xff]  ;;  %v1848_v63 = vld [vmem:[#allocation6 + $0x1aa0] sm:$0xff] }
 0x21c   :  { %2564 = vmatpush1.msra.mxu1 %v1904_v5  ;;  %2510 = vmatprep.subr.mxu0 %v1869_v6  ;;  %v2008_v1 = vld [vmem:[#allocation6 + $0x1fa0] sm:$0xff]  ;;  %v1845_v5 = vld [vmem:[#allocation6 + $0x1a88] sm:$0xff] }
 0x21d   :  { %2565 = vmatprep.subr.mxu1 %v1901_v7  ;;  %2511 = vmatpush2.msra.mxu0 %v1868_v8  ;;  %v2005_v6 = vld [vmem:[#allocation6 + $0x1f88] sm:$0xff]  ;;  %v1844_v7 = vld [vmem:[#allocation6 + $0x1a80] sm:$0xff] }
 0x21e   :  { %2566 = vmatpush1.msra.mxu1 %v1900_v9  ;;  %2512 = vmatprep.subr.mxu0 %v1865_v14  ;;  %v2004_v8 = vld [vmem:[#allocation6 + $0x1f80] sm:$0xff]  ;;  %v1841_v9 = vld [vmem:[#allocation6 + $0x1a68] sm:$0xff]  ;;  %v379_v14 = vrot.slane %v4705_v55, %v346_v25 }
 0x21f   :  { %2567 = vmatprep.subr.mxu1 %v1897_v23  ;;  %2513 = vmatpush2.msra.mxu0 %v1864_v27  ;;  %v2001_v23 = vld [vmem:[#allocation6 + $0x1f68] sm:$0xff]  ;;  %v1840_v27 = vld [vmem:[#allocation6 + $0x1a60] sm:$0xff] }
 0x220   :  { %2568 = vmatpush1.msra.mxu1 %v1896_v28  ;;  %2514 = vmatprep.subr.mxu0 %v1861_v33  ;;  %v2000_v28 = vld [vmem:[#allocation6 + $0x1f60] sm:$0xff]  ;;  %v1837_v33 = vld [vmem:[#allocation6 + $0x1a48] sm:$0xff] }
 0x221   :  { %2569 = vmatprep.subr.mxu1 %v1893_v34  ;;  %2515 = vmatpush2.msra.mxu0 %v1860_v38  ;;  %v1997_v34 = vld [vmem:[#allocation6 + $0x1f48] sm:$0xff]  ;;  %v1836_v38 = vld [vmem:[#allocation6 + $0x1a40] sm:$0xff] }
 0x222   :  { %2570 = vmatpush1.msra.mxu1 %v1892_v39  ;;  %2516 = vmatprep.subr.mxu0 %v1857_v40  ;;  %v1996_v39 = vld [vmem:[#allocation6 + $0x1f40] sm:$0xff]  ;;  %v1833_v40 = vld [vmem:[#allocation6 + $0x1a28] sm:$0xff] }
 0x223   :  { %2571 = vmatprep.subr.mxu1 %v2017_v43  ;;  %2517 = vmatpush2.msra.mxu0 %v1856_v52  ;;  %v4762_v43 = vadd.f32 %v4732_v32, %v379_v14  ;;  %v1993_v25 = vld [vmem:[#allocation6 + $0x1f28] sm:$0xff]  ;;  %v1832_v52 = vld [vmem:[#allocation6 + $0x1a20] sm:$0xff]  ;;  %v1051_v14 = vld [vmem:[#allocation6 + $0x1b8] sm:$0xff] }
 0x224   :  { %2572 = vmatpush2.msra.mxu1 %v2016_v54  ;;  %2518 = vmatprep.subr.mxu0 %v1853_v57  ;;  %v1992_v54 = vld [vmem:[#allocation6 + $0x1f20] sm:$0xff]  ;;  %v1829_v57 = vld [vmem:[#allocation6 + $0x1a08] sm:$0xff] }
 0x225   :  { %2573 = vmatprep.subr.mxu1 %v2013_v58  ;;  %2519 = vmatpush2.msra.mxu0 %v1852_v60  ;;  %v1989_v58 = vld [vmem:[#allocation6 + $0x1f08] sm:$0xff]  ;;  %v1828_v60 = vld [vmem:[#allocation6 + $0x1a00] sm:$0xff] }
 0x226   :  { %2574 = vmatpush2.msra.mxu1 %v2012_v61  ;;  %2520 = vmatprep.subr.mxu0 %v1849_v62  ;;  %v1988_v61 = vld [vmem:[#allocation6 + $0x1f00] sm:$0xff]  ;;  %v992_v62 = vmax.f32 %v4762_v43, 0.0  ;;  %v1985_v32 = vld [vmem:[#allocation6 + $0x1ee8] sm:$0xff] }
 0x227   :  { %2575 = vmatprep.subr.mxu1 %v2009_v26  ;;  %2521 = vmatpush2.msra.mxu0 %v1848_v63  ;;  %v1059_v26 = vld [vmem:[#allocation6 + $0x1f8] sm:$0xff]  ;;  %v1984_v63 = vld [vmem:[#allocation6 + $0x1ee0] sm:$0xff] }
 0x228   :  { %2576 = vmatpush2.msra.mxu1 %v2008_v1  ;;  %2522 = vmatprep.subr.mxu0 %v1845_v5  ;;  %v1058_v1 = vld [vmem:[#allocation6 + $0x1f0] sm:$0xff]  ;;  %v1981_v5 = vld [vmem:[#allocation6 + $0x1ec8] sm:$0xff]  ;;  %v1960_v55 = vld [vmem:[#allocation6 + $0x1e20] sm:$0xff] }
 0x229   :  { %2577 = vmatprep.subr.mxu1 %v2005_v6  ;;  %2523 = vmatpush2.msra.mxu0 %v1844_v7  ;;  %v1055_v6 = vld [vmem:[#allocation6 + $0x1d8] sm:$0xff]  ;;  %v1980_v7 = vld [vmem:[#allocation6 + $0x1ec0] sm:$0xff] }
 0x22a   :  { %2578 = vmatpush2.msra.mxu1 %v2004_v8  ;;  %2524 = vmatprep.subr.mxu0 %v1841_v9  ;;  %v1054_v8 = vld [vmem:[#allocation6 + $0x1d0] sm:$0xff]  ;;  %v1977_v9 = vld [vmem:[#allocation6 + $0x1ea8] sm:$0xff] }
 0x22b   :  { %2579 = vmatprep.subr.mxu1 %v2001_v23  ;;  %2525 = vmatpush2.msra.mxu0 %v1840_v27  ;;  %v1976_v23 = vld [vmem:[#allocation6 + $0x1ea0] sm:$0xff]  ;;  %v1050_v27 = vld [vmem:[#allocation6 + $0x1b0] sm:$0xff] }
 0x22c   :  { %2580 = vmatpush2.msra.mxu1 %v2000_v28  ;;  %2526 = vmatprep.subr.mxu0 %v1837_v33  ;;  %v1973_v28 = vld [vmem:[#allocation6 + $0x1e88] sm:$0xff]  ;;  %v1047_v33 = vld [vmem:[#allocation6 + $0x198] sm:$0xff] }
 0x22d   :  { %2581 = vmatprep.subr.mxu1 %v1997_v34  ;;  %2527 = vmatpush2.msra.mxu0 %v1836_v38  ;;  %v1972_v34 = vld [vmem:[#allocation6 + $0x1e80] sm:$0xff]  ;;  %v1046_v38 = vld [vmem:[#allocation6 + $0x190] sm:$0xff] }
 0x22e   :  { %2582 = vmatpush2.msra.mxu1 %v1996_v39  ;;  %2528 = vmatprep.subr.mxu0 %v1833_v40  ;;  %v1969_v39 = vld [vmem:[#allocation6 + $0x1e68] sm:$0xff]  ;;  %v1968_v40 = vld [vmem:[#allocation6 + $0x1e60] sm:$0xff] }
 0x22f   :  { %2583 = vmatprep.subr.mxu1 %v1993_v25  ;;  %2529 = vmatpush2.msra.mxu0 %v1832_v52  ;;  %v1042_v25 = vld [vmem:[#allocation6 + $0x170] sm:$0xff]  ;;  %v1965_v52 = vld [vmem:[#allocation6 + $0x1e48] sm:$0xff] }
 0x230   :  { %2584 = vmatpush2.msra.mxu1 %v1992_v54  ;;  %2530 = vmatprep.subr.mxu0 %v1829_v57  ;;  %v1039_v54 = vld [vmem:[#allocation6 + $0x158] sm:$0xff]  ;;  %v1964_v57 = vld [vmem:[#allocation6 + $0x1e40] sm:$0xff] }
 0x231   :  { %2585 = vmatprep.subr.mxu1 %v1989_v58  ;;  %2531 = vmatpush2.msra.mxu0 %v1828_v60  ;;  %v1038_v58 = vld [vmem:[#allocation6 + $0x150] sm:$0xff]  ;;  %v1961_v60 = vld [vmem:[#allocation6 + $0x1e28] sm:$0xff] }
 0x232   :  { %2586 = vmatpush2.msra.mxu1 %v1988_v61  ;;  %2533 = vmatmul.mubr.f32.vlgmr.msra.gmra.mxu0 %v992_v62  ;;  %v1034_v61 = vld [vmem:[#allocation6 + $0x130] sm:$0xff]  ;;  %v3210_v43 = vld [vmem:[#allocation9 + $0xe0] sm:$0xff] }
 0x233   :  { %2587 = vmatprep.subr.mxu1 %v1985_v32  ;;  %2610 = vmatprep.subr.mxu0 %v1059_v26  ;;  %v1957_v32 = vld [vmem:[#allocation6 + $0x1e08] sm:$0xff]  ;;  %v1031_v26 = vld [vmem:[#allocation6 + $0x118] sm:$0xff] }
 0x234   :  { %2588 = vmatpush2.msra.mxu1 %v1984_v63  ;;  %2611 = vmatpush1.msra.mxu0 %v1058_v1  ;;  %v1956_v63 = vld [vmem:[#allocation6 + $0x1e00] sm:$0xff]  ;;  %v1030_v1 = vld [vmem:[#allocation6 + $0x110] sm:$0xff] }
 0x235   :  { %2674 = vmatprep.mubr.f32.mxu0 %v981_v20  ;;  %2589 = vmatprep.subr.mxu1 %v1981_v5  ;;  %v1043_v20 = vld [vmem:[#allocation6 + $0x178] sm:$0xff]  ;;  %v994_v5 = vmax.f32 %v4773_v10, 0.0  ;;  %v3202_v10 = vld [vmem:[#allocation9 + $0xa0] sm:$0xff] }
 0x236   :  { %2612 = vmatprep.subr.mxu0 %v1055_v6  ;;  %2590 = vmatpush2.msra.mxu1 %v1980_v7  ;;  %v1187_v6 = vld [vmem:[#allocation6 + $0x5f8] sm:$0xff]  ;;  %v1026_v7 = vld [vmem:[#allocation6 + $0xf0] sm:$0xff] }
 0x237   :  { %2613 = vmatpush1.msra.mxu0 %v1054_v8  ;;  %2591 = vmatprep.subr.mxu1 %v1977_v9  ;;  %v1186_v8 = vld [vmem:[#allocation6 + $0x5f0] sm:$0xff]  ;;  %v1023_v9 = vld [vmem:[#allocation6 + $0xd8] sm:$0xff] }
 0x238   :  { %2614 = vmatprep.subr.mxu0 %v1051_v14  ;;  %2592 = vmatpush2.msra.mxu1 %v1976_v23  ;;  %v1183_v14 = vld [vmem:[#allocation6 + $0x5d8] sm:$0xff]  ;;  %v1022_v23 = vld [vmem:[#allocation6 + $0xd0] sm:$0xff] }
 0x239   :  { %2615 = vmatpush1.msra.mxu0 %v1050_v27  ;;  %2593 = vmatprep.subr.mxu1 %v1973_v28  ;;  %v1182_v27 = vld [vmem:[#allocation6 + $0x5d0] sm:$0xff]  ;;  %v1019_v28 = vld [vmem:[#allocation6 + $0xb8] sm:$0xff] }
 0x23a   :  { %2616 = vmatprep.subr.mxu0 %v1047_v33  ;;  %2594 = vmatpush2.msra.mxu1 %v1972_v34  ;;  %v1179_v33 = vld [vmem:[#allocation6 + $0x5b8] sm:$0xff]  ;;  %v1018_v34 = vld [vmem:[#allocation6 + $0xb0] sm:$0xff] }
 0x23b   :  { %2617 = vmatpush1.msra.mxu0 %v1046_v38  ;;  %2595 = vmatprep.subr.mxu1 %v1969_v39  ;;  %v1178_v38 = vld [vmem:[#allocation6 + $0x5b0] sm:$0xff]  ;;  %v1015_v39 = vld [vmem:[#allocation6 + $0x98] sm:$0xff] }
 0x23c   :  { %2618 = vmatprep.subr.mxu0 %v1043_v20  ;;  %2596 = vmatpush2.msra.mxu1 %v1968_v40  ;;  %v1014_v20 = vld [vmem:[#allocation6 + $0x90] sm:$0xff] }
 0x23d   :  { %2619 = vmatpush1.msra.mxu0 %v1042_v25  ;;  %2597 = vmatprep.subr.mxu1 %v1965_v52  ;;  %v1174_v40 = vld [vmem:[#allocation6 + $0x590] sm:$0xff]  ;;  %v1011_v25 = vld [vmem:[#allocation6 + $0x78] sm:$0xff] }
 0x23e   :  { %2620 = vmatprep.subr.mxu0 %v1039_v54  ;;  %2598 = vmatpush2.msra.mxu1 %v1964_v57  ;;  %v1171_v52 = vld [vmem:[#allocation6 + $0x578] sm:$0xff] }
 0x23f   :  { %2621 = vmatpush1.msra.mxu0 %v1038_v58  ;;  %2599 = vmatprep.subr.mxu1 %v1961_v60  ;;  %v1007_v54 = vld [vmem:[#allocation6 + $0x58] sm:$0xff]  ;;  %v1006_v58 = vld [vmem:[#allocation6 + $0x50] sm:$0xff] }
 0x240   :  { %2622 = vmatprep.subr.mxu0 %v1035_v18  ;;  %2600 = vmatpush2.msra.mxu1 %v1960_v55  ;;  %v1167_v57 = vld [vmem:[#allocation6 + $0x558] sm:$0xff]  ;;  %v1166_v60 = vld [vmem:[#allocation6 + $0x550] sm:$0xff] }
 0x241   :  { %2623 = vmatpush1.msra.mxu0 %v1034_v61  ;;  %2601 = vmatprep.subr.mxu1 %v1957_v32  ;;  %v1003_v18 = vld [vmem:[#allocation6 + $0x38] sm:$0xff]  ;;  %v1002_v61 = vld [vmem:[#allocation6 + $0x30] sm:$0xff] }
 0x242   :  { %2624 = vmatprep.subr.mxu0 %v1031_v26  ;;  %2602 = vmatpush2.msra.mxu1 %v1956_v63  ;;  %v1163_v55 = vld [vmem:[#allocation6 + $0x538] sm:$0xff]  ;;  %v1162_v32 = vld [vmem:[#allocation6 + $0x530] sm:$0xff] }
 0x243   :  { %2625 = vmatpush1.msra.mxu0 %v1030_v1  ;;  %2604 = vmatmul.mubr.f32.vlgmr.msra.gmra.mxu1 %v994_v5  ;;  %v999_v26 = vld [vmem:[#allocation6 + $0x18] sm:$0xff]  ;;  %v998_v1 = vld [vmem:[#allocation6 + $0x10] sm:$0xff] }
 0x244   :  { %2626 = vmatprep.subr.mxu0 %v1027_v45  ;;  %2681 = vmatprep.subr.mxu1 %v1187_v6  ;;  %v1159_v63 = vld [vmem:[#allocation6 + $0x518] sm:$0xff]  ;;  %v1158_v45 = vld [vmem:[#allocation6 + $0x510] sm:$0xff] }
 0x245   :  { %2627 = vmatpush1.msra.mxu0 %v1026_v7  ;;  %2682 = vmatpush1.msra.mxu1 %v1186_v8  ;;  %v1123_v6 = vld [vmem:[#allocation6 + $0x3f8] sm:$0xff]  ;;  %v1122_v8 = vld [vmem:[#allocation6 + $0x3f0] sm:$0xff] }
 0x246   :  { %2745 = vmatprep.mubr.f32.mxu1 %v983_v51  ;;  %2628 = vmatprep.subr.mxu0 %v1023_v9  ;;  %v1170_v51 = vld [vmem:[#allocation6 + $0x570] sm:$0xff]  ;;  %v1155_v7 = vld [vmem:[#allocation6 + $0x4f8] sm:$0xff] }
 0x247   :  { %2683 = vmatprep.subr.mxu1 %v1183_v14  ;;  %2629 = vmatpush1.msra.mxu0 %v1022_v23  ;;  %v1154_v9 = vld [vmem:[#allocation6 + $0x4f0] sm:$0xff]  ;;  %v1119_v14 = vld [vmem:[#allocation6 + $0x3d8] sm:$0xff] }
 0x248   :  { %2684 = vmatpush1.msra.mxu1 %v1182_v27  ;;  %2630 = vmatprep.subr.mxu0 %v1019_v28  ;;  %v1151_v23 = vld [vmem:[#allocation6 + $0x4d8] sm:$0xff]  ;;  %v1118_v27 = vld [vmem:[#allocation6 + $0x3d0] sm:$0xff] }
 0x249   :  { %2685 = vmatprep.subr.mxu1 %v1179_v33  ;;  %2631 = vmatpush1.msra.mxu0 %v1018_v34  ;;  %v1150_v28 = vld [vmem:[#allocation6 + $0x4d0] sm:$0xff]  ;;  %v1115_v33 = vld [vmem:[#allocation6 + $0x3b8] sm:$0xff] }
 0x24a   :  { %2686 = vmatpush1.msra.mxu1 %v1178_v38  ;;  %2632 = vmatprep.subr.mxu0 %v1015_v39  ;;  %v1147_v34 = vld [vmem:[#allocation6 + $0x4b8] sm:$0xff]  ;;  %v1114_v38 = vld [vmem:[#allocation6 + $0x3b0] sm:$0xff] }
 0x24b   :  { %2687 = vmatprep.subr.mxu1 %v1175_v19  ;;  %2633 = vmatpush1.msra.mxu0 %v1014_v20  ;;  %v1146_v39 = vld [vmem:[#allocation6 + $0x4b0] sm:$0xff]  ;;  %v1111_v19 = vld [vmem:[#allocation6 + $0x398] sm:$0xff] }
 0x24c   :  { %2688 = vmatpush1.msra.mxu1 %v1174_v40  ;;  %2634 = vmatprep.subr.mxu0 %v1011_v25  ;;  %v1143_v20 = vld [vmem:[#allocation6 + $0x498] sm:$0xff]  ;;  %v1110_v40 = vld [vmem:[#allocation6 + $0x390] sm:$0xff] }
 0x24d   :  { %2689 = vmatprep.subr.mxu1 %v1171_v52  ;;  %2635 = vmatpush1.msra.mxu0 %v1010_v48  ;;  %v1142_v25 = vld [vmem:[#allocation6 + $0x490] sm:$0xff]  ;;  %v1107_v52 = vld [vmem:[#allocation6 + $0x378] sm:$0xff] }
 0x24e   :  { %2690 = vmatpush1.msra.mxu1 %v1170_v51  ;;  %2636 = vmatprep.subr.mxu0 %v1007_v54  ;;  %v1139_v48 = vld [vmem:[#allocation6 + $0x478] sm:$0xff]  ;;  %v1106_v51 = vld [vmem:[#allocation6 + $0x370] sm:$0xff] }
 0x24f   :  { %2691 = vmatprep.subr.mxu1 %v1167_v57  ;;  %2637 = vmatpush1.msra.mxu0 %v1006_v58  ;;  %v1138_v54 = vld [vmem:[#allocation6 + $0x470] sm:$0xff]  ;;  %v1103_v57 = vld [vmem:[#allocation6 + $0x358] sm:$0xff] }
 0x250   :  { %2692 = vmatpush1.msra.mxu1 %v1166_v60  ;;  %2638 = vmatprep.subr.mxu0 %v1003_v18  ;;  %v1135_v58 = vld [vmem:[#allocation6 + $0x458] sm:$0xff]  ;;  %v1102_v60 = vld [vmem:[#allocation6 + $0x350] sm:$0xff] }
 0x251   :  { %2693 = vmatprep.subr.mxu1 %v1163_v55  ;;  %2639 = vmatpush1.msra.mxu0 %v1002_v61  ;;  %v1134_v18 = vld [vmem:[#allocation6 + $0x450] sm:$0xff]  ;;  %v1099_v55 = vld [vmem:[#allocation6 + $0x338] sm:$0xff] }
 0x252   :  { %2694 = vmatpush1.msra.mxu1 %v1162_v32  ;;  %2640 = vmatprep.subr.mxu0 %v999_v26  ;;  %v1131_v61 = vld [vmem:[#allocation6 + $0x438] sm:$0xff]  ;;  %v1098_v32 = vld [vmem:[#allocation6 + $0x330] sm:$0xff] }
 0x253   :  { %2695 = vmatprep.subr.mxu1 %v1159_v63  ;;  %2641 = vmatpush1.msra.mxu0 %v998_v1  ;;  %v1130_v26 = vld [vmem:[#allocation6 + $0x430] sm:$0xff]  ;;  %v1095_v63 = vld [vmem:[#allocation6 + $0x318] sm:$0xff] }
 0x254   :  { %2696 = vmatpush1.msra.mxu1 %v1158_v45  ;;  %2642 = vmatprep.subr.mxu0 %v1123_v6  ;;  %v1127_v1 = vld [vmem:[#allocation6 + $0x418] sm:$0xff]  ;;  %v1094_v45 = vld [vmem:[#allocation6 + $0x310] sm:$0xff] }
 0x255   :  { %2697 = vmatprep.subr.mxu1 %v1155_v7  ;;  %2643 = vmatpush2.msra.mxu0 %v1122_v8  ;;  %v1126_v6 = vld [vmem:[#allocation6 + $0x410] sm:$0xff]  ;;  %v1091_v7 = vld [vmem:[#allocation6 + $0x2f8] sm:$0xff] }
 0x256   :  { %2698 = vmatpush1.msra.mxu1 %v1154_v9  ;;  %2644 = vmatprep.subr.mxu0 %v1119_v14  ;;  %v1251_v8 = vld [vmem:[#allocation6 + $0x7f8] sm:$0xff]  ;;  %v1090_v9 = vld [vmem:[#allocation6 + $0x2f0] sm:$0xff] }
 0x257   :  { %2699 = vmatprep.subr.mxu1 %v1151_v23  ;;  %2645 = vmatpush2.msra.mxu0 %v1118_v27  ;;  %v1250_v14 = vld [vmem:[#allocation6 + $0x7f0] sm:$0xff]  ;;  %v1087_v23 = vld [vmem:[#allocation6 + $0x2d8] sm:$0xff] }
 0x258   :  { %2700 = vmatpush1.msra.mxu1 %v1150_v28  ;;  %2646 = vmatprep.subr.mxu0 %v1115_v33  ;;  %v1247_v27 = vld [vmem:[#allocation6 + $0x7d8] sm:$0xff]  ;;  %v1086_v28 = vld [vmem:[#allocation6 + $0x2d0] sm:$0xff] }
 0x259   :  { %2701 = vmatprep.subr.mxu1 %v1147_v34  ;;  %2647 = vmatpush2.msra.mxu0 %v1114_v38  ;;  %v1246_v33 = vld [vmem:[#allocation6 + $0x7d0] sm:$0xff]  ;;  %v1083_v34 = vld [vmem:[#allocation6 + $0x2b8] sm:$0xff] }
 0x25a   :  { %2702 = vmatpush1.msra.mxu1 %v1146_v39  ;;  %2648 = vmatprep.subr.mxu0 %v1111_v19  ;;  %v1243_v38 = vld [vmem:[#allocation6 + $0x7b8] sm:$0xff]  ;;  %v1082_v39 = vld [vmem:[#allocation6 + $0x2b0] sm:$0xff] }
 0x25b   :  { %2703 = vmatprep.subr.mxu1 %v1143_v20  ;;  %2649 = vmatpush2.msra.mxu0 %v1110_v40  ;;  %v1242_v19 = vld [vmem:[#allocation6 + $0x7b0] sm:$0xff]  ;;  %v1079_v20 = vld [vmem:[#allocation6 + $0x298] sm:$0xff] }
 0x25c   :  { %2704 = vmatpush1.msra.mxu1 %v1142_v25  ;;  %2650 = vmatprep.subr.mxu0 %v1107_v52  ;;  %v1239_v40 = vld [vmem:[#allocation6 + $0x798] sm:$0xff]  ;;  %v1078_v25 = vld [vmem:[#allocation6 + $0x290] sm:$0xff] }
 0x25d   :  { %2705 = vmatprep.subr.mxu1 %v1139_v48  ;;  %2651 = vmatpush2.msra.mxu0 %v1106_v51  ;;  %v1238_v52 = vld [vmem:[#allocation6 + $0x790] sm:$0xff]  ;;  %v1075_v48 = vld [vmem:[#allocation6 + $0x278] sm:$0xff] }
 0x25e   :  { %2706 = vmatpush1.msra.mxu1 %v1138_v54  ;;  %2652 = vmatprep.subr.mxu0 %v1103_v57  ;;  %v1235_v51 = vld [vmem:[#allocation6 + $0x778] sm:$0xff]  ;;  %v1074_v54 = vld [vmem:[#allocation6 + $0x270] sm:$0xff] }
 0x25f   :  { %2707 = vmatprep.subr.mxu1 %v1135_v58  ;;  %2653 = vmatpush2.msra.mxu0 %v1102_v60  ;;  %v1234_v57 = vld [vmem:[#allocation6 + $0x770] sm:$0xff]  ;;  %v1071_v58 = vld [vmem:[#allocation6 + $0x258] sm:$0xff] }
 0x260   :  { %2708 = vmatpush1.msra.mxu1 %v1134_v18  ;;  %2654 = vmatprep.subr.mxu0 %v1099_v55  ;;  %v1231_v60 = vld [vmem:[#allocation6 + $0x758] sm:$0xff]  ;;  %v1070_v18 = vld [vmem:[#allocation6 + $0x250] sm:$0xff] }
 0x261   :  { %2709 = vmatprep.subr.mxu1 %v1131_v61  ;;  %2655 = vmatpush2.msra.mxu0 %v1098_v32  ;;  %v1230_v55 = vld [vmem:[#allocation6 + $0x750] sm:$0xff]  ;;  %v1067_v61 = vld [vmem:[#allocation6 + $0x238] sm:$0xff] }
 0x262   :  { %2710 = vmatpush1.msra.mxu1 %v1130_v26  ;;  %2656 = vmatprep.subr.mxu0 %v1095_v63  ;;  %v1227_v32 = vld [vmem:[#allocation6 + $0x738] sm:$0xff]  ;;  %v1066_v26 = vld [vmem:[#allocation6 + $0x230] sm:$0xff] }
 0x263   :  { %2711 = vmatprep.subr.mxu1 %v1127_v1  ;;  %2657 = vmatpush2.msra.mxu0 %v1094_v45  ;;  %v1226_v63 = vld [vmem:[#allocation6 + $0x730] sm:$0xff]  ;;  %v1063_v1 = vld [vmem:[#allocation6 + $0x218] sm:$0xff] }
 0x264   :  { %2712 = vmatpush1.msra.mxu1 %v1126_v6  ;;  %2658 = vmatprep.subr.mxu0 %v1091_v7  ;;  %v1223_v45 = vld [vmem:[#allocation6 + $0x718] sm:$0xff]  ;;  %v1062_v6 = vld [vmem:[#allocation6 + $0x210] sm:$0xff] }
 0x265   :  { %2713 = vmatprep.subr.mxu1 %v1251_v8  ;;  %2659 = vmatpush2.msra.mxu0 %v1090_v9  ;;  %v1222_v7 = vld [vmem:[#allocation6 + $0x710] sm:$0xff]  ;;  %v1219_v8 = vld [vmem:[#allocation6 + $0x6f8] sm:$0xff] }
 0x266   :  { %2714 = vmatpush2.msra.mxu1 %v1250_v14  ;;  %2660 = vmatprep.subr.mxu0 %v1087_v23  ;;  %v1315_v9 = vld [vmem:[#allocation6 + $0x9f8] sm:$0xff]  ;;  %v1218_v14 = vld [vmem:[#allocation6 + $0x6f0] sm:$0xff] }
 0x267   :  { %2715 = vmatprep.subr.mxu1 %v1247_v27  ;;  %2661 = vmatpush2.msra.mxu0 %v1086_v28  ;;  %v1314_v23 = vld [vmem:[#allocation6 + $0x9f0] sm:$0xff]  ;;  %v1215_v27 = vld [vmem:[#allocation6 + $0x6d8] sm:$0xff] }
 0x268   :  { %2716 = vmatpush2.msra.mxu1 %v1246_v33  ;;  %2662 = vmatprep.subr.mxu0 %v1083_v34  ;;  %v1311_v28 = vld [vmem:[#allocation6 + $0x9d8] sm:$0xff]  ;;  %v1214_v33 = vld [vmem:[#allocation6 + $0x6d0] sm:$0xff] }
 0x269   :  { %2717 = vmatprep.subr.mxu1 %v1243_v38  ;;  %2663 = vmatpush2.msra.mxu0 %v1082_v39  ;;  %v1310_v34 = vld [vmem:[#allocation6 + $0x9d0] sm:$0xff]  ;;  %v1211_v38 = vld [vmem:[#allocation6 + $0x6b8] sm:$0xff] }
 0x26a   :  { %2718 = vmatpush2.msra.mxu1 %v1242_v19  ;;  %2664 = vmatprep.subr.mxu0 %v1079_v20  ;;  %v1307_v39 = vld [vmem:[#allocation6 + $0x9b8] sm:$0xff]  ;;  %v1210_v19 = vld [vmem:[#allocation6 + $0x6b0] sm:$0xff] }
 0x26b   :  { %2719 = vmatprep.subr.mxu1 %v1239_v40  ;;  %2665 = vmatpush2.msra.mxu0 %v1078_v25  ;;  %v1306_v20 = vld [vmem:[#allocation6 + $0x9b0] sm:$0xff] }
 0x26c   :  { %2720 = vmatpush2.msra.mxu1 %v1238_v52  ;;  %2666 = vmatprep.subr.mxu0 %v1075_v48  ;;  %v1206_v40 = vld [vmem:[#allocation6 + $0x690] sm:$0xff]  ;;  %v1203_v52 = vld [vmem:[#allocation6 + $0x678] sm:$0xff] }
 0x26d   :  { %2721 = vmatprep.subr.mxu1 %v1235_v51  ;;  %2667 = vmatpush2.msra.mxu0 %v1074_v54  ;;  %v1302_v25 = vld [vmem:[#allocation6 + $0x990] sm:$0xff]  ;;  %v1299_v48 = vld [vmem:[#allocation6 + $0x978] sm:$0xff] }
 0x26e   :  { %2722 = vmatpush2.msra.mxu1 %v1234_v57  ;;  %2668 = vmatprep.subr.mxu0 %v1071_v58  ;;  %v1199_v51 = vld [vmem:[#allocation6 + $0x658] sm:$0xff]  ;;  %v1198_v57 = vld [vmem:[#allocation6 + $0x650] sm:$0xff] }
 0x26f   :  { %2723 = vmatprep.subr.mxu1 %v1231_v60  ;;  %2669 = vmatpush2.msra.mxu0 %v1070_v18  ;;  %v1295_v54 = vld [vmem:[#allocation6 + $0x958] sm:$0xff]  ;;  %v1294_v58 = vld [vmem:[#allocation6 + $0x950] sm:$0xff] }
 0x270   :  { %2724 = vmatpush2.msra.mxu1 %v1230_v55  ;;  %2670 = vmatprep.subr.mxu0 %v1067_v61  ;;  %v1195_v60 = vld [vmem:[#allocation6 + $0x638] sm:$0xff]  ;;  %v1194_v55 = vld [vmem:[#allocation6 + $0x630] sm:$0xff] }
 0x271   :  { %2725 = vmatprep.subr.mxu1 %v1227_v32  ;;  %2671 = vmatpush2.msra.mxu0 %v1066_v26  ;;  %v1291_v18 = vld [vmem:[#allocation6 + $0x938] sm:$0xff]  ;;  %v1290_v61 = vld [vmem:[#allocation6 + $0x930] sm:$0xff] }
 0x272   :  { %2726 = vmatpush2.msra.mxu1 %v1226_v63  ;;  %2672 = vmatprep.subr.mxu0 %v1063_v1  ;;  %v1191_v32 = vld [vmem:[#allocation6 + $0x618] sm:$0xff]  ;;  %v1190_v63 = vld [vmem:[#allocation6 + $0x610] sm:$0xff] }
 0x273   :  { %2727 = vmatprep.subr.mxu1 %v1223_v45  ;;  %2673 = vmatpush2.msra.mxu0 %v1062_v6  ;;  %v1287_v26 = vld [vmem:[#allocation6 + $0x918] sm:$0xff]  ;;  %v1286_v1 = vld [vmem:[#allocation6 + $0x910] sm:$0xff] }
 0x274   :  { %2728 = vmatpush2.msra.mxu1 %v1222_v7  ;;  %2675 = vmatmul.mubr.f32.vlgmr.msra.gmra.mxu0 %v980_v21  ;;  %v1303_v21 = vld [vmem:[#allocation6 + $0x998] sm:$0xff]  ;;  %v1282_v7 = vld [vmem:[#allocation6 + $0x8f0] sm:$0xff] }
 0x275   :  { %2729 = vmatprep.subr.mxu1 %v1219_v8  ;;  %2752 = vmatprep.subr.mxu0 %v1315_v9  ;;  %v1283_v45 = vld [vmem:[#allocation6 + $0x8f8] sm:$0xff]  ;;  %v1442_v8 = vld [vmem:[#allocation6 + $0xdf0] sm:$0xff] }
 0x276   :  { %2730 = vmatpush2.msra.mxu1 %v1218_v14  ;;  %2753 = vmatpush1.msra.mxu0 %v1314_v23  ;;  %v1443_v6 = vld [vmem:[#allocation6 + $0xdf8] sm:$0xff]  ;;  %v1278_v23 = vld [vmem:[#allocation6 + $0x8d0] sm:$0xff] }
 0x277   :  { %2816 = vmatprep.mubr.f32.mxu0 %v985_v47  ;;  %2731 = vmatprep.subr.mxu1 %v1215_v27  ;;  %v1298_v47 = vld [vmem:[#allocation6 + $0x970] sm:$0xff]  ;;  %v1279_v9 = vld [vmem:[#allocation6 + $0x8d8] sm:$0xff] }
 0x278   :  { %2754 = vmatprep.subr.mxu0 %v1311_v28  ;;  %2732 = vmatpush2.msra.mxu1 %v1214_v33  ;;  %v1439_v14 = vld [vmem:[#allocation6 + $0xdd8] sm:$0xff]  ;;  %v1438_v27 = vld [vmem:[#allocation6 + $0xdd0] sm:$0xff] }
 0x279   :  { %2755 = vmatpush1.msra.mxu0 %v1310_v34  ;;  %2733 = vmatprep.subr.mxu1 %v1211_v38  ;;  %v1275_v28 = vld [vmem:[#allocation6 + $0x8b8] sm:$0xff]  ;;  %v1274_v34 = vld [vmem:[#allocation6 + $0x8b0] sm:$0xff] }
 0x27a   :  { %2756 = vmatprep.subr.mxu0 %v1307_v39  ;;  %2734 = vmatpush2.msra.mxu1 %v1210_v19  ;;  %v1435_v33 = vld [vmem:[#allocation6 + $0xdb8] sm:$0xff]  ;;  %v1434_v38 = vld [vmem:[#allocation6 + $0xdb0] sm:$0xff] }
 0x27b   :  { %2757 = vmatpush1.msra.mxu0 %v1306_v20  ;;  %2735 = vmatprep.subr.mxu1 %v1207_v17  ;;  %v1270_v39 = vld [vmem:[#allocation6 + $0x890] sm:$0xff]  ;;  %v1267_v20 = vld [vmem:[#allocation6 + $0x878] sm:$0xff] }
 0x27c   :  { %2758 = vmatprep.subr.mxu0 %v1303_v21  ;;  %2736 = vmatpush2.msra.mxu1 %v1206_v40  ;;  %v1430_v19 = vld [vmem:[#allocation6 + $0xd90] sm:$0xff]  ;;  %v1427_v17 = vld [vmem:[#allocation6 + $0xd78] sm:$0xff] }
 0x27d   :  { %2759 = vmatpush1.msra.mxu0 %v1302_v25  ;;  %2737 = vmatprep.subr.mxu1 %v1203_v52  ;;  %v1263_v21 = vld [vmem:[#allocation6 + $0x858] sm:$0xff]  ;;  %v1262_v25 = vld [vmem:[#allocation6 + $0x850] sm:$0xff] }
 0x27e   :  { %2760 = vmatprep.subr.mxu0 %v1299_v48  ;;  %2738 = vmatpush2.msra.mxu1 %v1202_v42  ;;  %v1423_v40 = vld [vmem:[#allocation6 + $0xd58] sm:$0xff]  ;;  %v1422_v52 = vld [vmem:[#allocation6 + $0xd50] sm:$0xff] }
 0x27f   :  { %2761 = vmatpush1.msra.mxu0 %v1298_v47  ;;  %2739 = vmatprep.subr.mxu1 %v1199_v51  ;;  %v1259_v48 = vld [vmem:[#allocation6 + $0x838] sm:$0xff]  ;;  %v1258_v47 = vld [vmem:[#allocation6 + $0x830] sm:$0xff] }
 0x280   :  { %2762 = vmatprep.subr.mxu0 %v1295_v54  ;;  %2740 = vmatpush2.msra.mxu1 %v1198_v57  ;;  %v1419_v42 = vld [vmem:[#allocation6 + $0xd38] sm:$0xff]  ;;  %v1418_v51 = vld [vmem:[#allocation6 + $0xd30] sm:$0xff] }
 0x281   :  { %2763 = vmatpush1.msra.mxu0 %v1294_v58  ;;  %2741 = vmatprep.subr.mxu1 %v1195_v60  ;;  %v1255_v54 = vld [vmem:[#allocation6 + $0x818] sm:$0xff]  ;;  %v1254_v58 = vld [vmem:[#allocation6 + $0x810] sm:$0xff] }
 0x282   :  { %2764 = vmatprep.subr.mxu0 %v1291_v18  ;;  %2742 = vmatpush2.msra.mxu1 %v1194_v55  ;;  %v1415_v57 = vld [vmem:[#allocation6 + $0xd18] sm:$0xff]  ;;  %v1414_v60 = vld [vmem:[#allocation6 + $0xd10] sm:$0xff] }
 0x283   :  { %2765 = vmatpush1.msra.mxu0 %v1290_v61  ;;  %2743 = vmatprep.subr.mxu1 %v1191_v32  ;;  %v1379_v18 = vld [vmem:[#allocation6 + $0xbf8] sm:$0xff]  ;;  %v1378_v61 = vld [vmem:[#allocation6 + $0xbf0] sm:$0xff] }
 0x284   :  { %2766 = vmatprep.subr.mxu0 %v1287_v26  ;;  %2744 = vmatpush2.msra.mxu1 %v1190_v63  ;;  %v1411_v55 = vld [vmem:[#allocation6 + $0xcf8] sm:$0xff]  ;;  %v1410_v32 = vld [vmem:[#allocation6 + $0xcf0] sm:$0xff] }
 0x285   :  { %2767 = vmatpush1.msra.mxu0 %v1286_v1  ;;  %2746 = vmatmul.mubr.f32.vlgmr.msra.gmra.mxu1 %v982_v53  ;;  %v1431_v53 = vld [vmem:[#allocation6 + $0xd98] sm:$0xff]  ;;  %v1374_v1 = vld [vmem:[#allocation6 + $0xbd0] sm:$0xff] }
 0x286   :  { %2768 = vmatprep.subr.mxu0 %v1283_v45  ;;  %2823 = vmatprep.subr.mxu1 %v1443_v6  ;;  %v1375_v26 = vld [vmem:[#allocation6 + $0xbd8] sm:$0xff]  ;;  %v1406_v45 = vld [vmem:[#allocation6 + $0xcd0] sm:$0xff] }
 0x287   :  { %2769 = vmatpush1.msra.mxu0 %v1282_v7  ;;  %2824 = vmatpush1.msra.mxu1 %v1442_v8  ;;  %v1407_v63 = vld [vmem:[#allocation6 + $0xcd8] sm:$0xff]  ;;  %v1370_v8 = vld [vmem:[#allocation6 + $0xbb0] sm:$0xff] }
 0x288   :  { %2887 = vmatprep.mubr.f32.mxu1 %v987_v12  ;;  %2770 = vmatprep.subr.mxu0 %v1279_v9  ;;  %v1426_v12 = vld [vmem:[#allocation6 + $0xd70] sm:$0xff]  ;;  %v1371_v6 = vld [vmem:[#allocation6 + $0xbb8] sm:$0xff] }
 0x289   :  { %2825 = vmatprep.subr.mxu1 %v1439_v14  ;;  %2771 = vmatpush1.msra.mxu0 %v1278_v23  ;;  %v1403_v7 = vld [vmem:[#allocation6 + $0xcb8] sm:$0xff]  ;;  %v1402_v9 = vld [vmem:[#allocation6 + $0xcb0] sm:$0xff] }
 0x28a   :  { %2826 = vmatpush1.msra.mxu1 %v1438_v27  ;;  %2772 = vmatprep.subr.mxu0 %v1275_v28  ;;  %v1367_v14 = vld [vmem:[#allocation6 + $0xb98] sm:$0xff]  ;;  %v1366_v27 = vld [vmem:[#allocation6 + $0xb90] sm:$0xff] }
 0x28b   :  { %2827 = vmatprep.subr.mxu1 %v1435_v33  ;;  %2773 = vmatpush1.msra.mxu0 %v1274_v34  ;;  %v1399_v23 = vld [vmem:[#allocation6 + $0xc98] sm:$0xff]  ;;  %v1398_v28 = vld [vmem:[#allocation6 + $0xc90] sm:$0xff] }
 0x28c   :  { %2828 = vmatpush1.msra.mxu1 %v1434_v38  ;;  %2774 = vmatprep.subr.mxu0 %v1271_v44  ;;  %v1363_v33 = vld [vmem:[#allocation6 + $0xb78] sm:$0xff]  ;;  %v1362_v38 = vld [vmem:[#allocation6 + $0xb70] sm:$0xff] }
 0x28d   :  { %2829 = vmatprep.subr.mxu1 %v1431_v53  ;;  %2775 = vmatpush1.msra.mxu0 %v1270_v39  ;;  %v1395_v34 = vld [vmem:[#allocation6 + $0xc78] sm:$0xff]  ;;  %v1394_v44 = vld [vmem:[#allocation6 + $0xc70] sm:$0xff] }
 0x28e   :  { %2830 = vmatpush1.msra.mxu1 %v1430_v19  ;;  %2776 = vmatprep.subr.mxu0 %v1267_v20  ;;  %v1359_v53 = vld [vmem:[#allocation6 + $0xb58] sm:$0xff]  ;;  %v1358_v19 = vld [vmem:[#allocation6 + $0xb50] sm:$0xff] }
 0x28f   :  { %2831 = vmatprep.subr.mxu1 %v1427_v17  ;;  %2777 = vmatpush1.msra.mxu0 %v1266_v36  ;;  %v1391_v39 = vld [vmem:[#allocation6 + $0xc58] sm:$0xff]  ;;  %v1390_v20 = vld [vmem:[#allocation6 + $0xc50] sm:$0xff] }
 0x290   :  { %2832 = vmatpush1.msra.mxu1 %v1426_v12  ;;  %2778 = vmatprep.subr.mxu0 %v1263_v21  ;;  %v1355_v17 = vld [vmem:[#allocation6 + $0xb38] sm:$0xff]  ;;  %v1354_v12 = vld [vmem:[#allocation6 + $0xb30] sm:$0xff] }
 0x291   :  { %2833 = vmatprep.subr.mxu1 %v1423_v40  ;;  %2779 = vmatpush1.msra.mxu0 %v1262_v25  ;;  %v1387_v36 = vld [vmem:[#allocation6 + $0xc38] sm:$0xff]  ;;  %v1386_v21 = vld [vmem:[#allocation6 + $0xc30] sm:$0xff] }
 0x292   :  { %2834 = vmatpush1.msra.mxu1 %v1422_v52  ;;  %2780 = vmatprep.subr.mxu0 %v1259_v48  ;;  %v1351_v40 = vld [vmem:[#allocation6 + $0xb18] sm:$0xff]  ;;  %v1350_v52 = vld [vmem:[#allocation6 + $0xb10] sm:$0xff] }
 0x293   :  { %2835 = vmatprep.subr.mxu1 %v1419_v42  ;;  %2781 = vmatpush1.msra.mxu0 %v1258_v47  ;;  %v1383_v25 = vld [vmem:[#allocation6 + $0xc18] sm:$0xff]  ;;  %v1382_v48 = vld [vmem:[#allocation6 + $0xc10] sm:$0xff] }
 0x294   :  { %2836 = vmatpush1.msra.mxu1 %v1418_v51  ;;  %2782 = vmatprep.subr.mxu0 %v1255_v54  ;;  %v1347_v42 = vld [vmem:[#allocation6 + $0xaf8] sm:$0xff]  ;;  %v1346_v51 = vld [vmem:[#allocation6 + $0xaf0] sm:$0xff] }
 0x295   :  { %2837 = vmatprep.subr.mxu1 %v1415_v57  ;;  %2783 = vmatpush1.msra.mxu0 %v1254_v58  ;;  %v1507_v47 = vld [vmem:[#allocation6 + $0xff8] sm:$0xff]  ;;  %v1506_v54 = vld [vmem:[#allocation6 + $0xff0] sm:$0xff] }
 0x296   :  { %2838 = vmatpush1.msra.mxu1 %v1414_v60  ;;  %2784 = vmatprep.subr.mxu0 %v1379_v18  ;;  %v1343_v57 = vld [vmem:[#allocation6 + $0xad8] sm:$0xff]  ;;  %v1342_v60 = vld [vmem:[#allocation6 + $0xad0] sm:$0xff] }
 0x297   :  { %2839 = vmatprep.subr.mxu1 %v1411_v55  ;;  %2785 = vmatpush2.msra.mxu0 %v1378_v61  ;;  %v1503_v58 = vld [vmem:[#allocation6 + $0xfd8] sm:$0xff]  ;;  %v1502_v18 = vld [vmem:[#allocation6 + $0xfd0] sm:$0xff] }
 0x298   :  { %2840 = vmatpush1.msra.mxu1 %v1410_v32  ;;  %2786 = vmatprep.subr.mxu0 %v1375_v26  ;;  %v1339_v55 = vld [vmem:[#allocation6 + $0xab8] sm:$0xff]  ;;  %v1338_v32 = vld [vmem:[#allocation6 + $0xab0] sm:$0xff] }
 0x299   :  { %2841 = vmatprep.subr.mxu1 %v1407_v63  ;;  %2787 = vmatpush2.msra.mxu0 %v1374_v1  ;;  %v1499_v61 = vld [vmem:[#allocation6 + $0xfb8] sm:$0xff]  ;;  %v1498_v26 = vld [vmem:[#allocation6 + $0xfb0] sm:$0xff] }
 0x29a   :  { %2842 = vmatpush1.msra.mxu1 %v1406_v45  ;;  %2788 = vmatprep.subr.mxu0 %v1371_v6  ;;  %v1335_v63 = vld [vmem:[#allocation6 + $0xa98] sm:$0xff]  ;;  %v1334_v45 = vld [vmem:[#allocation6 + $0xa90] sm:$0xff] }
 0x29b   :  { %2843 = vmatprep.subr.mxu1 %v1403_v7  ;;  %2789 = vmatpush2.msra.mxu0 %v1370_v8  ;;  %v1495_v1 = vld [vmem:[#allocation6 + $0xf98] sm:$0xff]  ;;  %v1494_v6 = vld [vmem:[#allocation6 + $0xf90] sm:$0xff] }
 0x29c   :  { %2844 = vmatpush1.msra.mxu1 %v1402_v9  ;;  %2790 = vmatprep.subr.mxu0 %v1367_v14  ;;  %v1331_v7 = vld [vmem:[#allocation6 + $0xa78] sm:$0xff]  ;;  %v1330_v9 = vld [vmem:[#allocation6 + $0xa70] sm:$0xff] }
 0x29d   :  { %2845 = vmatprep.subr.mxu1 %v1399_v23  ;;  %2791 = vmatpush2.msra.mxu0 %v1366_v27  ;;  %v1491_v8 = vld [vmem:[#allocation6 + $0xf78] sm:$0xff]  ;;  %v1490_v14 = vld [vmem:[#allocation6 + $0xf70] sm:$0xff] }
 0x29e   :  { %2846 = vmatpush1.msra.mxu1 %v1398_v28  ;;  %2792 = vmatprep.subr.mxu0 %v1363_v33  ;;  %v1327_v23 = vld [vmem:[#allocation6 + $0xa58] sm:$0xff]  ;;  %v1326_v28 = vld [vmem:[#allocation6 + $0xa50] sm:$0xff] }
 0x29f   :  { %2847 = vmatprep.subr.mxu1 %v1395_v34  ;;  %2793 = vmatpush2.msra.mxu0 %v1362_v38  ;;  %v1487_v27 = vld [vmem:[#allocation6 + $0xf58] sm:$0xff]  ;;  %v1486_v33 = vld [vmem:[#allocation6 + $0xf50] sm:$0xff] }
 0x2a0   :  { %2848 = vmatpush1.msra.mxu1 %v1394_v44  ;;  %2794 = vmatprep.subr.mxu0 %v1359_v53  ;;  %v1323_v34 = vld [vmem:[#allocation6 + $0xa38] sm:$0xff]  ;;  %v1322_v44 = vld [vmem:[#allocation6 + $0xa30] sm:$0xff] }
 0x2a1   :  { %2849 = vmatprep.subr.mxu1 %v1391_v39  ;;  %2795 = vmatpush2.msra.mxu0 %v1358_v19  ;;  %v1483_v38 = vld [vmem:[#allocation6 + $0xf38] sm:$0xff]  ;;  %v1482_v53 = vld [vmem:[#allocation6 + $0xf30] sm:$0xff] }
 0x2a2   :  { %2850 = vmatpush1.msra.mxu1 %v1390_v20  ;;  %2796 = vmatprep.subr.mxu0 %v1355_v17  ;;  %v1319_v39 = vld [vmem:[#allocation6 + $0xa18] sm:$0xff]  ;;  %v1318_v20 = vld [vmem:[#allocation6 + $0xa10] sm:$0xff] }
 0x2a3   :  { %2851 = vmatprep.subr.mxu1 %v1387_v36  ;;  %2797 = vmatpush2.msra.mxu0 %v1354_v12  ;;  %v1479_v19 = vld [vmem:[#allocation6 + $0xf18] sm:$0xff]  ;;  %v1478_v17 = vld [vmem:[#allocation6 + $0xf10] sm:$0xff] }
 0x2a4   :  { %2852 = vmatpush1.msra.mxu1 %v1386_v21  ;;  %2798 = vmatprep.subr.mxu0 %v1351_v40  ;;  %v1475_v36 = vld [vmem:[#allocation6 + $0xef8] sm:$0xff]  ;;  %v1474_v21 = vld [vmem:[#allocation6 + $0xef0] sm:$0xff] }
 0x2a5   :  { %2853 = vmatprep.subr.mxu1 %v1383_v25  ;;  %2799 = vmatpush2.msra.mxu0 %v1350_v52  ;;  %v1571_v12 = vld [vmem:[#allocation6 + $0x11f8] sm:$0xff]  ;;  %v1570_v40 = vld [vmem:[#allocation6 + $0x11f0] sm:$0xff] }
 0x2a6   :  { %2854 = vmatpush1.msra.mxu1 %v1382_v48  ;;  %2800 = vmatprep.subr.mxu0 %v1347_v42  ;;  %v1471_v25 = vld [vmem:[#allocation6 + $0xed8] sm:$0xff]  ;;  %v1470_v48 = vld [vmem:[#allocation6 + $0xed0] sm:$0xff] }
 0x2a7   :  { %2855 = vmatprep.subr.mxu1 %v1507_v47  ;;  %2801 = vmatpush2.msra.mxu0 %v1346_v51  ;;  %v1567_v52 = vld [vmem:[#allocation6 + $0x11d8] sm:$0xff]  ;;  %v1566_v42 = vld [vmem:[#allocation6 + $0x11d0] sm:$0xff] }
 0x2a8   :  { %2856 = vmatpush2.msra.mxu1 %v1506_v54  ;;  %2802 = vmatprep.subr.mxu0 %v1343_v57  ;;  %v1467_v47 = vld [vmem:[#allocation6 + $0xeb8] sm:$0xff]  ;;  %v1466_v54 = vld [vmem:[#allocation6 + $0xeb0] sm:$0xff] }
 0x2a9   :  { %2857 = vmatprep.subr.mxu1 %v1503_v58  ;;  %2803 = vmatpush2.msra.mxu0 %v1342_v60  ;;  %v1563_v51 = vld [vmem:[#allocation6 + $0x11b8] sm:$0xff]  ;;  %v1562_v57 = vld [vmem:[#allocation6 + $0x11b0] sm:$0xff] }
 0x2aa   :  { %2858 = vmatpush2.msra.mxu1 %v1502_v18  ;;  %2804 = vmatprep.subr.mxu0 %v1339_v55  ;;  %v1462_v58 = vld [vmem:[#allocation6 + $0xe90] sm:$0xff]  ;;  %v1459_v18 = vld [vmem:[#allocation6 + $0xe78] sm:$0xff] }
 0x2ab   :  { %2859 = vmatprep.subr.mxu1 %v1499_v61  ;;  %2805 = vmatpush2.msra.mxu0 %v1338_v32  ;;  %v1558_v60 = vld [vmem:[#allocation6 + $0x1190] sm:$0xff]  ;;  %v1555_v55 = vld [vmem:[#allocation6 + $0x1178] sm:$0xff] }
 0x2ac   :  { %2860 = vmatpush2.msra.mxu1 %v1498_v26  ;;  %2806 = vmatprep.subr.mxu0 %v1335_v63  ;;  %v1455_v61 = vld [vmem:[#allocation6 + $0xe58] sm:$0xff]  ;;  %v1454_v26 = vld [vmem:[#allocation6 + $0xe50] sm:$0xff] }
 0x2ad   :  { %2861 = vmatprep.subr.mxu1 %v1495_v1  ;;  %2807 = vmatpush2.msra.mxu0 %v1334_v45  ;;  %v1551_v32 = vld [vmem:[#allocation6 + $0x1158] sm:$0xff]  ;;  %v1550_v63 = vld [vmem:[#allocation6 + $0x1150] sm:$0xff] }
 0x2ae   :  { %2862 = vmatpush2.msra.mxu1 %v1494_v6  ;;  %2808 = vmatprep.subr.mxu0 %v1331_v7  ;;  %v1451_v1 = vld [vmem:[#allocation6 + $0xe38] sm:$0xff]  ;;  %v1450_v6 = vld [vmem:[#allocation6 + $0xe30] sm:$0xff] }
 0x2af   :  { %2863 = vmatprep.subr.mxu1 %v1491_v8  ;;  %2809 = vmatpush2.msra.mxu0 %v1330_v9  ;;  %v1547_v45 = vld [vmem:[#allocation6 + $0x1138] sm:$0xff]  ;;  %v1546_v7 = vld [vmem:[#allocation6 + $0x1130] sm:$0xff] }
 0x2b0   :  { %2864 = vmatpush2.msra.mxu1 %v1490_v14  ;;  %2810 = vmatprep.subr.mxu0 %v1327_v23  ;;  %v1447_v8 = vld [vmem:[#allocation6 + $0xe18] sm:$0xff]  ;;  %v1446_v14 = vld [vmem:[#allocation6 + $0xe10] sm:$0xff] }
 0x2b1   :  { %2865 = vmatprep.subr.mxu1 %v1487_v27  ;;  %2811 = vmatpush2.msra.mxu0 %v1326_v28  ;;  %v1543_v9 = vld [vmem:[#allocation6 + $0x1118] sm:$0xff]  ;;  %v1542_v23 = vld [vmem:[#allocation6 + $0x1110] sm:$0xff] }
 0x2b2   :  { %2866 = vmatpush2.msra.mxu1 %v1486_v33  ;;  %2812 = vmatprep.subr.mxu0 %v1323_v34  ;;  %v1539_v27 = vld [vmem:[#allocation6 + $0x10f8] sm:$0xff]  ;;  %v1538_v33 = vld [vmem:[#allocation6 + $0x10f0] sm:$0xff] }
 0x2b3   :  { %2867 = vmatprep.subr.mxu1 %v1483_v38  ;;  %2813 = vmatpush2.msra.mxu0 %v1322_v44  ;;  %v1699_v28 = vld [vmem:[#allocation6 + $0x15f8] sm:$0xff]  ;;  %v1698_v34 = vld [vmem:[#allocation6 + $0x15f0] sm:$0xff] }
 0x2b4   :  { %2868 = vmatpush2.msra.mxu1 %v1482_v53  ;;  %2814 = vmatprep.subr.mxu0 %v1319_v39  ;;  %v1535_v38 = vld [vmem:[#allocation6 + $0x10d8] sm:$0xff]  ;;  %v1534_v53 = vld [vmem:[#allocation6 + $0x10d0] sm:$0xff] }
 0x2b5   :  { %2869 = vmatprep.subr.mxu1 %v1479_v19  ;;  %2815 = vmatpush2.msra.mxu0 %v1318_v20  ;;  %v1695_v44 = vld [vmem:[#allocation6 + $0x15d8] sm:$0xff]  ;;  %v1694_v39 = vld [vmem:[#allocation6 + $0x15d0] sm:$0xff] }
 0x2b6   :  { %2870 = vmatpush2.msra.mxu1 %v1478_v17  ;;  %2817 = vmatmul.mubr.f32.vlgmr.msra.gmra.mxu0 %v984_v59  ;;  %v1559_v59 = vld [vmem:[#allocation6 + $0x1198] sm:$0xff]  ;;  %v1530_v17 = vld [vmem:[#allocation6 + $0x10b0] sm:$0xff] }
 0x2b7   :  { %2871 = vmatprep.subr.mxu1 %v1475_v36  ;;  %2894 = vmatprep.subr.mxu0 %v1571_v12  ;;  %v1531_v19 = vld [vmem:[#allocation6 + $0x10b8] sm:$0xff]  ;;  %v1690_v36 = vld [vmem:[#allocation6 + $0x15b0] sm:$0xff] }
 0x2b8   :  { %2872 = vmatpush2.msra.mxu1 %v1474_v21  ;;  %2895 = vmatpush1.msra.mxu0 %v1570_v40  ;;  %v1691_v20 = vld [vmem:[#allocation6 + $0x15b8] sm:$0xff]  ;;  %v1526_v12 = vld [vmem:[#allocation6 + $0x1090] sm:$0xff] }
 0x2b9   :  { %2958 = vmatprep.mubr.f32.mxu0 %v989_v37  ;;  %2873 = vmatprep.subr.mxu1 %v1471_v25  ;;  %v1554_v37 = vld [vmem:[#allocation6 + $0x1170] sm:$0xff]  ;;  %v1523_v40 = vld [vmem:[#allocation6 + $0x1078] sm:$0xff] }
 0x2ba   :  { %2896 = vmatprep.subr.mxu0 %v1567_v52  ;;  %2874 = vmatpush2.msra.mxu1 %v1470_v48  ;;  %v1686_v21 = vld [vmem:[#allocation6 + $0x1590] sm:$0xff]  ;;  %v1683_v25 = vld [vmem:[#allocation6 + $0x1578] sm:$0xff] }
 0x2bb   :  { %2897 = vmatpush1.msra.mxu0 %v1566_v42  ;;  %2875 = vmatprep.subr.mxu1 %v1467_v47  ;;  %v1519_v52 = vld [vmem:[#allocation6 + $0x1058] sm:$0xff]  ;;  %v1518_v42 = vld [vmem:[#allocation6 + $0x1050] sm:$0xff] }
 0x2bc   :  { %2898 = vmatprep.subr.mxu0 %v1563_v51  ;;  %2876 = vmatpush2.msra.mxu1 %v1466_v54  ;;  %v1679_v48 = vld [vmem:[#allocation6 + $0x1558] sm:$0xff]  ;;  %v1678_v47 = vld [vmem:[#allocation6 + $0x1550] sm:$0xff] }
 0x2bd   :  { %2899 = vmatpush1.msra.mxu0 %v1562_v57  ;;  %2877 = vmatprep.subr.mxu1 %v1463_v46  ;;  %v1515_v51 = vld [vmem:[#allocation6 + $0x1038] sm:$0xff]  ;;  %v1514_v57 = vld [vmem:[#allocation6 + $0x1030] sm:$0xff] }
 0x2be   :  { %2900 = vmatprep.subr.mxu0 %v1559_v59  ;;  %2878 = vmatpush2.msra.mxu1 %v1462_v58  ;;  %v1675_v54 = vld [vmem:[#allocation6 + $0x1538] sm:$0xff]  ;;  %v1674_v46 = vld [vmem:[#allocation6 + $0x1530] sm:$0xff] }
 0x2bf   :  { %2901 = vmatpush1.msra.mxu0 %v1558_v60  ;;  %2879 = vmatprep.subr.mxu1 %v1459_v18  ;;  %v1511_v59 = vld [vmem:[#allocation6 + $0x1018] sm:$0xff]  ;;  %v1510_v60 = vld [vmem:[#allocation6 + $0x1010] sm:$0xff] }
 0x2c0   :  { %2902 = vmatprep.subr.mxu0 %v1555_v55  ;;  %2880 = vmatpush2.msra.mxu1 %v1458_v15  ;;  %v1671_v58 = vld [vmem:[#allocation6 + $0x1518] sm:$0xff]  ;;  %v1670_v18 = vld [vmem:[#allocation6 + $0x1510] sm:$0xff] }
 0x2c1   :  { %2903 = vmatpush1.msra.mxu0 %v1554_v37  ;;  %2881 = vmatprep.subr.mxu1 %v1455_v61  ;;  %v1635_v55 = vld [vmem:[#allocation6 + $0x13f8] sm:$0xff]  ;;  %v1634_v37 = vld [vmem:[#allocation6 + $0x13f0] sm:$0xff] }
 0x2c2   :  { %2904 = vmatprep.subr.mxu0 %v1551_v32  ;;  %2882 = vmatpush2.msra.mxu1 %v1454_v26  ;;  %v1667_v15 = vld [vmem:[#allocation6 + $0x14f8] sm:$0xff]  ;;  %v1666_v61 = vld [vmem:[#allocation6 + $0x14f0] sm:$0xff] }
 0x2c3   :  { %2905 = vmatpush1.msra.mxu0 %v1550_v63  ;;  %2883 = vmatprep.subr.mxu1 %v1451_v1  ;;  %v1631_v32 = vld [vmem:[#allocation6 + $0x13d8] sm:$0xff]  ;;  %v1630_v63 = vld [vmem:[#allocation6 + $0x13d0] sm:$0xff] }
 0x2c4   :  { %2906 = vmatprep.subr.mxu0 %v1547_v45  ;;  %2884 = vmatpush2.msra.mxu1 %v1450_v6  ;;  %v1663_v26 = vld [vmem:[#allocation6 + $0x14d8] sm:$0xff]  ;;  %v1662_v1 = vld [vmem:[#allocation6 + $0x14d0] sm:$0xff] }
 0x2c5   :  { %2907 = vmatpush1.msra.mxu0 %v1546_v7  ;;  %2885 = vmatprep.subr.mxu1 %v1447_v8  ;;  %v1627_v45 = vld [vmem:[#allocation6 + $0x13b8] sm:$0xff]  ;;  %v1626_v7 = vld [vmem:[#allocation6 + $0x13b0] sm:$0xff] }
 0x2c6   :  { %2908 = vmatprep.subr.mxu0 %v1543_v9  ;;  %2886 = vmatpush2.msra.mxu1 %v1446_v14  ;;  %v1659_v6 = vld [vmem:[#allocation6 + $0x14b8] sm:$0xff]  ;;  %v1658_v8 = vld [vmem:[#allocation6 + $0x14b0] sm:$0xff] }
 0x2c7   :  { %2909 = vmatpush1.msra.mxu0 %v1542_v23  ;;  %2888 = vmatmul.mubr.f32.vlgmr.msra.gmra.mxu1 %v986_v22  ;;  %v1687_v22 = vld [vmem:[#allocation6 + $0x1598] sm:$0xff]  ;;  %v1622_v23 = vld [vmem:[#allocation6 + $0x1390] sm:$0xff] }
 0x2c8   :  { %2910 = vmatprep.subr.mxu0 %v1539_v27  ;;  %2965 = vmatprep.subr.mxu1 %v1699_v28  ;;  %v1623_v9 = vld [vmem:[#allocation6 + $0x1398] sm:$0xff]  ;;  %v1654_v27 = vld [vmem:[#allocation6 + $0x1490] sm:$0xff] }
 0x2c9   :  { %2911 = vmatpush1.msra.mxu0 %v1538_v33  ;;  %2966 = vmatpush1.msra.mxu1 %v1698_v34  ;;  %v1655_v14 = vld [vmem:[#allocation6 + $0x1498] sm:$0xff]  ;;  %v1618_v34 = vld [vmem:[#allocation6 + $0x1370] sm:$0xff] }
 0x2ca   :  { %3029 = vmatprep.mubr.f32.mxu1 %v991_v4  ;;  %2912 = vmatprep.subr.mxu0 %v1535_v38  ;;  %v1682_v4 = vld [vmem:[#allocation6 + $0x1570] sm:$0xff]  ;;  %v1619_v28 = vld [vmem:[#allocation6 + $0x1378] sm:$0xff] }
 0x2cb   :  { %2967 = vmatprep.subr.mxu1 %v1695_v44  ;;  %2913 = vmatpush1.msra.mxu0 %v1534_v53  ;;  %v1651_v33 = vld [vmem:[#allocation6 + $0x1478] sm:$0xff]  ;;  %v1650_v38 = vld [vmem:[#allocation6 + $0x1470] sm:$0xff] }
 0x2cc   :  { %2968 = vmatpush1.msra.mxu1 %v1694_v39  ;;  %2914 = vmatprep.subr.mxu0 %v1531_v19  ;;  %v1615_v44 = vld [vmem:[#allocation6 + $0x1358] sm:$0xff]  ;;  %v1614_v39 = vld [vmem:[#allocation6 + $0x1350] sm:$0xff] }
 0x2cd   :  { %2969 = vmatprep.subr.mxu1 %v1691_v20  ;;  %2915 = vmatpush1.msra.mxu0 %v1530_v17  ;;  %v1647_v53 = vld [vmem:[#allocation6 + $0x1458] sm:$0xff]  ;;  %v1646_v19 = vld [vmem:[#allocation6 + $0x1450] sm:$0xff] }
 0x2ce   :  { %2970 = vmatpush1.msra.mxu1 %v1690_v36  ;;  %2916 = vmatprep.subr.mxu0 %v1527_v50  ;;  %v1611_v20 = vld [vmem:[#allocation6 + $0x1338] sm:$0xff]  ;;  %v1610_v36 = vld [vmem:[#allocation6 + $0x1330] sm:$0xff] }
 0x2cf   :  { %2971 = vmatprep.subr.mxu1 %v1687_v22  ;;  %2917 = vmatpush1.msra.mxu0 %v1526_v12  ;;  %v1643_v17 = vld [vmem:[#allocation6 + $0x1438] sm:$0xff]  ;;  %v1642_v50 = vld [vmem:[#allocation6 + $0x1430] sm:$0xff] }
 0x2d0   :  { %2972 = vmatpush1.msra.mxu1 %v1686_v21  ;;  %2918 = vmatprep.subr.mxu0 %v1523_v40  ;;  %v1607_v22 = vld [vmem:[#allocation6 + $0x1318] sm:$0xff]  ;;  %v1606_v21 = vld [vmem:[#allocation6 + $0x1310] sm:$0xff] }
 0x2d1   :  { %2973 = vmatprep.subr.mxu1 %v1683_v25  ;;  %2919 = vmatpush1.msra.mxu0 %v1522_v56  ;;  %v1639_v12 = vld [vmem:[#allocation6 + $0x1418] sm:$0xff]  ;;  %v1638_v40 = vld [vmem:[#allocation6 + $0x1410] sm:$0xff] }
 0x2d2   :  { %2974 = vmatpush1.msra.mxu1 %v1682_v4  ;;  %2920 = vmatprep.subr.mxu0 %v1519_v52  ;;  %v1603_v25 = vld [vmem:[#allocation6 + $0x12f8] sm:$0xff]  ;;  %v1602_v4 = vld [vmem:[#allocation6 + $0x12f0] sm:$0xff] }
 0x2d3   :  { %2975 = vmatprep.subr.mxu1 %v1679_v48  ;;  %2921 = vmatpush1.msra.mxu0 %v1518_v42  ;;  %v1763_v56 = vld [vmem:[#allocation6 + $0x17f8] sm:$0xff]  ;;  %v1762_v52 = vld [vmem:[#allocation6 + $0x17f0] sm:$0xff] }
 0x2d4   :  { %2976 = vmatpush1.msra.mxu1 %v1678_v47  ;;  %2922 = vmatprep.subr.mxu0 %v1515_v51  ;;  %v1599_v48 = vld [vmem:[#allocation6 + $0x12d8] sm:$0xff]  ;;  %v1598_v47 = vld [vmem:[#allocation6 + $0x12d0] sm:$0xff] }
 0x2d5   :  { %2977 = vmatprep.subr.mxu1 %v1675_v54  ;;  %2923 = vmatpush1.msra.mxu0 %v1514_v57  ;;  %v1759_v42 = vld [vmem:[#allocation6 + $0x17d8] sm:$0xff]  ;;  %v1758_v51 = vld [vmem:[#allocation6 + $0x17d0] sm:$0xff] }
 0x2d6   :  { %2978 = vmatpush1.msra.mxu1 %v1674_v46  ;;  %2924 = vmatprep.subr.mxu0 %v1511_v59  ;;  %v1595_v54 = vld [vmem:[#allocation6 + $0x12b8] sm:$0xff]  ;;  %v1594_v46 = vld [vmem:[#allocation6 + $0x12b0] sm:$0xff] }
 0x2d7   :  { %2979 = vmatprep.subr.mxu1 %v1671_v58  ;;  %2925 = vmatpush1.msra.mxu0 %v1510_v60  ;;  %v1755_v57 = vld [vmem:[#allocation6 + $0x17b8] sm:$0xff]  ;;  %v1754_v59 = vld [vmem:[#allocation6 + $0x17b0] sm:$0xff] }
 0x2d8   :  { %2980 = vmatpush1.msra.mxu1 %v1670_v18  ;;  %2926 = vmatprep.subr.mxu0 %v1635_v55  ;;  %v1591_v58 = vld [vmem:[#allocation6 + $0x1298] sm:$0xff]  ;;  %v1590_v18 = vld [vmem:[#allocation6 + $0x1290] sm:$0xff] }
 0x2d9   :  { %2981 = vmatprep.subr.mxu1 %v1667_v15  ;;  %2927 = vmatpush2.msra.mxu0 %v1634_v37  ;;  %v1751_v60 = vld [vmem:[#allocation6 + $0x1798] sm:$0xff]  ;;  %v1750_v55 = vld [vmem:[#allocation6 + $0x1790] sm:$0xff] }
 0x2da   :  { %2982 = vmatpush1.msra.mxu1 %v1666_v61  ;;  %2928 = vmatprep.subr.mxu0 %v1631_v32  ;;  %v1587_v15 = vld [vmem:[#allocation6 + $0x1278] sm:$0xff]  ;;  %v1586_v61 = vld [vmem:[#allocation6 + $0x1270] sm:$0xff] }
 0x2db   :  { %2983 = vmatprep.subr.mxu1 %v1663_v26  ;;  %2929 = vmatpush2.msra.mxu0 %v1630_v63  ;;  %v1747_v37 = vld [vmem:[#allocation6 + $0x1778] sm:$0xff]  ;;  %v1746_v32 = vld [vmem:[#allocation6 + $0x1770] sm:$0xff] }
 0x2dc   :  { %2984 = vmatpush1.msra.mxu1 %v1662_v1  ;;  %2930 = vmatprep.subr.mxu0 %v1627_v45  ;;  %v1583_v26 = vld [vmem:[#allocation6 + $0x1258] sm:$0xff]  ;;  %v1582_v1 = vld [vmem:[#allocation6 + $0x1250] sm:$0xff] }
 0x2dd   :  { %2985 = vmatprep.subr.mxu1 %v1659_v6  ;;  %2931 = vmatpush2.msra.mxu0 %v1626_v7  ;;  %v1743_v63 = vld [vmem:[#allocation6 + $0x1758] sm:$0xff]  ;;  %v1742_v45 = vld [vmem:[#allocation6 + $0x1750] sm:$0xff] }
 0x2de   :  { %2986 = vmatpush1.msra.mxu1 %v1658_v8  ;;  %2932 = vmatprep.subr.mxu0 %v1623_v9  ;;  %v1579_v6 = vld [vmem:[#allocation6 + $0x1238] sm:$0xff]  ;;  %v1578_v8 = vld [vmem:[#allocation6 + $0x1230] sm:$0xff] }
 0x2df   :  { %2987 = vmatprep.subr.mxu1 %v1655_v14  ;;  %2933 = vmatpush2.msra.mxu0 %v1622_v23  ;;  %v1739_v7 = vld [vmem:[#allocation6 + $0x1738] sm:$0xff]  ;;  %v1738_v9 = vld [vmem:[#allocation6 + $0x1730] sm:$0xff] }
 0x2e0   :  { %2988 = vmatpush1.msra.mxu1 %v1654_v27  ;;  %2934 = vmatprep.subr.mxu0 %v1619_v28  ;;  %v1575_v14 = vld [vmem:[#allocation6 + $0x1218] sm:$0xff]  ;;  %v1574_v27 = vld [vmem:[#allocation6 + $0x1210] sm:$0xff] }
 0x2e1   :  { %2989 = vmatprep.subr.mxu1 %v1651_v33  ;;  %2935 = vmatpush2.msra.mxu0 %v1618_v34  ;;  %v1735_v23 = vld [vmem:[#allocation6 + $0x1718] sm:$0xff]  ;;  %v1734_v28 = vld [vmem:[#allocation6 + $0x1710] sm:$0xff] }
 0x2e2   :  { %2990 = vmatpush1.msra.mxu1 %v1650_v38  ;;  %2936 = vmatprep.subr.mxu0 %v1615_v44  ;;  %v1731_v33 = vld [vmem:[#allocation6 + $0x16f8] sm:$0xff]  ;;  %v1730_v38 = vld [vmem:[#allocation6 + $0x16f0] sm:$0xff] }
 0x2e3   :  { %2991 = vmatprep.subr.mxu1 %v1647_v53  ;;  %2937 = vmatpush2.msra.mxu0 %v1614_v39  ;;  %v1827_v34 = vld [vmem:[#allocation6 + $0x19f8] sm:$0xff]  ;;  %v1826_v44 = vld [vmem:[#allocation6 + $0x19f0] sm:$0xff] }
 0x2e4   :  { %2992 = vmatpush1.msra.mxu1 %v1646_v19  ;;  %2938 = vmatprep.subr.mxu0 %v1611_v20  ;;  %v1727_v53 = vld [vmem:[#allocation6 + $0x16d8] sm:$0xff]  ;;  %v1726_v19 = vld [vmem:[#allocation6 + $0x16d0] sm:$0xff] }
 0x2e5   :  { %2993 = vmatprep.subr.mxu1 %v1643_v17  ;;  %2939 = vmatpush2.msra.mxu0 %v1610_v36  ;;  %v1823_v39 = vld [vmem:[#allocation6 + $0x19d8] sm:$0xff]  ;;  %v1822_v20 = vld [vmem:[#allocation6 + $0x19d0] sm:$0xff] }
 0x2e6   :  { %2994 = vmatpush1.msra.mxu1 %v1642_v50  ;;  %2940 = vmatprep.subr.mxu0 %v1607_v22  ;;  %v1723_v17 = vld [vmem:[#allocation6 + $0x16b8] sm:$0xff]  ;;  %v1722_v50 = vld [vmem:[#allocation6 + $0x16b0] sm:$0xff] }
 0x2e7   :  { %2995 = vmatprep.subr.mxu1 %v1639_v12  ;;  %2941 = vmatpush2.msra.mxu0 %v1606_v21  ;;  %v1819_v36 = vld [vmem:[#allocation6 + $0x19b8] sm:$0xff]  ;;  %v1818_v22 = vld [vmem:[#allocation6 + $0x19b0] sm:$0xff] }
 0x2e8   :  { %2996 = vmatpush1.msra.mxu1 %v1638_v40  ;;  %2942 = vmatprep.subr.mxu0 %v1603_v25  ;;  %v1718_v12 = vld [vmem:[#allocation6 + $0x1690] sm:$0xff]  ;;  %v1715_v40 = vld [vmem:[#allocation6 + $0x1678] sm:$0xff] }
 0x2e9   :  { %2997 = vmatprep.subr.mxu1 %v1763_v56  ;;  %2943 = vmatpush2.msra.mxu0 %v1602_v4  ;;  %v1814_v21 = vld [vmem:[#allocation6 + $0x1990] sm:$0xff]  ;;  %v1811_v25 = vld [vmem:[#allocation6 + $0x1978] sm:$0xff] }
 0x2ea   :  { %2998 = vmatpush2.msra.mxu1 %v1762_v52  ;;  %2944 = vmatprep.subr.mxu0 %v1599_v48  ;;  %v1711_v56 = vld [vmem:[#allocation6 + $0x1658] sm:$0xff]  ;;  %v1710_v52 = vld [vmem:[#allocation6 + $0x1650] sm:$0xff] }
 0x2eb   :  { %2999 = vmatprep.subr.mxu1 %v1759_v42  ;;  %2945 = vmatpush2.msra.mxu0 %v1598_v47  ;;  %v1807_v4 = vld [vmem:[#allocation6 + $0x1958] sm:$0xff]  ;;  %v1806_v48 = vld [vmem:[#allocation6 + $0x1950] sm:$0xff] }
 0x2ec   :  { %3000 = vmatpush2.msra.mxu1 %v1758_v51  ;;  %2946 = vmatprep.subr.mxu0 %v1595_v54  ;;  %v1707_v42 = vld [vmem:[#allocation6 + $0x1638] sm:$0xff]  ;;  %v1706_v51 = vld [vmem:[#allocation6 + $0x1630] sm:$0xff] }
 0x2ed   :  { %3001 = vmatprep.subr.mxu1 %v1755_v57  ;;  %2947 = vmatpush2.msra.mxu0 %v1594_v46  ;;  %v1803_v47 = vld [vmem:[#allocation6 + $0x1938] sm:$0xff]  ;;  %v1802_v54 = vld [vmem:[#allocation6 + $0x1930] sm:$0xff] }
 0x2ee   :  { %3002 = vmatpush2.msra.mxu1 %v1754_v59  ;;  %2948 = vmatprep.subr.mxu0 %v1591_v58  ;;  %v1703_v57 = vld [vmem:[#allocation6 + $0x1618] sm:$0xff]  ;;  %v1702_v59 = vld [vmem:[#allocation6 + $0x1610] sm:$0xff] }
 0x2ef   :  { %3003 = vmatprep.subr.mxu1 %v1751_v60  ;;  %2949 = vmatpush2.msra.mxu0 %v1590_v18  ;;  %v1799_v46 = vld [vmem:[#allocation6 + $0x1918] sm:$0xff]  ;;  %v1798_v58 = vld [vmem:[#allocation6 + $0x1910] sm:$0xff] }
 0x2f0   :  { %3004 = vmatpush2.msra.mxu1 %v1750_v55  ;;  %2950 = vmatprep.subr.mxu0 %v1587_v15  ;;  %v1795_v60 = vld [vmem:[#allocation6 + $0x18f8] sm:$0xff]  ;;  %v1794_v55 = vld [vmem:[#allocation6 + $0x18f0] sm:$0xff] }
 0x2f1   :  { %3005 = vmatprep.subr.mxu1 %v1747_v37  ;;  %2951 = vmatpush2.msra.mxu0 %v1586_v61  ;;  %v1955_v18 = vld [vmem:[#allocation6 + $0x1df8] sm:$0xff]  ;;  %v1954_v15 = vld [vmem:[#allocation6 + $0x1df0] sm:$0xff] }
 0x2f2   :  { %3006 = vmatpush2.msra.mxu1 %v1746_v32  ;;  %2952 = vmatprep.subr.mxu0 %v1583_v26  ;;  %v1791_v37 = vld [vmem:[#allocation6 + $0x18d8] sm:$0xff]  ;;  %v1790_v32 = vld [vmem:[#allocation6 + $0x18d0] sm:$0xff] }
 0x2f3   :  { %3007 = vmatprep.subr.mxu1 %v1743_v63  ;;  %2953 = vmatpush2.msra.mxu0 %v1582_v1  ;;  %v1951_v61 = vld [vmem:[#allocation6 + $0x1dd8] sm:$0xff]  ;;  %v1950_v26 = vld [vmem:[#allocation6 + $0x1dd0] sm:$0xff] }
 0x2f4   :  { %3008 = vmatpush2.msra.mxu1 %v1742_v45  ;;  %2954 = vmatprep.subr.mxu0 %v1579_v6  ;;  %v1787_v63 = vld [vmem:[#allocation6 + $0x18b8] sm:$0xff]  ;;  %v1786_v45 = vld [vmem:[#allocation6 + $0x18b0] sm:$0xff] }
 0x2f5   :  { %3009 = vmatprep.subr.mxu1 %v1739_v7  ;;  %2955 = vmatpush2.msra.mxu0 %v1578_v8  ;;  %v1947_v1 = vld [vmem:[#allocation6 + $0x1db8] sm:$0xff]  ;;  %v1946_v6 = vld [vmem:[#allocation6 + $0x1db0] sm:$0xff] }
 0x2f6   :  { %3010 = vmatpush2.msra.mxu1 %v1738_v9  ;;  %2956 = vmatprep.subr.mxu0 %v1575_v14  ;;  %v1782_v7 = vld [vmem:[#allocation6 + $0x1890] sm:$0xff]  ;;  %v1779_v9 = vld [vmem:[#allocation6 + $0x1878] sm:$0xff] }
 0x2f7   :  { %3011 = vmatprep.subr.mxu1 %v1735_v23  ;;  %2957 = vmatpush2.msra.mxu0 %v1574_v27  ;;  %v1942_v8 = vld [vmem:[#allocation6 + $0x1d90] sm:$0xff]  ;;  %v1939_v14 = vld [vmem:[#allocation6 + $0x1d78] sm:$0xff] }
 0x2f8   :  { %3012 = vmatpush2.msra.mxu1 %v1734_v28  ;;  %2959 = vmatmul.mubr.f32.vlgmr.msra.gmra.mxu0 %v988_v41  ;;  %v1815_v41 = vld [vmem:[#allocation6 + $0x1998] sm:$0xff]  ;;  %v1774_v28 = vld [vmem:[#allocation6 + $0x1850] sm:$0xff] }
 0x2f9   :  { %3013 = vmatprep.subr.mxu1 %v1731_v33  ;;  %3036 = vmatprep.subr.mxu0 %v1827_v34  ;;  %v1775_v23 = vld [vmem:[#allocation6 + $0x1858] sm:$0xff]  ;;  %v1934_v33 = vld [vmem:[#allocation6 + $0x1d50] sm:$0xff] }
 0x2fa   :  { %3014 = vmatpush2.msra.mxu1 %v1730_v38  ;;  %3037 = vmatpush1.msra.mxu0 %v1826_v44  ;;  %v1935_v27 = vld [vmem:[#allocation6 + $0x1d58] sm:$0xff]  ;;  %v1770_v44 = vld [vmem:[#allocation6 + $0x1830] sm:$0xff] }
 0x2fb   :  { %3100 = vmatprep.mubr.f32.mxu0 %v993_v16  ;;  %3015 = vmatprep.subr.mxu1 %v1727_v53  ;;  %v1810_v16 = vld [vmem:[#allocation6 + $0x1970] sm:$0xff]  ;;  %v1771_v34 = vld [vmem:[#allocation6 + $0x1838] sm:$0xff] }
 0x2fc   :  { %3038 = vmatprep.subr.mxu0 %v1823_v39  ;;  %3016 = vmatpush2.msra.mxu1 %v1726_v19  ;;  %v1931_v38 = vld [vmem:[#allocation6 + $0x1d38] sm:$0xff]  ;;  %v1930_v53 = vld [vmem:[#allocation6 + $0x1d30] sm:$0xff] }
 0x2fd   :  { %3039 = vmatpush1.msra.mxu0 %v1822_v20  ;;  %3017 = vmatprep.subr.mxu1 %v1723_v17  ;;  %v1767_v39 = vld [vmem:[#allocation6 + $0x1818] sm:$0xff]  ;;  %v1766_v20 = vld [vmem:[#allocation6 + $0x1810] sm:$0xff] }
 0x2fe   :  { %3040 = vmatprep.subr.mxu0 %v1819_v36  ;;  %3018 = vmatpush2.msra.mxu1 %v1722_v50  ;;  %v1927_v19 = vld [vmem:[#allocation6 + $0x1d18] sm:$0xff]  ;;  %v1926_v17 = vld [vmem:[#allocation6 + $0x1d10] sm:$0xff] }
 0x2ff   :  { %3041 = vmatpush1.msra.mxu0 %v1818_v22  ;;  %3019 = vmatprep.subr.mxu1 %v1719_v24  ;;  %v1891_v36 = vld [vmem:[#allocation6 + $0x1bf8] sm:$0xff]  ;;  %v1890_v22 = vld [vmem:[#allocation6 + $0x1bf0] sm:$0xff] }
 0x300   :  { %3042 = vmatprep.subr.mxu0 %v1815_v41  ;;  %3020 = vmatpush2.msra.mxu1 %v1718_v12  ;;  %v1923_v50 = vld [vmem:[#allocation6 + $0x1cf8] sm:$0xff]  ;;  %v1922_v24 = vld [vmem:[#allocation6 + $0x1cf0] sm:$0xff] }
 0x301   :  { %3043 = vmatpush1.msra.mxu0 %v1814_v21  ;;  %3021 = vmatprep.subr.mxu1 %v1715_v40  ;;  %v1887_v41 = vld [vmem:[#allocation6 + $0x1bd8] sm:$0xff]  ;;  %v1886_v21 = vld [vmem:[#allocation6 + $0x1bd0] sm:$0xff] }
 0x302   :  { %3044 = vmatprep.subr.mxu0 %v1811_v25  ;;  %3022 = vmatpush2.msra.mxu1 %v1714_v30  ;;  %v1919_v12 = vld [vmem:[#allocation6 + $0x1cd8] sm:$0xff]  ;;  %v1918_v40 = vld [vmem:[#allocation6 + $0x1cd0] sm:$0xff]  ;;  %v4804_v30 = vpop.f32.mrf.mxu0 }
 0x303   :  { %3045 = vmatpush1.msra.mxu0 %v1810_v16  ;;  %3023 = vmatprep.subr.mxu1 %v1711_v56  ;;  %v1883_v25 = vld [vmem:[#allocation6 + $0x1bb8] sm:$0xff]  ;;  %v1882_v56 = vld [vmem:[#allocation6 + $0x1bb0] sm:$0xff] }
 0x304   :  { %3046 = vmatprep.subr.mxu0 %v1807_v4  ;;  %3024 = vmatpush2.msra.mxu1 %v1710_v52  ;;  %v1915_v16 = vld [vmem:[#allocation6 + $0x1cb8] sm:$0xff]  ;;  %v1914_v4 = vld [vmem:[#allocation6 + $0x1cb0] sm:$0xff] }
 0x305   :  { %3047 = vmatpush1.msra.mxu0 %v1806_v48  ;;  %3025 = vmatprep.subr.mxu1 %v1707_v42  ;;  %v1879_v52 = vld [vmem:[#allocation6 + $0x1b98] sm:$0xff]  ;;  %v4806_v48 = vpop.f32.mrf.mxu1 }
 0x306   :  { %3048 = vmatprep.subr.mxu0 %v1803_v47  ;;  %3026 = vmatpush2.msra.mxu1 %v1706_v51  ;;  %v1911_v42 = vld [vmem:[#allocation6 + $0x1c98] sm:$0xff]  ;;  %v1878_v47 = vld [vmem:[#allocation6 + $0x1b90] sm:$0xff] }
 0x307   :  { %3049 = vmatpush1.msra.mxu0 %v1802_v54  ;;  %3027 = vmatprep.subr.mxu1 %v1703_v57  ;;  %v1910_v51 = vld [vmem:[#allocation6 + $0x1c90] sm:$0xff]  ;;  %v1875_v54 = vld [vmem:[#allocation6 + $0x1b78] sm:$0xff]  ;;  %v2110_v57 = vpop.f32.mrf.mxu0 }
 0x308   :  { %3050 = vmatprep.subr.mxu0 %v1799_v46  ;;  %3028 = vmatpush2.msra.mxu1 %v1702_v59  ;;  %v1907_v46 = vld [vmem:[#allocation6 + $0x1c78] sm:$0xff]  ;;  %v1874_v59 = vld [vmem:[#allocation6 + $0x1b70] sm:$0xff] }
 0x309   :  { %3051 = vmatpush1.msra.mxu0 %v1798_v58  ;;  %3030 = vmatmul.mubr.f32.vlgmr.msra.gmra.mxu1 %v990_v2  ;;  %v1943_v2 = vld [vmem:[#allocation6 + $0x1d98] sm:$0xff]  ;;  %v1906_v58 = vld [vmem:[#allocation6 + $0x1c70] sm:$0xff] }
 0x30a   :  { %3052 = vmatprep.subr.mxu0 %v1795_v60  ;;  %3107 = vmatprep.subr.mxu1 %v1955_v18  ;;  %v1871_v60 = vld [vmem:[#allocation6 + $0x1b58] sm:$0xff]  ;;  %v2181_v18 = vpop.f32.mrf.mxu1 }
 0x30b   :  { %3053 = vmatpush1.msra.mxu0 %v1794_v55  ;;  %3108 = vmatpush1.msra.mxu1 %v1954_v15  ;;  %v4808_v55 = vpop.f32.mrf.mxu0  ;;  %v1903_v15 = vld [vmem:[#allocation6 + $0x1c58] sm:$0xff] }
 0x30c   :  { %3171 = vmatprep.mubr.f32.mxu1 %v995_v35  ;;  %3054 = vmatprep.subr.mxu0 %v1791_v37  ;;  %v1938_v35 = vld [vmem:[#allocation6 + $0x1d70] sm:$0xff] }
 0x30d   :  { %3109 = vmatprep.subr.mxu1 %v1951_v61  ;;  %3055 = vmatpush1.msra.mxu0 %v1790_v32  ;;  %v1870_v37 = vld [vmem:[#allocation6 + $0x1b50] sm:$0xff]  ;;  %v1867_v32 = vld [vmem:[#allocation6 + $0x1b38] sm:$0xff] }
 0x30e   :  { %3110 = vmatpush1.msra.mxu1 %v1950_v26  ;;  %3056 = vmatprep.subr.mxu0 %v1787_v63  ;;  %v1902_v61 = vld [vmem:[#allocation6 + $0x1c50] sm:$0xff]  ;;  %v4810_v26 = vld [vmem:[#allocation7] sm:$0xf]  ;;  %v4812_v63 = vpop.f32.mrf.mxu1 }
 0x30f   :  { %3111 = vmatprep.subr.mxu1 %v1947_v1  ;;  %3057 = vmatpush1.msra.mxu0 %v1786_v45  ;;  %v1899_v1 = vld [vmem:[#allocation6 + $0x1c38] sm:$0xff]  ;;  %v1866_v45 = vld [vmem:[#allocation6 + $0x1b30] sm:$0xff] }
 0x310   :  { %3112 = vmatpush1.msra.mxu1 %v1946_v6  ;;  %3058 = vmatprep.subr.mxu0 %v1783_v49  ;;  %v2029_v6 = vrot.slane %v4810_v26, %v4630_v13  ;;  %v1898_v49 = vld [vmem:[#allocation6 + $0x1c30] sm:$0xff] }
 0x311   :  { %3113 = vmatprep.subr.mxu1 %v1943_v2  ;;  %3059 = vmatpush1.msra.mxu0 %v1782_v7  ;;  %v1863_v2 = vld [vmem:[#allocation6 + $0x1b18] sm:$0xff]  ;;  %v2252_v7 = vpop.f32.mrf.mxu0 }
 0x312   :  { %3114 = vmatpush1.msra.mxu1 %v1942_v8  ;;  %3060 = vmatprep.subr.mxu0 %v1779_v9  ;;  %v1895_v8 = vld [vmem:[#allocation6 + $0x1c18] sm:$0xff]  ;;  %v1862_v9 = vld [vmem:[#allocation6 + $0x1b10] sm:$0xff] }
 0x313   :  { %3115 = vmatprep.subr.mxu1 %v1939_v14  ;;  %3061 = vmatpush1.msra.mxu0 %v1778_v3  ;;  %v1894_v14 = vld [vmem:[#allocation6 + $0x1c10] sm:$0xff]  ;;  %v1859_v3 = vld [vmem:[#allocation6 + $0x1af8] sm:$0xff] }
 0x314   :  { %3116 = vmatpush1.msra.mxu1 %v1938_v35  ;;  %3062 = vmatprep.subr.mxu0 %v1775_v23  ;;  %v2323_v35 = vpop.f32.mrf.mxu1  ;;  %v4816_v23 = vpop.f32.mrf.mxu0 }
 0x315   :  { %3117 = vmatprep.subr.mxu1 %v1935_v27  ;;  %3063 = vmatpush1.msra.mxu0 %v1774_v28  ;;  %v2019_v27 = vld [vmem:[#allocation6 + $0x1ff8] sm:$0xff]  ;;  %v1858_v28 = vld [vmem:[#allocation6 + $0x1af0] sm:$0xff] }
 0x316   :  { %3118 = vmatpush1.msra.mxu1 %v1934_v33  ;;  %3064 = vmatprep.subr.mxu0 %v1771_v34  ;;  %v2111_v33 = vadd.f32 %v2110_v57, %v2029_v6  ;;  %v2018_v34 = vld [vmem:[#allocation6 + $0x1ff0] sm:$0xff] }
 0x317   :  { %3119 = vmatprep.subr.mxu1 %v1931_v38  ;;  %3065 = vmatpush1.msra.mxu0 %v1770_v44  ;;  %v1855_v38 = vld [vmem:[#allocation6 + $0x1ad8] sm:$0xff]  ;;  %v4818_v44 = vpop.f32.mrf.mxu1  ;;  %v2002_v57 = vld [vmem:[#allocation6 + $0x1f70] sm:$0xff] }
 0x318   :  { %3120 = vmatpush1.msra.mxu1 %v1930_v53  ;;  %3066 = vmatprep.subr.mxu0 %v1767_v39  ;;  %v2015_v53 = vld [vmem:[#allocation6 + $0x1fd8] sm:$0xff]  ;;  %v1854_v39 = vld [vmem:[#allocation6 + $0x1ad0] sm:$0xff] }
 0x319   :  { %3121 = vmatprep.subr.mxu1 %v1927_v19  ;;  %3067 = vmatpush1.msra.mxu0 %v1766_v20  ;;  %v2182_v19 = vadd.f32 %v2181_v18, %v2111_v33  ;;  %v2014_v20 = vld [vmem:[#allocation6 + $0x1fd0] sm:$0xff] }
 0x31a   :  { %3122 = vmatpush1.msra.mxu1 %v1926_v17  ;;  %3068 = vmatprep.subr.mxu0 %v1891_v36  ;;  %v1851_v17 = vld [vmem:[#allocation6 + $0x1ab8] sm:$0xff]  ;;  %v2394_v36 = vpop.f32.mrf.mxu0  ;;  %v1994_v6 = vld [vmem:[#allocation6 + $0x1f30] sm:$0xff] }
 0x31b   :  { %3123 = vmatprep.subr.mxu1 %v1923_v50  ;;  %3069 = vmatpush2.msra.mxu0 %v1890_v22  ;;  %v2011_v50 = vld [vmem:[#allocation6 + $0x1fb8] sm:$0xff]  ;;  %v1850_v22 = vld [vmem:[#allocation6 + $0x1ab0] sm:$0xff] }
 0x31c   :  { %3124 = vmatpush1.msra.mxu1 %v1922_v24  ;;  %3070 = vmatprep.subr.mxu0 %v1887_v41  ;;  %v2253_v24 = vadd.f32 %v2252_v7, %v2182_v19  ;;  %v2010_v41 = vld [vmem:[#allocation6 + $0x1fb0] sm:$0xff] }
 0x31d   :  { %3125 = vmatprep.subr.mxu1 %v1919_v12  ;;  %3071 = vmatpush2.msra.mxu0 %v1886_v21  ;;  %v1847_v12 = vld [vmem:[#allocation6 + $0x1a98] sm:$0xff]  ;;  %v2465_v21 = vpop.f32.mrf.mxu1  ;;  %v1830_v7 = vld [vmem:[#allocation6 + $0x1a10] sm:$0xff] }
 0x31e   :  { %3126 = vmatpush1.msra.mxu1 %v1918_v40  ;;  %3072 = vmatprep.subr.mxu0 %v1883_v25  ;;  %v4820_v40 = vpop.f32.mrf.mxu0  ;;  %v2007_v25 = vld [vmem:[#allocation6 + $0x1f98] sm:$0xff]  ;;  %v3211_v19 = vld [vmem:[#allocation9 + $0xe8] sm:$0xff] }
 0x31f   :  { %3127 = vmatprep.subr.mxu1 %v1915_v16  ;;  %3073 = vmatpush2.msra.mxu0 %v1882_v56  ;;  %v1846_v16 = vld [vmem:[#allocation6 + $0x1a90] sm:$0xff]  ;;  %v2324_v56 = vadd.f32 %v2323_v35, %v2253_v24  ;;  %v3209_v24 = vld [vmem:[#allocation9 + $0xd8] sm:$0xff] }
 0x320   :  { %3128 = vmatpush1.msra.mxu1 %v1914_v4  ;;  %3074 = vmatprep.subr.mxu0 %v1879_v52  ;;  %v2006_v4 = vld [vmem:[#allocation6 + $0x1f90] sm:$0xff]  ;;  %v1843_v52 = vld [vmem:[#allocation6 + $0x1a78] sm:$0xff] }
 0x321   :  { %3129 = vmatprep.subr.mxu1 %v1911_v42  ;;  %3075 = vmatpush2.msra.mxu0 %v1878_v47  ;;  %v4822_v42 = vpop.f32.mrf.mxu1  ;;  %v2003_v47 = vld [vmem:[#allocation6 + $0x1f78] sm:$0xff]  ;;  %v1986_v35 = vld [vmem:[#allocation6 + $0x1ef0] sm:$0xff] }
 0x322   :  { %3130 = vmatpush1.msra.mxu1 %v1910_v51  ;;  %3076 = vmatprep.subr.mxu0 %v1875_v54  ;;  %v1842_v51 = vld [vmem:[#allocation6 + $0x1a70] sm:$0xff]  ;;  %v2395_v54 = vadd.f32 %v2394_v36, %v2324_v56  ;;  %v1975_v36 = vld [vmem:[#allocation6 + $0x1e98] sm:$0xff]  ;;  %v2025_v56 = vrot.slane %v4810_v26, %v4625_v11 }
 0x323   :  { %3131 = vmatprep.subr.mxu1 %v1907_v46  ;;  %3077 = vmatpush2.msra.mxu0 %v1874_v59  ;;  %v1839_v46 = vld [vmem:[#allocation6 + $0x1a58] sm:$0xff]  ;;  %v2536_v59 = vpop.f32.mrf.mxu0 }
 0x324   :  { %3132 = vmatpush1.msra.mxu1 %v1906_v58  ;;  %3078 = vmatprep.subr.mxu0 %v1871_v60  ;;  %v1999_v58 = vld [vmem:[#allocation6 + $0x1f58] sm:$0xff]  ;;  %v1838_v60 = vld [vmem:[#allocation6 + $0x1a50] sm:$0xff]  ;;  %v2466_v18 = vadd.f32 %v2465_v21, %v2395_v54 }
 0x325   :  { %3133 = vmatprep.subr.mxu1 %v1903_v15  ;;  %3079 = vmatpush2.msra.mxu0 %v1870_v37  ;;  %v1998_v15 = vld [vmem:[#allocation6 + $0x1f50] sm:$0xff]  ;;  %v1835_v37 = vld [vmem:[#allocation6 + $0x1a38] sm:$0xff] }
 0x326   :  { %3134 = vmatpush1.msra.mxu1 %v1902_v61  ;;  %3080 = vmatprep.subr.mxu0 %v1867_v32  ;;  %v2607_v61 = vpop.f32.mrf.mxu1  ;;  %v1995_v32 = vld [vmem:[#allocation6 + $0x1f38] sm:$0xff]  ;;  %v3191_v54 = vld [vmem:[#allocation9 + $0x48] sm:$0xff] }
 0x327   :  { %3135 = vmatprep.subr.mxu1 %v1899_v1  ;;  %3081 = vmatpush2.msra.mxu0 %v1866_v45  ;;  %v1834_v1 = vld [vmem:[#allocation6 + $0x1a30] sm:$0xff]  ;;  %v2537_v45 = vadd.f32 %v2536_v59, %v2466_v18  ;;  %v1967_v21 = vld [vmem:[#allocation6 + $0x1e58] sm:$0xff] }
 0x328   :  { %3136 = vmatpush1.msra.mxu1 %v1898_v49  ;;  %3082 = vmatprep.subr.mxu0 %v1863_v2  ;;  %v1831_v49 = vld [vmem:[#allocation6 + $0x1a18] sm:$0xff]  ;;  %v1958_v59 = vld [vmem:[#allocation6 + $0x1e10] sm:$0xff] }
 0x329   :  { %3137 = vmatprep.subr.mxu1 %v1895_v8  ;;  %3083 = vmatpush2.msra.mxu0 %v1862_v9  ;;  %v1991_v2 = vld [vmem:[#allocation6 + $0x1f18] sm:$0xff]  ;;  %v2608_v8 = vadd.f32 %v2607_v61, %v2537_v45  ;;  %v1990_v9 = vld [vmem:[#allocation6 + $0x1f10] sm:$0xff] }
 0x32a   :  { %3138 = vmatpush1.msra.mxu1 %v1894_v14  ;;  %3084 = vmatprep.subr.mxu0 %v1859_v3  ;;  %v1987_v14 = vld [vmem:[#allocation6 + $0x1ef8] sm:$0xff] }
 0x32b   :  { %3139 = vmatprep.subr.mxu1 %v2019_v27  ;;  %3085 = vmatpush2.msra.mxu0 %v1858_v28  ;;  %v3213_v3 = vld [vmem:[#allocation9 + $0xf8] sm:$0xff]  ;;  %v3179_v33 = vmax.f32 %v2608_v8, 0.0  ;;  %v3204_v61 = vld [vmem:[#allocation9 + $0xb0] sm:$0xff]  ;;  %v3243_v8 = vld [vmem:[#allocation9 + $0x1e8] sm:$0xff] }
 0x32c   :  { %3140 = vmatpush2.msra.mxu1 %v2018_v34  ;;  %3086 = vmatprep.subr.mxu0 %v1855_v38  ;;  %v3197_v27 = vld [vmem:[#allocation9 + $0x78] sm:$0xff]  ;;  %v3212_v34 = vld [vmem:[#allocation9 + $0xf0] sm:$0xff] }
 0x32d   :  { %3141 = vmatprep.subr.mxu1 %v2015_v53  ;;  %3087 = vmatpush2.msra.mxu0 %v1854_v39  ;;  %v1983_v28 = vld [vmem:[#allocation6 + $0x1ed8] sm:$0xff]  ;;  %v1982_v38 = vld [vmem:[#allocation6 + $0x1ed0] sm:$0xff] }
 0x32e   :  { %3142 = vmatpush2.msra.mxu1 %v2014_v20  ;;  %3088 = vmatprep.subr.mxu0 %v1851_v17  ;;  %v3196_v53 = vld [vmem:[#allocation9 + $0x70] sm:$0xff]  ;;  %v3195_v17 = vld [vmem:[#allocation9 + $0x68] sm:$0xff]  ;;  %v3205_v18 = vld [vmem:[#allocation9 + $0xb8] sm:$0xff] }
 0x32f   :  { %3143 = vmatprep.subr.mxu1 %v2011_v50  ;;  %3089 = vmatpush2.msra.mxu0 %v1850_v22  ;;  %v1979_v39 = vld [vmem:[#allocation6 + $0x1eb8] sm:$0xff]  ;;  %v1978_v20 = vld [vmem:[#allocation6 + $0x1eb0] sm:$0xff]  ;;  %v3194_v50 = vld [vmem:[#allocation9 + $0x60] sm:$0xff] }
 0x330   :  { %3144 = vmatpush2.msra.mxu1 %v2010_v41  ;;  %3090 = vmatprep.subr.mxu0 %v1847_v12  ;;  %v1971_v22 = vld [vmem:[#allocation6 + $0x1e78] sm:$0xff]  ;;  %v1970_v41 = vld [vmem:[#allocation6 + $0x1e70] sm:$0xff] }
 0x331   :  { %3145 = vmatprep.subr.mxu1 %v2007_v25  ;;  %3091 = vmatpush2.msra.mxu0 %v1846_v16  ;;  %v3193_v12 = vld [vmem:[#allocation9 + $0x58] sm:$0xff]  ;;  %v3208_v25 = vld [vmem:[#allocation9 + $0xd0] sm:$0xff] }
 0x332   :  { %3146 = vmatpush2.msra.mxu1 %v2006_v4  ;;  %3092 = vmatprep.subr.mxu0 %v1843_v52  ;;  %v1966_v16 = vld [vmem:[#allocation6 + $0x1e50] sm:$0xff]  ;;  %v1963_v52 = vld [vmem:[#allocation6 + $0x1e38] sm:$0xff] }
 0x333   :  { %3147 = vmatprep.subr.mxu1 %v2003_v47  ;;  %3093 = vmatpush2.msra.mxu0 %v1842_v51  ;;  %v3192_v4 = vld [vmem:[#allocation9 + $0x50] sm:$0xff]  ;;  %v3207_v47 = vld [vmem:[#allocation9 + $0xc8] sm:$0xff]  ;;  %v3229_v45 = vld [vmem:[#allocation9 + $0x178] sm:$0xff] }
 0x334   :  { %3148 = vmatpush2.msra.mxu1 %v2002_v57  ;;  %3094 = vmatprep.subr.mxu0 %v1839_v46  ;;  %v1962_v51 = vld [vmem:[#allocation6 + $0x1e30] sm:$0xff]  ;;  %v1959_v57 = vld [vmem:[#allocation6 + $0x1e18] sm:$0xff]  ;;  %v3206_v46 = vld [vmem:[#allocation9 + $0xc0] sm:$0xff] }
 0x335   :  { %3149 = vmatprep.subr.mxu1 %v1999_v58  ;;  %3095 = vmatpush2.msra.mxu0 %v1838_v60  ;;  %v2109_v58 = vadd.f32 %v4804_v30, %v2025_v56  ;;  %v3190_v60 = vld [vmem:[#allocation9 + $0x40] sm:$0xff]  ;;  %v3245_v30 = vld [vmem:[#allocation9 + $0x1f8] sm:$0xff] }
 0x336   :  { %3150 = vmatpush2.msra.mxu1 %v1998_v15  ;;  %3096 = vmatprep.subr.mxu0 %v1835_v37  ;;  %v3189_v37 = vld [vmem:[#allocation9 + $0x38] sm:$0xff] }
 0x337   :  { %3151 = vmatprep.subr.mxu1 %v1995_v32  ;;  %3097 = vmatpush2.msra.mxu0 %v1834_v1  ;;  %v2180_v15 = vadd.f32 %v4806_v48, %v2109_v58  ;;  %v3188_v32 = vld [vmem:[#allocation9 + $0x30] sm:$0xff]  ;;  %v3233_v56 = vld [vmem:[#allocation9 + $0x198] sm:$0xff] }
 0x338   :  { %3152 = vmatpush2.msra.mxu1 %v1994_v6  ;;  %3098 = vmatprep.subr.mxu0 %v1831_v49  ;;  %v3244_v6 = vld [vmem:[#allocation9 + $0x1f0] sm:$0xff]  ;;  %v3203_v49 = vld [vmem:[#allocation9 + $0xa8] sm:$0xff] }
 0x339   :  { %3153 = vmatprep.subr.mxu1 %v1991_v2  ;;  %3099 = vmatpush2.msra.mxu0 %v1830_v7  ;;  %v2251_v1 = vadd.f32 %v4808_v55, %v2180_v15  ;;  %v3228_v2 = vld [vmem:[#allocation9 + $0x170] sm:$0xff]  ;;  %v3187_v7 = vld [vmem:[#allocation9 + $0x28] sm:$0xff]  ;;  %v3421_v15 = vld [vmem:[#allocation12 + $0xd8] sm:$0xff] }
 0x33a   :  { %3154 = vmatpush2.msra.mxu1 %v1990_v9  ;;  %3101 = vmatmul.mubr.f32.vlgmr.msra.gmra.mxu0 %v992_v62  ;;  %v1974_v62 = vld [vmem:[#allocation6 + $0x1e90] sm:$0xff]  ;;  %v3186_v9 = vld [vmem:[#allocation9 + $0x20] sm:$0xff] }
 0x33b   :  { %3155 = vmatprep.subr.mxu1 %v1987_v14  ;;  %4040 = vmatprep.subr.mxu0 %v3213_v3  ;;  %v2322_v48 = vadd.f32 %v4812_v63, %v2251_v1  ;;  %v3242_v14 = vld [vmem:[#allocation9 + $0x1e0] sm:$0xff]  ;;  %v3201_v3 = vld [vmem:[#allocation9 + $0x98] sm:$0xff] }
 0x33c   :  { %3156 = vmatpush2.msra.mxu1 %v1986_v35  ;;  %4041 = vmatpush3.msra.mxu0 %v3197_v27  ;;  %v3226_v35 = vld [vmem:[#allocation9 + $0x160] sm:$0xff]  ;;  %v3185_v27 = vld [vmem:[#allocation9 + $0x18] sm:$0xff] }
 0x33d   :  { %3317 = vmatprep.mubr.f32.mxu0 %v3179_v33  ;;  %3157 = vmatprep.subr.mxu1 %v1983_v28  ;;  %v2393_v55 = vadd.f32 %v4816_v23, %v2322_v48  ;;  %v3200_v28 = vld [vmem:[#allocation9 + $0x90] sm:$0xff]  ;;  %v3417_v1 = vld [vmem:[#allocation12 + $0xb8] sm:$0xff] }
 0x33e   :  { %4042 = vmatprep.subr.mxu0 %v3212_v34  ;;  %3158 = vmatpush2.msra.mxu1 %v1982_v38  ;;  %v3184_v23 = vld [vmem:[#allocation9 + $0x10] sm:$0xff]  ;;  %v3199_v34 = vld [vmem:[#allocation9 + $0x88] sm:$0xff] }
 0x33f   :  { %4043 = vmatpush3.msra.mxu0 %v3196_v53  ;;  %3159 = vmatprep.subr.mxu1 %v1979_v39  ;;  %v2464_v63 = vadd.f32 %v4818_v44, %v2393_v55  ;;  %v3183_v53 = vld [vmem:[#allocation9 + $0x8] sm:$0xff]  ;;  %v3198_v39 = vld [vmem:[#allocation9 + $0x80] sm:$0xff]  ;;  %v3424_v58 = vld [vmem:[#allocation12 + $0xf0] sm:$0xff] }
 0x340   :  { %4044 = vmatprep.subr.mxu0 %v3211_v19  ;;  %3160 = vmatpush2.msra.mxu1 %v1978_v20  ;;  %v3182_v44 = vld [vmem:[#allocation9] sm:$0xff]  ;;  %v3225_v20 = vld [vmem:[#allocation9 + $0x158] sm:$0xff]  ;;  %v3411_v48 = vld [vmem:[#allocation12 + $0x88] sm:$0xff] }
 0x341   :  { %4045 = vmatpush3.msra.mxu0 %v3195_v17  ;;  %3161 = vmatprep.subr.mxu1 %v1975_v36  ;;  %v2535_v33 = vadd.f32 %v4820_v40, %v2464_v63  ;;  %v3241_v40 = vld [vmem:[#allocation9 + $0x1d8] sm:$0xff]  ;;  %v3240_v17 = vld [vmem:[#allocation9 + $0x1d0] sm:$0xff]  ;;  %v3406_v55 = vld [vmem:[#allocation12 + $0x60] sm:$0xff] }
 0x342   :  { %4046 = vmatprep.subr.mxu0 %v3210_v43  ;;  %3162 = vmatpush2.msra.mxu1 %v1974_v62  ;;  %v3224_v36 = vld [vmem:[#allocation9 + $0x150] sm:$0xff]  ;;  %v3223_v43 = vld [vmem:[#allocation9 + $0x148] sm:$0xff]  ;;  %v3238_v62 = vld [vmem:[#allocation9 + $0x1c0] sm:$0xff] }
 0x343   :  { %4047 = vmatpush3.msra.mxu0 %v3194_v50  ;;  %3163 = vmatprep.subr.mxu1 %v1971_v22  ;;  %v2606_v38 = vadd.f32 %v4822_v42, %v2535_v33  ;;  %v3239_v42 = vld [vmem:[#allocation9 + $0x1c8] sm:$0xff]  ;;  %v3222_v50 = vld [vmem:[#allocation9 + $0x140] sm:$0xff]  ;;  %v3237_v22 = vld [vmem:[#allocation9 + $0x1b8] sm:$0xff]  ;;  %v2033_v33 = vrot.slane %v4810_v26, %v4648_v29 }
 0x344   :  { %4048 = vmatprep.subr.mxu0 %v3209_v24  ;;  %3164 = vmatpush2.msra.mxu1 %v1970_v41  ;;  %v3221_v24 = vld [vmem:[#allocation9 + $0x138] sm:$0xff]  ;;  %v3236_v41 = vld [vmem:[#allocation9 + $0x1b0] sm:$0xff] }
 0x345   :  { %4049 = vmatpush3.msra.mxu0 %v3193_v12  ;;  %3165 = vmatprep.subr.mxu1 %v1967_v21  ;;  %v3178_v19 = vmax.f32 %v2606_v38, 0.0  ;;  %v3235_v12 = vld [vmem:[#allocation9 + $0x1a8] sm:$0xff] }
 0x346   :  { %4050 = vmatprep.subr.mxu0 %v3208_v25  ;;  %3166 = vmatpush2.msra.mxu1 %v1966_v16  ;;  %v3219_v21 = vld [vmem:[#allocation9 + $0x128] sm:$0xff]  ;;  %v3234_v25 = vld [vmem:[#allocation9 + $0x1a0] sm:$0xff] }
 0x347   :  { %4051 = vmatpush3.msra.mxu0 %v3192_v4  ;;  %3167 = vmatprep.subr.mxu1 %v1963_v52  ;;  %v3218_v16 = vld [vmem:[#allocation9 + $0x120] sm:$0xff]  ;;  %v3217_v4 = vld [vmem:[#allocation9 + $0x118] sm:$0xff]  ;;  %v3232_v52 = vld [vmem:[#allocation9 + $0x190] sm:$0xff] }
 0x348   :  { %4052 = vmatprep.subr.mxu0 %v3207_v47  ;;  %3168 = vmatpush2.msra.mxu1 %v1962_v51  ;;  %v3216_v47 = vld [vmem:[#allocation9 + $0x110] sm:$0xff]  ;;  %v3231_v51 = vld [vmem:[#allocation9 + $0x188] sm:$0xff] }
 0x349   :  { %4053 = vmatpush3.msra.mxu0 %v3191_v54  ;;  %3169 = vmatprep.subr.mxu1 %v1959_v57  ;;  %v3215_v54 = vld [vmem:[#allocation9 + $0x108] sm:$0xff]  ;;  %v3230_v57 = vld [vmem:[#allocation9 + $0x180] sm:$0xff] }
 0x34a   :  { %4054 = vmatprep.subr.mxu0 %v3206_v46  ;;  %3170 = vmatpush2.msra.mxu1 %v1958_v59  ;;  %v3214_v46 = vld [vmem:[#allocation9 + $0x100] sm:$0xff] }
 0x34b   :  { %4055 = vmatpush3.msra.mxu0 %v3190_v60  ;;  %3172 = vmatmul.mubr.f32.vlgmr.msra.gmra.mxu1 %v994_v5  ;;  %v3227_v5 = vld [vmem:[#allocation9 + $0x168] sm:$0xff]  ;;  %v3425_v59 = vld [vmem:[#allocation12 + $0xf8] sm:$0xff] }
 0x34c   :  { %4056 = vmatprep.subr.mxu0 %v3205_v18  ;;  %4075 = vmatprep.subr.mxu1 %v3245_v30  ;;  %v3423_v60 = vld [vmem:[#allocation12 + $0xe8] sm:$0xff]  ;;  %v3422_v18 = vld [vmem:[#allocation12 + $0xe0] sm:$0xff]  ;;  %v3416_v30 = vld [vmem:[#allocation12 + $0xb0] sm:$0xff] }
 0x34d   :  { %4057 = vmatpush3.msra.mxu0 %v3189_v37  ;;  %4076 = vmatpush3.msra.mxu1 %v3229_v45  ;;  %v3420_v37 = vld [vmem:[#allocation12 + $0xd0] sm:$0xff]  ;;  %v3415_v45 = vld [vmem:[#allocation12 + $0xa8] sm:$0xff] }
 0x34e   :  { %4058 = vmatprep.subr.mxu0 %v3204_v61  ;;  %4077 = vmatprep.subr.mxu1 %v3244_v6  ;;  %v3419_v61 = vld [vmem:[#allocation12 + $0xc8] sm:$0xff]  ;;  %v3414_v6 = vld [vmem:[#allocation12 + $0xa0] sm:$0xff] }
 0x34f   :  { %4059 = vmatpush3.msra.mxu0 %v3188_v32  ;;  %4078 = vmatpush3.msra.mxu1 %v3228_v2  ;;  %v3418_v32 = vld [vmem:[#allocation12 + $0xc0] sm:$0xff]  ;;  %v3412_v2 = vld [vmem:[#allocation12 + $0x90] sm:$0xff] }
 0x350   :  { %4060 = vmatprep.subr.mxu0 %v3203_v49  ;;  %4079 = vmatprep.subr.mxu1 %v3243_v8  ;;  %v3413_v49 = vld [vmem:[#allocation12 + $0x98] sm:$0xff] }
 0x351   :  { %4061 = vmatpush3.msra.mxu0 %v3187_v7  ;;  %4080 = vmatpush3.msra.mxu1 %v3227_v5  ;;  %v3410_v7 = vld [vmem:[#allocation12 + $0x80] sm:$0xff]  ;;  %v3409_v8 = vld [vmem:[#allocation12 + $0x78] sm:$0xff]  ;;  %v3407_v5 = vld [vmem:[#allocation12 + $0x68] sm:$0xff] }
 0x352   :  { %4062 = vmatprep.subr.mxu0 %v3202_v10  ;;  %4081 = vmatprep.subr.mxu1 %v3242_v14  ;;  %v3408_v10 = vld [vmem:[#allocation12 + $0x70] sm:$0xff] }
 0x353   :  { %4063 = vmatpush3.msra.mxu0 %v3186_v9  ;;  %4082 = vmatpush3.msra.mxu1 %v3226_v35  ;;  %v3405_v9 = vld [vmem:[#allocation12 + $0x58] sm:$0xff]  ;;  %v3404_v14 = vld [vmem:[#allocation12 + $0x50] sm:$0xff]  ;;  %v2676_v35 = vpop.f32.mrf.mxu0 }
 0x354   :  { %4064 = vmatprep.subr.mxu0 %v3201_v3  ;;  %4083 = vmatprep.subr.mxu1 %v3241_v40  ;;  %v3403_v3 = vld [vmem:[#allocation12 + $0x48] sm:$0xff] }
 0x355   :  { %4065 = vmatpush3.msra.mxu0 %v3185_v27  ;;  %4084 = vmatpush3.msra.mxu1 %v3225_v20  ;;  %v2678_v63 = vpop.f32.mrf.mxu0  ;;  %v2747_v27 = vpop.f32.mrf.mxu1 }
 0x356   :  { %4066 = vmatprep.subr.mxu0 %v3200_v28  ;;  %4085 = vmatprep.subr.mxu1 %v3240_v17 }
 0x357   :  { %4067 = vmatpush3.msra.mxu0 %v3184_v23  ;;  %4086 = vmatpush3.msra.mxu1 %v3224_v36  ;;  %v2749_v23 = vpop.f32.mrf.mxu1 }
 0x358   :  { %4068 = vmatprep.subr.mxu0 %v3199_v34  ;;  %4087 = vmatprep.subr.mxu1 %v3239_v42  ;;  %v2037_v34 = vrot.slane %v4810_v26, %v4651_v31 }
 0x359   :  { %4069 = vmatpush3.msra.mxu0 %v3183_v53  ;;  %4088 = vmatpush3.msra.mxu1 %v3223_v43 }
 0x35a   :  { %4070 = vmatprep.subr.mxu0 %v3198_v39  ;;  %4089 = vmatprep.subr.mxu1 %v3238_v62  ;;  %v2677_v39 = vadd.f32 %v2676_v35, %v2033_v33  ;;  %v3544_v35 = vld [vmem:[#allocation15 + $0x108] sm:$0xff] }
 0x35b   :  { %4071 = vmatpush3.msra.mxu0 %v3182_v44  ;;  %4090 = vmatpush3.msra.mxu1 %v3222_v50  ;;  %v3536_v33 = vld [vmem:[#allocation15 + $0xc8] sm:$0xff] }
 0x35c   :  { %3318 = vmatmul.mubr.f32.vlgmr.msra.gmra.mxu0 %v3178_v19  ;;  %4091 = vmatprep.subr.mxu1 %v3237_v22  ;;  %v2679_v19 = vadd.f32 %v2678_v63, %v2037_v34  ;;  %v2748_v40 = vadd.f32 %v2747_v27, %v2677_v39  ;;  %v3543_v63 = vld [vmem:[#allocation15 + $0x100] sm:$0xff]  ;;  %v3540_v27 = vld [vmem:[#allocation15 + $0xe8] sm:$0xff] }
 0x35d   :  { %3502 = vmatprep.mubr.f32.mxu0 %v4473_v0  ;;  %v3220_v0 = vld [vmem:[#allocation9 + $0x130] sm:$0xff]  ;;  %4092 = vmatpush3.msra.mxu1 %v3221_v24  ;;  %v3527_v39 = vld [vmem:[#allocation15 + $0x80] sm:$0xff] }
 0x35e   :  { %4093 = vmatprep.subr.mxu1 %v3236_v41  ;;  %3438 = vmatprep.subr.mxu0 %v3425_v59  ;;  %v2750_v17 = vadd.f32 %v2749_v23, %v2679_v19  ;;  %v3401_v59 = vld [vmem:[#allocation12 + $0x38] sm:$0xff]  ;;  %v3535_v23 = vld [vmem:[#allocation15 + $0xc0] sm:$0xff]  ;;  %v3532_v34 = vld [vmem:[#allocation15 + $0xa8] sm:$0xff] }
 0x35f   :  { %4094 = vmatpush3.msra.mxu1 %v3220_v0  ;;  %3439 = vmatpush1.msra.mxu0 %v3424_v58  ;;  %v3400_v58 = vld [vmem:[#allocation12 + $0x30] sm:$0xff]  ;;  %v3523_v19 = vld [vmem:[#allocation15 + $0x60] sm:$0xff] }
 0x360   :  { %4095 = vmatprep.subr.mxu1 %v3235_v12  ;;  %3440 = vmatprep.subr.mxu0 %v3423_v60  ;;  %v3399_v60 = vld [vmem:[#allocation12 + $0x28] sm:$0xff] }
 0x361   :  { %4096 = vmatpush3.msra.mxu1 %v3219_v21  ;;  %3441 = vmatpush1.msra.mxu0 %v3422_v18  ;;  %v3398_v18 = vld [vmem:[#allocation12 + $0x20] sm:$0xff] }
 0x362   :  { %4097 = vmatprep.subr.mxu1 %v3234_v25  ;;  %3442 = vmatprep.subr.mxu0 %v3421_v15  ;;  %v3397_v15 = vld [vmem:[#allocation12 + $0x18] sm:$0xff] }
 0x363   :  { %4098 = vmatpush3.msra.mxu1 %v3218_v16  ;;  %3443 = vmatpush1.msra.mxu0 %v3420_v37  ;;  %v3396_v37 = vld [vmem:[#allocation12 + $0x10] sm:$0xff] }
 0x364   :  { %4099 = vmatprep.subr.mxu1 %v3233_v56  ;;  %3444 = vmatprep.subr.mxu0 %v3419_v61  ;;  %v3395_v61 = vld [vmem:[#allocation12 + $0x8] sm:$0xff] }
 0x365   :  { %4100 = vmatpush3.msra.mxu1 %v3217_v4  ;;  %3445 = vmatpush1.msra.mxu0 %v3418_v32  ;;  %v3394_v32 = vld [vmem:[#allocation12] sm:$0xff] }
 0x366   :  { %4101 = vmatprep.subr.mxu1 %v3232_v52  ;;  %3446 = vmatprep.subr.mxu0 %v3417_v1  ;;  %v3572_v1 = vld [vmem:[#allocation15 + $0x1e8] sm:$0xff] }
 0x367   :  { %4102 = vmatpush3.msra.mxu1 %v3216_v47  ;;  %3447 = vmatpush1.msra.mxu0 %v3416_v30  ;;  %v3574_v30 = vld [vmem:[#allocation15 + $0x1f8] sm:$0xff] }
 0x368   :  { %4103 = vmatprep.subr.mxu1 %v3231_v51  ;;  %3448 = vmatprep.subr.mxu0 %v3415_v45  ;;  %v3571_v45 = vld [vmem:[#allocation15 + $0x1e0] sm:$0xff] }
 0x369   :  { %4104 = vmatpush3.msra.mxu1 %v3215_v54  ;;  %3449 = vmatpush1.msra.mxu0 %v3414_v6  ;;  %v3568_v6 = vld [vmem:[#allocation15 + $0x1c8] sm:$0xff] }
 0x36a   :  { %4105 = vmatprep.subr.mxu1 %v3230_v57  ;;  %3450 = vmatprep.subr.mxu0 %v3413_v49  ;;  %v3567_v49 = vld [vmem:[#allocation15 + $0x1c0] sm:$0xff] }
 0x36b   :  { %4106 = vmatpush3.msra.mxu1 %v3214_v46  ;;  %3451 = vmatpush1.msra.mxu0 %v3412_v2  ;;  %v3402_v46 = vld [vmem:[#allocation12 + $0x40] sm:$0xff]  ;;  %v3564_v2 = vld [vmem:[#allocation15 + $0x1a8] sm:$0xff] }
 0x36c   :  { %3452 = vmatprep.subr.mxu0 %v3411_v48  ;;  %3661 = vmatprep.subr.mxu1 %v3572_v1  ;;  %v3563_v48 = vld [vmem:[#allocation15 + $0x1a0] sm:$0xff]  ;;  %v4038_v1 = vld [vmem:[#allocation10] ss:$0 sm:$0xff] }
 0x36d   :  { %3453 = vmatpush1.msra.mxu0 %v3410_v7  ;;  %v3560_v7 = vld [vmem:[#allocation15 + $0x188] sm:$0xff] }
 0x36e   :  { %3454 = vmatprep.subr.mxu0 %v3409_v8  ;;  %v3559_v8 = vld [vmem:[#allocation15 + $0x180] sm:$0xff] }
 0x36f   :  { %3455 = vmatpush1.msra.mxu0 %v3408_v10  ;;  %v3556_v10 = vld [vmem:[#allocation15 + $0x168] sm:$0xff] }
 0x370   :  { %3456 = vmatprep.subr.mxu0 %v3407_v5  ;;  %v3555_v5 = vld [vmem:[#allocation15 + $0x160] sm:$0xff] }
 0x371   :  { %3457 = vmatpush1.msra.mxu0 %v3406_v55  ;;  %v3552_v55 = vld [vmem:[#allocation15 + $0x148] sm:$0xff] }
 0x372   :  { %3458 = vmatprep.subr.mxu0 %v3405_v9  ;;  %v3551_v9 = vld [vmem:[#allocation15 + $0x140] sm:$0xff] }
 0x373   :  { %3459 = vmatpush1.msra.mxu0 %v3404_v14  ;;  %v3548_v14 = vld [vmem:[#allocation15 + $0x128] sm:$0xff] }
 0x374   :  { %3460 = vmatprep.subr.mxu0 %v3403_v3  ;;  %v3547_v3 = vld [vmem:[#allocation15 + $0x120] sm:$0xff] }
 0x375   :  { %3461 = vmatpush1.msra.mxu0 %v3402_v46  ;;  %v3600_v46 = vld [vmem:[#allocation15 + $0x2c8] sm:$0xff] }
 0x376   :  { %v2818_v28 = vpop.f32.mrf.mxu0  ;;  %3462 = vmatprep.subr.mxu0 %v3401_v59  ;;  %v3599_v59 = vld [vmem:[#allocation15 + $0x2c0] sm:$0xff] }
 0x377   :  { %v2819_v36 = vadd.f32 %v2818_v28, %v2748_v40  ;;  %3463 = vmatpush1.msra.mxu0 %v3400_v58  ;;  %v3539_v28 = vld [vmem:[#allocation15 + $0xe0] sm:$0xff]  ;;  %v3520_v40 = vld [vmem:[#allocation15 + $0x48] sm:$0xff] }
 0x378   :  { %v2820_v38 = vpop.f32.mrf.mxu0  ;;  %3464 = vmatprep.subr.mxu0 %v3399_v60  ;;  %v3596_v58 = vld [vmem:[#allocation15 + $0x2a8] sm:$0xff]  ;;  %v3595_v60 = vld [vmem:[#allocation15 + $0x2a0] sm:$0xff] }
 0x379   :  { %v2821_v62 = vadd.f32 %v2820_v38, %v2750_v17  ;;  %3465 = vmatpush1.msra.mxu0 %v3398_v18  ;;  %v3531_v38 = vld [vmem:[#allocation15 + $0xa0] sm:$0xff]  ;;  %v3516_v17 = vld [vmem:[#allocation15 + $0x28] sm:$0xff] }
 0x37a   :  { %3466 = vmatprep.subr.mxu0 %v3397_v15  ;;  %v3592_v18 = vld [vmem:[#allocation15 + $0x288] sm:$0xff]  ;;  %v3591_v15 = vld [vmem:[#allocation15 + $0x280] sm:$0xff] }
 0x37b   :  { %3467 = vmatpush1.msra.mxu0 %v3396_v37 }
 0x37c   :  { %3468 = vmatprep.subr.mxu0 %v3395_v61 }
 0x37d   :  { %3469 = vmatpush1.msra.mxu0 %v3394_v32 }
 0x37e   :  { %3732 = vmatprep.subr.mxu0 %v3574_v30 }
 0x387   :  { %v2889_v53 = vpop.f32.mrf.mxu1 }
 0x388   :  { %v2890_v50 = vadd.f32 %v2889_v53, %v2819_v36  ;;  %v3528_v53 = vld [vmem:[#allocation15 + $0x88] sm:$0xff]  ;;  %v3515_v36 = vld [vmem:[#allocation15 + $0x20] sm:$0xff] }
 0x389   :  { %v2891_v20 = vpop.f32.mrf.mxu1 }
 0x38a   :  { %v2892_v24 = vadd.f32 %v2891_v20, %v2821_v62  ;;  %v3519_v20 = vld [vmem:[#allocation15 + $0x40] sm:$0xff]  ;;  %v3636_v62 = vld [vmem:[#allocation15 + $0x3e8] sm:$0xff] }
 0x3b8   :  { %v2960_v44 = vpop.f32.mrf.mxu0 }
 0x3b9   :  { %v2961_v41 = vadd.f32 %v2960_v44, %v2890_v50  ;;  %v3524_v44 = vld [vmem:[#allocation15 + $0x68] sm:$0xff]  ;;  %v3635_v50 = vld [vmem:[#allocation15 + $0x3e0] sm:$0xff] }
 0x3ba   :  { %v2962_v42 = vpop.f32.mrf.mxu0 }
 0x3bb   :  { %v2963_v12 = vadd.f32 %v2962_v42, %v2892_v24  ;;  %v3512_v42 = vld [vmem:[#allocation15 + $0x8] sm:$0xff]  ;;  %v3631_v24 = vld [vmem:[#allocation15 + $0x3c0] sm:$0xff] }
 0x3c9   :  { %v3031_v43 = vpop.f32.mrf.mxu1 }
 0x3ca   :  { %v3032_v21 = vadd.f32 %v3031_v43, %v2961_v41  ;;  %v3511_v43 = vld [vmem:[#allocation15] sm:$0xff]  ;;  %v3628_v41 = vld [vmem:[#allocation15 + $0x3a8] sm:$0xff] }
 0x3cb   :  { %v3033_v0 = vpop.f32.mrf.mxu1 }
 0x3cc   :  { %v3034_v25 = vadd.f32 %v3033_v0, %v2963_v12  ;;  %v3627_v0 = vld [vmem:[#allocation15 + $0x3a0] sm:$0xff]  ;;  %v3624_v12 = vld [vmem:[#allocation15 + $0x388] sm:$0xff] }
 0x3fa   :  { %v3102_v22 = vpop.f32.mrf.mxu0 }
 0x3fb   :  { %v3103_v16 = vadd.f32 %v3102_v22, %v3032_v21  ;;  %v3632_v22 = vld [vmem:[#allocation15 + $0x3c8] sm:$0xff]  ;;  %v3623_v21 = vld [vmem:[#allocation15 + $0x380] sm:$0xff] }
 0x3fc   :  { %v3104_v26 = vpop.f32.mrf.mxu0 }
 0x3fd   :  { %v3105_v4 = vadd.f32 %v3104_v26, %v3034_v25  ;;  %v3620_v26 = vld [vmem:[#allocation15 + $0x368] sm:$0xff]  ;;  %v3619_v25 = vld [vmem:[#allocation15 + $0x360] sm:$0xff] }
 0x40b   :  { %v3173_v56 = vpop.f32.mrf.mxu1 }
 0x40c   :  { %v3174_v52 = vadd.f32 %v3173_v56, %v3103_v16  ;;  %v3616_v16 = vld [vmem:[#allocation15 + $0x348] sm:$0xff]  ;;  %v3615_v56 = vld [vmem:[#allocation15 + $0x340] sm:$0xff] }
 0x40d   :  { %v3175_v47 = vpop.f32.mrf.mxu1 }
 0x40e   :  { %v3176_v51 = vadd.f32 %v3175_v47, %v3105_v4  ;;  %v3180_v57 = vmax.f32 %v3174_v52, 0.0  ;;  %v3612_v4 = vld [vmem:[#allocation15 + $0x328] sm:$0xff]  ;;  %v3611_v52 = vld [vmem:[#allocation15 + $0x320] sm:$0xff] }
 0x40f   :  { %v3608_v47 = vld [vmem:[#allocation15 + $0x308] sm:$0xff] }
 0x410   :  { %v3181_v54 = vmax.f32 %v3176_v51, 0.0  ;;  %v3607_v51 = vld [vmem:[#allocation15 + $0x300] sm:$0xff] }
 0x412   :  { %3387 = vmatprep.mubr.f32.mxu1 %v3181_v54  ;;  %v3604_v54 = vld [vmem:[#allocation15 + $0x2e8] sm:$0xff] }
 0x413   :  { %3388 = vmatmul.mubr.f32.vlgmr.msra.gmra.mxu1 %v3180_v57  ;;  %v3603_v57 = vld [vmem:[#allocation15 + $0x2e0] sm:$0xff] }
 0x414   :  { %3662 = vmatpush1.msra.mxu1 %v3571_v45 }
 0x415   :  { %3663 = vmatprep.subr.mxu1 %v3568_v6 }
 0x416   :  { %3664 = vmatpush1.msra.mxu1 %v3567_v49 }
 0x417   :  { %3665 = vmatprep.subr.mxu1 %v3564_v2 }
 0x418   :  { %3666 = vmatpush1.msra.mxu1 %v3563_v48 }
 0x419   :  { %3667 = vmatprep.subr.mxu1 %v3560_v7  ;;  %v3573_v7 = vld [vmem:[#allocation15 + $0x1f0] sm:$0xff] }
 0x41a   :  { %3668 = vmatpush1.msra.mxu1 %v3559_v8  ;;  %v3570_v8 = vld [vmem:[#allocation15 + $0x1d8] sm:$0xff] }
 0x41b   :  { %3669 = vmatprep.subr.mxu1 %v3556_v10  ;;  %v3569_v10 = vld [vmem:[#allocation15 + $0x1d0] sm:$0xff] }
 0x41c   :  { %3670 = vmatpush1.msra.mxu1 %v3555_v5  ;;  %v4072_v37 = vpop.f32.mrf.mxu0  ;;  %v3566_v5 = vld [vmem:[#allocation15 + $0x1b8] sm:$0xff] }
 0x41d   :  { %3671 = vmatprep.subr.mxu1 %v3552_v55  ;;  %v3565_v55 = vld [vmem:[#allocation15 + $0x1b0] sm:$0xff] }
 0x41e   :  { %3672 = vmatpush1.msra.mxu1 %v3551_v9  ;;  %v4073_v61 = vpop.f32.mrf.mxu0  ;;  %v3562_v9 = vld [vmem:[#allocation15 + $0x198] sm:$0xff] }
 0x41f   :  { %3673 = vmatprep.subr.mxu1 %v3548_v14  ;;  %v4074_v32 = vadd.f32 %v4073_v61, %v4072_v37  ;;  %v3561_v14 = vld [vmem:[#allocation15 + $0x190] sm:$0xff]  ;;  %v3598_v61 = vld [vmem:[#allocation15 + $0x2b8] sm:$0xff] }
 0x420   :  { %3674 = vmatpush1.msra.mxu1 %v3547_v3  ;;  %v3558_v3 = vld [vmem:[#allocation15 + $0x178] sm:$0xff]  ;;  %v3601_v37 = vld [vmem:[#allocation15 + $0x2d0] sm:$0xff] }
 0x421   :  { %3675 = vmatprep.subr.mxu1 %v3544_v35  ;;  %v3320_v6 = vadd.f32 %v4074_v32, %v4038_v1  ;;  %v3557_v35 = vld [vmem:[#allocation15 + $0x170] sm:$0xff]  ;;  %v3594_v1 = vld [vmem:[#allocation15 + $0x298] sm:$0xff] }
 0x422   :  { %3676 = vmatpush1.msra.mxu1 %v3543_v63  ;;  %v3554_v63 = vld [vmem:[#allocation15 + $0x158] sm:$0xff]  ;;  %v3597_v32 = vld [vmem:[#allocation15 + $0x2b0] sm:$0xff] }
 0x423   :  { %3677 = vmatprep.subr.mxu1 %v3540_v27  ;;  %v3553_v27 = vld [vmem:[#allocation15 + $0x150] sm:$0xff] }
 0x424   :  { %3678 = vmatpush1.msra.mxu1 %v3539_v28  ;;  %v3550_v28 = vld [vmem:[#allocation15 + $0x138] sm:$0xff] }
 0x425   :  { %3679 = vmatprep.subr.mxu1 %v3536_v33  ;;  %v3549_v33 = vld [vmem:[#allocation15 + $0x130] sm:$0xff] }
 0x426   :  { %3680 = vmatpush1.msra.mxu1 %v3535_v23  ;;  %v3546_v23 = vld [vmem:[#allocation15 + $0x118] sm:$0xff] }
 0x427   :  { %3681 = vmatprep.subr.mxu1 %v3532_v34  ;;  %v3545_v34 = vld [vmem:[#allocation15 + $0x110] sm:$0xff] }
 0x428   :  { %3682 = vmatpush1.msra.mxu1 %v3531_v38  ;;  %v3542_v38 = vld [vmem:[#allocation15 + $0xf8] sm:$0xff] }
 0x429   :  { %3683 = vmatprep.subr.mxu1 %v3528_v53  ;;  %v3541_v53 = vld [vmem:[#allocation15 + $0xf0] sm:$0xff] }
 0x42a   :  { %3684 = vmatpush1.msra.mxu1 %v3527_v39  ;;  %v3538_v39 = vld [vmem:[#allocation15 + $0xd8] sm:$0xff] }
 0x42b   :  { %3685 = vmatprep.subr.mxu1 %v3524_v44  ;;  %v3537_v44 = vld [vmem:[#allocation15 + $0xd0] sm:$0xff] }
 0x42c   :  { %3686 = vmatpush1.msra.mxu1 %v3523_v19  ;;  %v3534_v19 = vld [vmem:[#allocation15 + $0xb8] sm:$0xff] }
 0x42d   :  { %3687 = vmatprep.subr.mxu1 %v3520_v40  ;;  %v3533_v40 = vld [vmem:[#allocation15 + $0xb0] sm:$0xff] }
 0x42e   :  { %3688 = vmatpush1.msra.mxu1 %v3519_v20  ;;  %v3530_v20 = vld [vmem:[#allocation15 + $0x98] sm:$0xff] }
 0x42f   :  { %3689 = vmatprep.subr.mxu1 %v3516_v17  ;;  %v3529_v17 = vld [vmem:[#allocation15 + $0x90] sm:$0xff] }
 0x430   :  { %3690 = vmatpush1.msra.mxu1 %v3515_v36  ;;  %v3526_v36 = vld [vmem:[#allocation15 + $0x78] sm:$0xff] }
 0x431   :  { %3691 = vmatprep.subr.mxu1 %v3512_v42  ;;  %v3525_v42 = vld [vmem:[#allocation15 + $0x70] sm:$0xff] }
 0x432   :  { %3692 = vmatpush1.msra.mxu1 %v3511_v43  ;;  %v3522_v43 = vld [vmem:[#allocation15 + $0x58] sm:$0xff] }
 0x433   :  { %3693 = vmatprep.subr.mxu1 %v3636_v62  ;;  %v3521_v62 = vld [vmem:[#allocation15 + $0x50] sm:$0xff] }
 0x434   :  { %3694 = vmatpush2.msra.mxu1 %v3635_v50  ;;  %v3518_v50 = vld [vmem:[#allocation15 + $0x38] sm:$0xff] }
 0x435   :  { %3695 = vmatprep.subr.mxu1 %v3632_v22  ;;  %v3517_v22 = vld [vmem:[#allocation15 + $0x30] sm:$0xff] }
 0x436   :  { %3696 = vmatpush2.msra.mxu1 %v3631_v24  ;;  %v3514_v24 = vld [vmem:[#allocation15 + $0x18] sm:$0xff] }
 0x437   :  { %3697 = vmatprep.subr.mxu1 %v3628_v41  ;;  %v3513_v41 = vld [vmem:[#allocation15 + $0x10] sm:$0xff] }
 0x438   :  { %3698 = vmatpush2.msra.mxu1 %v3627_v0  ;;  %v3638_v0 = vld [vmem:[#allocation15 + $0x3f8] sm:$0xff] }
 0x439   :  { %3699 = vmatprep.subr.mxu1 %v3624_v12  ;;  %v3637_v12 = vld [vmem:[#allocation15 + $0x3f0] sm:$0xff] }
 0x43a   :  { %3700 = vmatpush2.msra.mxu1 %v3623_v21  ;;  %v3634_v21 = vld [vmem:[#allocation15 + $0x3d8] sm:$0xff] }
 0x43b   :  { %3701 = vmatprep.subr.mxu1 %v3620_v26  ;;  %v3633_v26 = vld [vmem:[#allocation15 + $0x3d0] sm:$0xff] }
 0x43c   :  { %3702 = vmatpush2.msra.mxu1 %v3619_v25  ;;  %v3630_v25 = vld [vmem:[#allocation15 + $0x3b8] sm:$0xff] }
 0x43d   :  { %3703 = vmatprep.subr.mxu1 %v3616_v16  ;;  %v3629_v16 = vld [vmem:[#allocation15 + $0x3b0] sm:$0xff] }
 0x43e   :  { %3704 = vmatpush2.msra.mxu1 %v3615_v56  ;;  %v3626_v56 = vld [vmem:[#allocation15 + $0x398] sm:$0xff] }
 0x43f   :  { %3705 = vmatprep.subr.mxu1 %v3612_v4  ;;  %v3625_v4 = vld [vmem:[#allocation15 + $0x390] sm:$0xff] }
 0x440   :  { %3706 = vmatpush2.msra.mxu1 %v3611_v52  ;;  %v3622_v52 = vld [vmem:[#allocation15 + $0x378] sm:$0xff] }
 0x441   :  { %3707 = vmatprep.subr.mxu1 %v3608_v47  ;;  %v3621_v47 = vld [vmem:[#allocation15 + $0x370] sm:$0xff] }
 0x442   :  { %3708 = vmatpush2.msra.mxu1 %v3607_v51  ;;  %v3618_v51 = vld [vmem:[#allocation15 + $0x358] sm:$0xff] }
 0x443   :  { %3709 = vmatprep.subr.mxu1 %v3604_v54  ;;  %v3617_v54 = vld [vmem:[#allocation15 + $0x350] sm:$0xff] }
 0x444   :  { %3710 = vmatpush2.msra.mxu1 %v3603_v57  ;;  %v3614_v57 = vld [vmem:[#allocation15 + $0x338] sm:$0xff] }
 0x445   :  { %3711 = vmatprep.subr.mxu1 %v3600_v46  ;;  %v3613_v46 = vld [vmem:[#allocation15 + $0x330] sm:$0xff] }
 0x446   :  { %3712 = vmatpush2.msra.mxu1 %v3599_v59  ;;  %v3610_v59 = vld [vmem:[#allocation15 + $0x318] sm:$0xff] }
 0x447   :  { %3713 = vmatprep.subr.mxu1 %v3596_v58  ;;  %v3609_v58 = vld [vmem:[#allocation15 + $0x310] sm:$0xff] }
 0x448   :  { %3714 = vmatpush2.msra.mxu1 %v3595_v60  ;;  %v3606_v60 = vld [vmem:[#allocation15 + $0x2f8] sm:$0xff] }
 0x449   :  { %3715 = vmatprep.subr.mxu1 %v3592_v18  ;;  %v3605_v18 = vld [vmem:[#allocation15 + $0x2f0] sm:$0xff] }
 0x44a   :  { %3716 = vmatpush2.msra.mxu1 %v3591_v15  ;;  %v3602_v15 = vld [vmem:[#allocation15 + $0x2d8] sm:$0xff] }
 0x4d3   :  { %v4107_v30 = vpop.f32.mrf.mxu1 }
 0x4d5   :  { %v4108_v45 = vpop.f32.mrf.mxu1 }
 0x4d6   :  { %v4109_v49 = vadd.f32 %v4108_v45, %v4107_v30  ;;  %v3593_v30 = vld [vmem:[#allocation15 + $0x290] sm:$0xff]  ;;  %v3588_v45 = vld [vmem:[#allocation15 + $0x268] sm:$0xff] }
 0x4d7   :  { %3717 = vmatprep.subr.mxu1 %v3588_v45  ;;  %v3846_v45 = vld [vmem:[#allocation18 + $0x138] sm:$0xff] }
 0x4d8   :  { %v3390_v2 = vadd.f32 %v4109_v49, %v3320_v6  ;;  %v3590_v6 = vld [vmem:[#allocation15 + $0x278] sm:$0xff]  ;;  %v3587_v49 = vld [vmem:[#allocation15 + $0x260] sm:$0xff] }
 0x4d9   :  { %3718 = vmatpush2.msra.mxu1 %v3587_v49  ;;  %v3861_v49 = vld [vmem:[#allocation18 + $0x1b0] sm:$0xff] }
 0x4da   :  { %v3393_v48 = vmax.f32 %v3390_v2, 0.0  ;;  %v3589_v2 = vld [vmem:[#allocation15 + $0x270] sm:$0xff] }
 0x4dc   :  { %3503 = vmatmul.mubr.f32.vlgmr.msra.gmra.mxu0 %v3393_v48  ;;  %v3584_v48 = vld [vmem:[#allocation15 + $0x248] sm:$0xff] }
 0x4dd   :  { %3733 = vmatpush1.msra.mxu0 %v3573_v7  ;;  %v3586_v7 = vld [vmem:[#allocation15 + $0x258] sm:$0xff]  ;;  %3719 = vmatprep.subr.mxu1 %v3584_v48 }
 0x4de   :  { %3734 = vmatprep.subr.mxu0 %v3570_v8  ;;  %v3583_v8 = vld [vmem:[#allocation15 + $0x240] sm:$0xff]  ;;  %v3845_v48 = vld [vmem:[#allocation18 + $0x130] sm:$0xff] }
 0x4df   :  { %3735 = vmatpush1.msra.mxu0 %v3569_v10  ;;  %v3585_v10 = vld [vmem:[#allocation15 + $0x250] sm:$0xff]  ;;  %3720 = vmatpush2.msra.mxu1 %v3583_v8 }
 0x4e0   :  { %3736 = vmatprep.subr.mxu0 %v3566_v5  ;;  %v3580_v5 = vld [vmem:[#allocation15 + $0x228] sm:$0xff] }
 0x4e1   :  { %3737 = vmatpush1.msra.mxu0 %v3565_v55  ;;  %v3582_v55 = vld [vmem:[#allocation15 + $0x238] sm:$0xff]  ;;  %3721 = vmatprep.subr.mxu1 %v3580_v5  ;;  %v3860_v8 = vld [vmem:[#allocation18 + $0x1a8] sm:$0xff] }
 0x4e2   :  { %3738 = vmatprep.subr.mxu0 %v3562_v9  ;;  %v3579_v9 = vld [vmem:[#allocation15 + $0x220] sm:$0xff]  ;;  %v3844_v5 = vld [vmem:[#allocation18 + $0x128] sm:$0xff] }
 0x4e3   :  { %3739 = vmatpush1.msra.mxu0 %v3561_v14  ;;  %v3581_v14 = vld [vmem:[#allocation15 + $0x230] sm:$0xff]  ;;  %3722 = vmatpush2.msra.mxu1 %v3579_v9  ;;  %v3859_v9 = vld [vmem:[#allocation18 + $0x1a0] sm:$0xff] }
 0x4e4   :  { %3740 = vmatprep.subr.mxu0 %v3558_v3  ;;  %v3576_v3 = vld [vmem:[#allocation15 + $0x208] sm:$0xff] }
 0x4e5   :  { %3741 = vmatpush1.msra.mxu0 %v3557_v35  ;;  %v3578_v35 = vld [vmem:[#allocation15 + $0x218] sm:$0xff]  ;;  %3723 = vmatprep.subr.mxu1 %v3576_v3  ;;  %v3843_v3 = vld [vmem:[#allocation18 + $0x120] sm:$0xff] }
 0x4e6   :  { %3742 = vmatprep.subr.mxu0 %v3554_v63  ;;  %v3575_v63 = vld [vmem:[#allocation15 + $0x200] sm:$0xff] }
 0x4e7   :  { %3743 = vmatpush1.msra.mxu0 %v3553_v27  ;;  %v3577_v27 = vld [vmem:[#allocation15 + $0x210] sm:$0xff]  ;;  %3724 = vmatpush2.msra.mxu1 %v3575_v63  ;;  %v3858_v63 = vld [vmem:[#allocation18 + $0x198] sm:$0xff] }
 0x4e8   :  { %3744 = vmatprep.subr.mxu0 %v3550_v28  ;;  %v3838_v28 = vld [vmem:[#allocation18 + $0xf8] sm:$0xff] }
 0x4e9   :  { %3745 = vmatpush1.msra.mxu0 %v3549_v33  ;;  %v3870_v33 = vld [vmem:[#allocation18 + $0x1f8] sm:$0xff]  ;;  %4110 = vmatprep.subr.mxu1 %v3838_v28 }
 0x4ea   :  { %3746 = vmatprep.subr.mxu0 %v3546_v23  ;;  %v3426_v23 = vld [vmem:[#allocation13] sm:$0x3] }
 0x4eb   :  { %3747 = vmatpush1.msra.mxu0 %v3545_v34  ;;  %v3431_v34 = vrot.slane %v3426_v23, %v4625_v11  ;;  %v3842_v28 = vld [vmem:[#allocation18 + $0x118] sm:$0xff] }
 0x4ec   :  { %3748 = vmatprep.subr.mxu0 %v3542_v38  ;;  %v3435_v38 = vrot.slane %v3426_v23, %v4630_v13  ;;  %v3857_v23 = vld [vmem:[#allocation18 + $0x190] sm:$0xff] }
 0x4ed   :  { %3749 = vmatpush1.msra.mxu0 %v3541_v53 }
 0x4ee   :  { %3750 = vmatprep.subr.mxu0 %v3538_v39 }
 0x4ef   :  { %3751 = vmatpush1.msra.mxu0 %v3537_v44 }
 0x4f0   :  { %3752 = vmatprep.subr.mxu0 %v3534_v19 }
 0x4f1   :  { %3753 = vmatpush1.msra.mxu0 %v3533_v40 }
 0x4f2   :  { %3754 = vmatprep.subr.mxu0 %v3530_v20 }
 0x4f3   :  { %3755 = vmatpush1.msra.mxu0 %v3529_v17  ;;  %v3822_v17 = vld [vmem:[#allocation18 + $0x78] sm:$0xff] }
 0x4f4   :  { %3756 = vmatprep.subr.mxu0 %v3526_v36  ;;  %v3854_v36 = vld [vmem:[#allocation18 + $0x178] sm:$0xff] }
 0x4f5   :  { %3757 = vmatpush1.msra.mxu0 %v3525_v42  ;;  %v3837_v42 = vld [vmem:[#allocation18 + $0xf0] sm:$0xff] }
 0x4f6   :  { %3758 = vmatprep.subr.mxu0 %v3522_v43  ;;  %v3869_v43 = vld [vmem:[#allocation18 + $0x1f0] sm:$0xff] }
 0x4f7   :  { %3759 = vmatpush1.msra.mxu0 %v3521_v62  ;;  %v3821_v62 = vld [vmem:[#allocation18 + $0x70] sm:$0xff] }
 0x4f8   :  { %3760 = vmatprep.subr.mxu0 %v3518_v50  ;;  %v3853_v50 = vld [vmem:[#allocation18 + $0x170] sm:$0xff] }
 0x4f9   :  { %3761 = vmatpush1.msra.mxu0 %v3517_v22  ;;  %v3836_v22 = vld [vmem:[#allocation18 + $0xe8] sm:$0xff] }
 0x4fa   :  { %3762 = vmatprep.subr.mxu0 %v3514_v24  ;;  %v3868_v24 = vld [vmem:[#allocation18 + $0x1e8] sm:$0xff] }
 0x4fb   :  { %3763 = vmatpush1.msra.mxu0 %v3513_v41  ;;  %v3820_v41 = vld [vmem:[#allocation18 + $0x68] sm:$0xff] }
 0x4fc   :  { %3764 = vmatprep.subr.mxu0 %v3638_v0  ;;  %v3852_v0 = vld [vmem:[#allocation18 + $0x168] sm:$0xff] }
 0x4fd   :  { %3765 = vmatpush2.msra.mxu0 %v3637_v12  ;;  %v3835_v12 = vld [vmem:[#allocation18 + $0xe0] sm:$0xff] }
 0x4fe   :  { %3766 = vmatprep.subr.mxu0 %v3634_v21  ;;  %v3867_v21 = vld [vmem:[#allocation18 + $0x1e0] sm:$0xff] }
 0x4ff   :  { %3767 = vmatpush2.msra.mxu0 %v3633_v26  ;;  %v3819_v26 = vld [vmem:[#allocation18 + $0x60] sm:$0xff] }
 0x500   :  { %3768 = vmatprep.subr.mxu0 %v3630_v25  ;;  %v3851_v25 = vld [vmem:[#allocation18 + $0x160] sm:$0xff] }
 0x501   :  { %3769 = vmatpush2.msra.mxu0 %v3629_v16  ;;  %v3834_v16 = vld [vmem:[#allocation18 + $0xd8] sm:$0xff] }
 0x502   :  { %3770 = vmatprep.subr.mxu0 %v3626_v56  ;;  %v3866_v56 = vld [vmem:[#allocation18 + $0x1d8] sm:$0xff] }
 0x503   :  { %3771 = vmatpush2.msra.mxu0 %v3625_v4  ;;  %v3818_v4 = vld [vmem:[#allocation18 + $0x58] sm:$0xff] }
 0x504   :  { %3772 = vmatprep.subr.mxu0 %v3622_v52  ;;  %v3850_v52 = vld [vmem:[#allocation18 + $0x158] sm:$0xff] }
 0x505   :  { %3773 = vmatpush2.msra.mxu0 %v3621_v47  ;;  %v3833_v47 = vld [vmem:[#allocation18 + $0xd0] sm:$0xff] }
 0x506   :  { %3774 = vmatprep.subr.mxu0 %v3618_v51  ;;  %v3865_v51 = vld [vmem:[#allocation18 + $0x1d0] sm:$0xff] }
 0x507   :  { %3775 = vmatpush2.msra.mxu0 %v3617_v54  ;;  %v3817_v54 = vld [vmem:[#allocation18 + $0x50] sm:$0xff] }
 0x508   :  { %3776 = vmatprep.subr.mxu0 %v3614_v57  ;;  %v3849_v57 = vld [vmem:[#allocation18 + $0x150] sm:$0xff] }
 0x509   :  { %3777 = vmatpush2.msra.mxu0 %v3613_v46  ;;  %v3832_v46 = vld [vmem:[#allocation18 + $0xc8] sm:$0xff] }
 0x50a   :  { %3778 = vmatprep.subr.mxu0 %v3610_v59  ;;  %v3864_v59 = vld [vmem:[#allocation18 + $0x1c8] sm:$0xff] }
 0x50b   :  { %3779 = vmatpush2.msra.mxu0 %v3609_v58  ;;  %v3816_v58 = vld [vmem:[#allocation18 + $0x48] sm:$0xff] }
 0x50c   :  { %3780 = vmatprep.subr.mxu0 %v3606_v60  ;;  %v3848_v60 = vld [vmem:[#allocation18 + $0x148] sm:$0xff] }
 0x50d   :  { %3781 = vmatpush2.msra.mxu0 %v3605_v18  ;;  %v3831_v18 = vld [vmem:[#allocation18 + $0xc0] sm:$0xff] }
 0x50e   :  { %3782 = vmatprep.subr.mxu0 %v3602_v15  ;;  %v3863_v15 = vld [vmem:[#allocation18 + $0x1c0] sm:$0xff] }
 0x50f   :  { %3783 = vmatpush2.msra.mxu0 %v3601_v37  ;;  %v3815_v37 = vld [vmem:[#allocation18 + $0x40] sm:$0xff] }
 0x510   :  { %3784 = vmatprep.subr.mxu0 %v3598_v61  ;;  %v3847_v61 = vld [vmem:[#allocation18 + $0x140] sm:$0xff] }
 0x511   :  { %3785 = vmatpush2.msra.mxu0 %v3597_v32  ;;  %v3830_v32 = vld [vmem:[#allocation18 + $0xb8] sm:$0xff] }
 0x512   :  { %3786 = vmatprep.subr.mxu0 %v3594_v1  ;;  %v3862_v1 = vld [vmem:[#allocation18 + $0x1b8] sm:$0xff] }
 0x513   :  { %3787 = vmatpush2.msra.mxu0 %v3593_v30  ;;  %v3814_v30 = vld [vmem:[#allocation18 + $0x38] sm:$0xff] }
 0x514   :  { %3788 = vmatprep.subr.mxu0 %v3590_v6  ;;  %v3829_v6 = vld [vmem:[#allocation18 + $0xb0] sm:$0xff] }
 0x515   :  { %3789 = vmatpush2.msra.mxu0 %v3589_v2  ;;  %v3813_v2 = vld [vmem:[#allocation18 + $0x30] sm:$0xff] }
 0x516   :  { %3790 = vmatprep.subr.mxu0 %v3586_v7  ;;  %v3828_v7 = vld [vmem:[#allocation18 + $0xa8] sm:$0xff] }
 0x517   :  { %3791 = vmatpush2.msra.mxu0 %v3585_v10  ;;  %v3812_v10 = vld [vmem:[#allocation18 + $0x28] sm:$0xff] }
 0x518   :  { %3792 = vmatprep.subr.mxu0 %v3582_v55  ;;  %v3827_v55 = vld [vmem:[#allocation18 + $0xa0] sm:$0xff] }
 0x519   :  { %3793 = vmatpush2.msra.mxu0 %v3581_v14  ;;  %v3811_v14 = vld [vmem:[#allocation18 + $0x20] sm:$0xff] }
 0x51a   :  { %3794 = vmatprep.subr.mxu0 %v3578_v35  ;;  %v3826_v35 = vld [vmem:[#allocation18 + $0x98] sm:$0xff] }
 0x51b   :  { %3795 = vmatpush2.msra.mxu0 %v3577_v27  ;;  %v3810_v27 = vld [vmem:[#allocation18 + $0x18] sm:$0xff] }
 0x51c   :  { %4145 = vmatprep.subr.mxu0 %v3870_v33  ;;  %v3825_v33 = vld [vmem:[#allocation18 + $0x90] sm:$0xff] }
 0x59c   :  { %v3504_v53 = vpop.f32.mrf.mxu0 }
 0x59d   :  { %v3505_v39 = vadd.f32 %v3504_v53, %v3431_v34  ;;  %v3809_v34 = vld [vmem:[#allocation18 + $0x10] sm:$0xff]  ;;  %v3824_v53 = vld [vmem:[#allocation18 + $0x88] sm:$0xff] }
 0x59e   :  { %v3506_v44 = vpop.f32.mrf.mxu0 }
 0x59f   :  { %v3507_v19 = vadd.f32 %v3506_v44, %v3435_v38  ;;  %v3509_v20 = vmax.f32 %v3505_v39, 0.0  ;;  %v3841_v38 = vld [vmem:[#allocation18 + $0x110] sm:$0xff]  ;;  %v3856_v39 = vld [vmem:[#allocation18 + $0x188] sm:$0xff] }
 0x5a0   :  { %v3808_v44 = vld [vmem:[#allocation18 + $0x8] sm:$0xff] }
 0x5a1   :  { %v3510_v40 = vmax.f32 %v3507_v19, 0.0  ;;  %v3840_v19 = vld [vmem:[#allocation18 + $0x108] sm:$0xff] }
 0x5a3   :  { %3725 = vmatprep.mubr.f32.mxu1 %v3510_v40  ;;  %3796 = vmatprep.mubr.f32.mxu0 %v3510_v40  ;;  %v3823_v40 = vld [vmem:[#allocation18 + $0x80] sm:$0xff] }
 0x5a4   :  { %3726 = vmatmul.mubr.f32.vlgmr.msra.gmra.mxu1 %v3509_v20  ;;  %3797 = vmatmul.mubr.f32.vlgmr.msra.gmra.mxu0 %v3509_v20  ;;  %v3855_v20 = vld [vmem:[#allocation18 + $0x180] sm:$0xff] }
 0x5a5   :  { %4111 = vmatpush3.msra.mxu1 %v3822_v17  ;;  %4146 = vmatpush3.msra.mxu0 %v3854_v36  ;;  %v3807_v17 = vld [vmem:[#allocation18] sm:$0xff] }
 0x5a6   :  { %4112 = vmatprep.subr.mxu1 %v3837_v42  ;;  %4147 = vmatprep.subr.mxu0 %v3869_v43  ;;  %v3839_v36 = vld [vmem:[#allocation18 + $0x100] sm:$0xff]  ;;  %v3639_v42 = vld [vmem:[#allocation16] sm:$0xf] }
 0x5a7   :  { %4113 = vmatpush3.msra.mxu1 %v3821_v62  ;;  %4148 = vmatpush3.msra.mxu0 %v3853_v50  ;;  %v3644_v43 = vrot.slane %v3639_v42, %v4625_v11  ;;  %v3652_v62 = vrot.slane %v3639_v42, %v4648_v29  ;;  %v3648_v50 = vrot.slane %v3639_v42, %v4630_v13  ;;  %v4039_v29 = vld [vmem:[#allocation19] ss:$0 sm:$0xff] }
 0x5a8   :  { %4114 = vmatprep.subr.mxu1 %v3836_v22  ;;  %4149 = vmatprep.subr.mxu0 %v3868_v24  ;;  %v3656_v22 = vrot.slane %v3639_v42, %v4651_v31 }
 0x5a9   :  { %4115 = vmatpush3.msra.mxu1 %v3820_v41  ;;  %4150 = vmatpush3.msra.mxu0 %v3852_v0 }
 0x5aa   :  { %4116 = vmatprep.subr.mxu1 %v3835_v12  ;;  %4151 = vmatprep.subr.mxu0 %v3867_v21 }
 0x5ab   :  { %4117 = vmatpush3.msra.mxu1 %v3819_v26  ;;  %4152 = vmatpush3.msra.mxu0 %v3851_v25 }
 0x5ac   :  { %4118 = vmatprep.subr.mxu1 %v3834_v16  ;;  %4153 = vmatprep.subr.mxu0 %v3866_v56 }
 0x5ad   :  { %4119 = vmatpush3.msra.mxu1 %v3818_v4  ;;  %4154 = vmatpush3.msra.mxu0 %v3850_v52 }
 0x5ae   :  { %4120 = vmatprep.subr.mxu1 %v3833_v47  ;;  %4155 = vmatprep.subr.mxu0 %v3865_v51 }
 0x5af   :  { %4121 = vmatpush3.msra.mxu1 %v3817_v54  ;;  %4156 = vmatpush3.msra.mxu0 %v3849_v57 }
 0x5b0   :  { %4122 = vmatprep.subr.mxu1 %v3832_v46  ;;  %4157 = vmatprep.subr.mxu0 %v3864_v59 }
 0x5b1   :  { %4123 = vmatpush3.msra.mxu1 %v3816_v58  ;;  %4158 = vmatpush3.msra.mxu0 %v3848_v60 }
 0x5b2   :  { %4124 = vmatprep.subr.mxu1 %v3831_v18  ;;  %4159 = vmatprep.subr.mxu0 %v3863_v15 }
 0x5b3   :  { %4125 = vmatpush3.msra.mxu1 %v3815_v37  ;;  %4160 = vmatpush3.msra.mxu0 %v3847_v61 }
 0x5b4   :  { %4126 = vmatprep.subr.mxu1 %v3830_v32  ;;  %4161 = vmatprep.subr.mxu0 %v3862_v1 }
 0x5b5   :  { %4127 = vmatpush3.msra.mxu1 %v3814_v30  ;;  %4162 = vmatpush3.msra.mxu0 %v3846_v45 }
 0x5b6   :  { %4128 = vmatprep.subr.mxu1 %v3829_v6  ;;  %4163 = vmatprep.subr.mxu0 %v3861_v49 }
 0x5b7   :  { %4129 = vmatpush3.msra.mxu1 %v3813_v2  ;;  %4164 = vmatpush3.msra.mxu0 %v3845_v48 }
 0x5b8   :  { %4130 = vmatprep.subr.mxu1 %v3828_v7  ;;  %4165 = vmatprep.subr.mxu0 %v3860_v8 }
 0x5b9   :  { %4131 = vmatpush3.msra.mxu1 %v3812_v10  ;;  %4166 = vmatpush3.msra.mxu0 %v3844_v5 }
 0x5ba   :  { %4132 = vmatprep.subr.mxu1 %v3827_v55  ;;  %4167 = vmatprep.subr.mxu0 %v3859_v9 }
 0x5bb   :  { %4133 = vmatpush3.msra.mxu1 %v3811_v14  ;;  %4168 = vmatpush3.msra.mxu0 %v3843_v3 }
 0x5bc   :  { %4134 = vmatprep.subr.mxu1 %v3826_v35  ;;  %4169 = vmatprep.subr.mxu0 %v3858_v63 }
 0x5bd   :  { %4135 = vmatpush3.msra.mxu1 %v3810_v27  ;;  %4170 = vmatpush3.msra.mxu0 %v3842_v28 }
 0x5be   :  { %4136 = vmatprep.subr.mxu1 %v3825_v33  ;;  %4171 = vmatprep.subr.mxu0 %v3857_v23 }
 0x5bf   :  { %4137 = vmatpush3.msra.mxu1 %v3809_v34  ;;  %4172 = vmatpush3.msra.mxu0 %v3841_v38 }
 0x5c0   :  { %4138 = vmatprep.subr.mxu1 %v3824_v53  ;;  %4173 = vmatprep.subr.mxu0 %v3856_v39 }
 0x5c1   :  { %4139 = vmatpush3.msra.mxu1 %v3808_v44  ;;  %4174 = vmatpush3.msra.mxu0 %v3840_v19 }
 0x5c2   :  { %4140 = vmatprep.subr.mxu1 %v3823_v40  ;;  %4175 = vmatprep.subr.mxu0 %v3855_v20 }
 0x5c3   :  { %4141 = vmatpush3.msra.mxu1 %v3807_v17  ;;  %4176 = vmatpush3.msra.mxu0 %v3839_v36 }
 0x664   :  { %v3727_v24 = vpop.f32.mrf.mxu1  ;;  %v3798_v41 = vpop.f32.mrf.mxu0 }
 0x665   :  { %v3728_v0 = vadd.f32 %v3727_v24, %v3644_v43  ;;  %v3799_v12 = vadd.f32 %v3798_v41, %v3652_v62 }
 0x666   :  { %v3729_v21 = vpop.f32.mrf.mxu1  ;;  %v3800_v26 = vpop.f32.mrf.mxu0 }
 0x667   :  { %v3730_v25 = vadd.f32 %v3729_v21, %v3648_v50  ;;  %v3801_v16 = vadd.f32 %v3800_v26, %v3656_v22  ;;  %v3803_v52 = vmax.f32 %v3728_v0, 0.0  ;;  %v3805_v47 = vmax.f32 %v3799_v12, 0.0 }
 0x669   :  { %v3804_v56 = vmax.f32 %v3730_v25, 0.0  ;;  %v3806_v4 = vmax.f32 %v3801_v16, 0.0 }
 0x66b   :  { %3942 = vmatprep.mubr.f32.mxu1 %v3804_v56  ;;  %4012 = vmatprep.mubr.f32.mxu0 %v3806_v4 }
 0x66c   :  { %3943 = vmatmul.mubr.f32.vlgmr.msra.gmra.mxu1 %v3803_v52  ;;  %4013 = vmatmul.mubr.f32.vlgmr.msra.gmra.mxu0 %v3805_v47 }
 0x72c   :  { %v4142_v11 = vpop.f32.mrf.mxu1  ;;  %v4177_v13 = vpop.f32.mrf.mxu0 }
 0x72e   :  { %v4143_v31 = vpop.f32.mrf.mxu1  ;;  %v4178_v51 = vpop.f32.mrf.mxu0 }
 0x72f   :  { %v4144_v54 = vadd.f32 %v4143_v31, %v4142_v11  ;;  %v4179_v46 = vadd.f32 %v4178_v51, %v4177_v13 }
 0x731   :  { %v3945_v57 = vadd.f32 %v4144_v54, %v4039_v29 }
 0x733   :  { %v4015_v59 = vadd.f32 %v4179_v46, %v3945_v57 }
 0x735   :  { %4018 = vst [vmem:[%s4865_s13] sm:$0xff] %v4015_v59 }
 0x736   :  { %4023 = vsyncpa [#allocation3], 1 }
 0x737   :  { %4024 = vsyncpa [#allocation5], 1 }
 0x738   :  { %4025 = vsyncpa [#allocation8], 1 }
 0x739   :  { %4026 = vsyncpa [#allocation11], 1 }
 0x73a   :  { %4027 = vsyncpa [#allocation14], 1 }
 0x73b   :  { %4028 = vsyncpa [#allocation17], 1 }
 0x73c   :  { %4029 = vsyncpa [#allocation20], 1 }

</bundles_post_ra>
